<compile_context>
chip_gen: v7x
topology: tpu7x:2x2x1
jax: 0.10.0
libtpu: 0.0.40
codegen_flags: <defaults>
</compile_context>

<pallas_src>
import functools

import jax
import jax.numpy as jnp
from jax import lax
from jax.experimental import pallas as pl
from jax.experimental.pallas import tpu as pltpu

_LN_EPS = 1e-5


def _gelu_exact(x):
    # matches torch.nn.GELU() default (erf-based, not tanh approximation)
    return 0.5 * x * (1.0 + lax.erf(x * 0.7071067811865476))


def mixer_kernel(patches_ref, w_embed_ref, b_embed_ref, gamma_ref, beta_ref,
                 avg_ref, wt1t_ref, bt1_ref, wt2t_ref, bt2_ref,
                 wc1_ref, bc1_ref, wc2_ref, bc2_ref,
                 pool_ref, wfc_ref, bfc_ref, out_ref, *, transpose_time):
    """One grid step = GB row-stacked groups of TB lane-packed samples.

    Activation layout is (GB*N_pad rows, TB*D lanes); sample s of group gb
    occupies rows [gb*N_pad, (gb+1)*N_pad) and lanes [s*D, (s+1)*D).
    Channel-wise ops use block-diagonal weights (over TB); token-wise ops use
    pre-transposed weights made block-diagonal over the GB stacked groups.
    """
    x_patches = patches_ref[0]                 # (M, TB*P) bf16
    M = x_patches.shape[0]                     # GB * N_pad
    LW = gamma_ref.shape[1]                    # TB * D

    w_embed = w_embed_ref[...]                 # (TB*P, LW)  bf16 block-diag
    avg = avg_ref[...]                         # (LW, LW)    f32 block-diag 1/D
    wt1t = wt1t_ref[...]                       # (M, M)      bf16 block-diag (GB)
    wt2t = wt2t_ref[...]                       # (M, M)      bf16 block-diag (GB)
    wc1 = wc1_ref[...]                         # (LW, LW)    bf16 block-diag (TB)
    wc2 = wc2_ref[...]                         # (LW, LW)    bf16 block-diag (TB)
    pool = pool_ref[...]                       # (GB, M)     f32  per-group 1/N
    wfc = wfc_ref[...]                         # (LW, TB*H)  f32 block-diag (TB)

    # Hoist every bias / LN-affine broadcast to the full activation shape once:
    # the transpose_time loop below is unrolled and JAX does not CSE
    # broadcast_in_dim, so implicit broadcasting would re-emit it per use.
    full = (M, LW)
    b_embed_b = jnp.broadcast_to(b_embed_ref[...], full)
    gamma_b = jnp.broadcast_to(gamma_ref[...], full)
    beta_b = jnp.broadcast_to(beta_ref[...], full)
    bt1_b = jnp.broadcast_to(bt1_ref[...], full)
    bt2_b = jnp.broadcast_to(bt2_ref[...], full)
    bc1_b = jnp.broadcast_to(bc1_ref[...], full)
    bc2_b = jnp.broadcast_to(bc2_ref[...], full)

    bf16 = jnp.bfloat16

    def packed_layer_norm(v):
        # Per-sample LayerNorm over each D-wide lane chunk.  The block-diagonal
        # averaging matmul computes the per-chunk mean/var and broadcasts them
        # back to every lane of the chunk in one MXU op, avoiding any lane-axis
        # reshapes/reductions on the VPU.  Kept in f32 (feeds rsqrt) -- this is
        # the most precision-sensitive matmul in the kernel.
        mu = jnp.dot(v, avg, preferred_element_type=jnp.float32)
        vc = v - mu
        var = jnp.dot(vc * vc, avg, preferred_element_type=jnp.float32)
        return vc * lax.rsqrt(var + _LN_EPS) * gamma_b + beta_b

    # PatchEmbedding.fc for all GB*TB packed samples in one MXU call.
    x = jnp.dot(x_patches, w_embed, preferred_element_type=jnp.float32) + b_embed_b

    # transpose_time is small and static -> unrolled Python loop.
    for _ in range(transpose_time):
        # ---- token mixing: token_mlp(x.transpose(1,2)).transpose(1,2) ----
        xn = packed_layer_norm(x)
        h = _gelu_exact(
            jnp.dot(wt1t, xn.astype(bf16), preferred_element_type=jnp.float32)
            + bt1_b)
        x = jnp.dot(wt2t, h.astype(bf16), preferred_element_type=jnp.float32) + bt2_b
        # ---- channel mixing: channel_mlp(x) ----
        xn = packed_layer_norm(x)
        h = _gelu_exact(
            jnp.dot(xn.astype(bf16), wc1, preferred_element_type=jnp.float32)
            + bc1_b)
        x = jnp.dot(h.astype(bf16), wc2, preferred_element_type=jnp.float32) + bc2_b
        # Dropout layers are identity in eval mode.

    # Per-group masked token-mean folded into one matmul, then the packed head:
    # a single lane-dense (GB, TB*H) unmasked store per grid step.
    pooled = jnp.dot(pool, x, preferred_element_type=jnp.float32)          # (GB, LW)
    out = jnp.dot(pooled, wfc, preferred_element_type=jnp.float32) + bfc_ref[...]
    out_ref[0] = out


def patchify(x, patch_size):
    """nn.Unfold(kernel=patch, stride=patch) + transpose(1,2), NCHW input."""
    B, C, Hs, Ws = x.shape
    gh, gw = Hs // patch_size, Ws // patch_size
    x = x.reshape(B, C, gh, patch_size, gw, patch_size)
    x = x.transpose(0, 2, 4, 1, 3, 5)          # (B, gh, gw, C, ph, pw)
    return x.reshape(B, gh * gw, C * patch_size * patch_size)


def _block_diag(w, t):
    r, c = w.shape
    out = jnp.zeros((t * r, t * c), w.dtype)
    for s in range(t):
        out = out.at[s * r:(s + 1) * r, s * c:(s + 1) * c].set(w)
    return out


def _round_up(v, m):
    return (v + m - 1) // m * m


def _hw_geometry():
    """(lane_target, min_grid_steps) from the attached TPU generation.

    v6e / v7x have a 2x256 MXU -> pack 256 lanes and stack rows toward 256;
    v7x additionally has two TensorCores, so aim for >=4 grid steps (>=2
    pipelined steps per core).  Falls back to the universally-safe 128 / 2.
    """
    kind = ""
    try:
        kind = jax.devices()[0].device_kind.lower()
    except Exception:
        pass
    wide = any(t in kind for t in ("v6", "v7", "trillium"))
    return (256 if wide else 128), (4 if "v7" in kind else 2)


def mixer_base_forward(x, params, *, patch_size, transpose_time, stride=None,
                       lane_pack=None, group_stack=None):
    if stride is not None and stride != patch_size:
        # TODO(synk): overlapping Unfold (stride != patch_size) not implemented.
        raise NotImplementedError("stride != patch_size is not supported")

    B = x.shape[0]
    x = x.reshape(B, -1, 60, 60)                         # x.view(batch, -1, 60, 60)
    patches = patchify(x, patch_size).astype(jnp.float32)          # (B, N, P)
    _, N, P = patches.shape
    D = params['w_embed'].shape[1]
    H = params['wfc'].shape[1]

    # ---- packing geometry ---------------------------------------------------
    lane_target, min_steps = _hw_geometry()
    if lane_pack is not None:
        TB = int(lane_pack)
    elif D <= lane_target and lane_target % D == 0:
        TB = lane_target // D                   # samples packed along the lanes
    elif D <= 128 and 128 % D == 0:
        TB = 128 // D
    else:
        TB = 1       # awkward embed_dim: still correct, just lane-masked/slower
    N_pad = _round_up(N, 8)                     # sublane-align the token axis
    n_groups = -(-B // TB)
    if group_stack is not None:
        GB = int(group_stack)
    else:
        # Stack GB groups along the row axis so matmul M ~= lane_target, while
        # keeping at least `min_steps` grid steps so the patch DMA pipelines
        # (and both v7x cores get work).
        GB = max(1, min(lane_target // N_pad, -(-n_groups // min_steps)))
    step = TB * GB
    B_pad = _round_up(max(B, step), step)
    G = B_pad // step
    M = GB * N_pad
    f32, bf16 = jnp.float32, jnp.bfloat16

    # (B_pad, N_pad, P) -> (G, GB, N_pad, TB, P) -> (G, GB*N_pad, TB*P): sample
    # s of group gb occupies rows [gb*N_pad,(gb+1)*N_pad), lanes [s*P,(s+1)*P).
    # bf16 halves the only per-step streamed DMA.
    patches = jnp.pad(patches, ((0, B_pad - B), (0, N_pad - N), (0, 0)))
    patches = (patches.reshape(G, GB, TB, N_pad, P)
                      .transpose(0, 1, 3, 2, 4)
                      .reshape(G, M, TB * P)
                      .astype(bf16))

    # ---- weight prep (plain-JAX glue, done once) ------------------------------
    # Matmul weights are bf16 (single-pass MXU); the LN averaging matrix,
    # pooling rows and the head stay f32.
    w_embed_bd = _block_diag(params['w_embed'].astype(f32), TB).astype(bf16)
    b_embed_t = jnp.tile(params['b_embed'].astype(f32).reshape(1, -1), (1, TB))
    gamma_t = jnp.tile(params['ln_gamma'].astype(f32).reshape(1, -1), (1, TB))
    beta_t = jnp.tile(params['ln_beta'].astype(f32).reshape(1, -1), (1, TB))
    avg_bd = _block_diag(jnp.full((D, D), 1.0 / D, f32), TB)        # (TB*D, TB*D)
    # Token-mix weights pre-transposed (no activation transpose in-kernel),
    # zero-padded on pad tokens, block-diagonal over the GB stacked groups.
    wt1t_bd = _block_diag(
        jnp.pad(params['wt1'].astype(f32).T, ((0, N_pad - N), (0, N_pad - N))),
        GB).astype(bf16)
    wt2t_bd = _block_diag(
        jnp.pad(params['wt2'].astype(f32).T, ((0, N_pad - N), (0, N_pad - N))),
        GB).astype(bf16)
    bt1_t = jnp.tile(jnp.pad(params['bt1'].astype(f32).reshape(-1, 1),
                             ((0, N_pad - N), (0, 0))), (GB, 1))
    bt2_t = jnp.tile(jnp.pad(params['bt2'].astype(f32).reshape(-1, 1),
                             ((0, N_pad - N), (0, 0))), (GB, 1))
    wc1_bd = _block_diag(params['wc1'].astype(f32), TB).astype(bf16)
    wc2_bd = _block_diag(params['wc2'].astype(f32), TB).astype(bf16)
    bc1_t = jnp.tile(params['bc1'].astype(f32).reshape(1, -1), (1, TB))
    bc2_t = jnp.tile(params['bc2'].astype(f32).reshape(1, -1), (1, TB))
    # Per-group mean over the N real tokens folded into a (GB, M) pooling matmul.
    pool_bd = _block_diag(
        jnp.pad(jnp.full((1, N), 1.0 / N, f32), ((0, 0), (0, N_pad - N))), GB)
    wfc_bd = _block_diag(params['wfc'].astype(f32), TB)              # (TB*D, TB*H)
    bfc_t = jnp.tile(params['bfc'].astype(f32).reshape(1, -1), (1, TB))

    args = (patches, w_embed_bd, b_embed_t, gamma_t, beta_t, avg_bd,
            wt1t_bd, bt1_t, wt2t_bd, bt2_t, wc1_bd, bc1_t, wc2_bd, bc2_t,
            pool_bd, wfc_bd, bfc_t)

    def resident(a):
        # Full array with a constant index_map: fetched once, then kept resident
        # in VMEM for every grid step.  Total resident footprint is a few MiB at
        # most, far under the scoped-VMEM limits of any generation (incl. v7x).
        return pl.BlockSpec(a.shape, lambda g: (0,) * a.ndim)

    in_specs = ([pl.BlockSpec((1, M, TB * P), lambda g: (g, 0, 0))]
                + [resident(a) for a in args[1:]])
    out_specs = pl.BlockSpec((1, GB, TB * H), lambda g: (g, 0, 0))

    flops = int(2 * B_pad * (N * P * D + D * H
                             + transpose_time * (2 * N * N * D + 4 * N * D * D)))
    transcendentals = int(B_pad * transpose_time * 2 * N * D)
    bytes_accessed = int(sum(a.size * a.dtype.itemsize for a in args)
                         + B_pad * H * 4)

    kernel = functools.partial(mixer_kernel, transpose_time=transpose_time)
    out_packed = pl.pallas_call(
        kernel,
        grid=(G,),
        out_shape=jax.ShapeDtypeStruct((G, GB, TB * H), jnp.float32),
        in_specs=in_specs,
        out_specs=out_specs,
        compiler_params=pltpu.CompilerParams(
            dimension_semantics=("parallel",)),   # v7x: shard batch blocks on 2 TCs
        cost_estimate=pl.CostEstimate(
            flops=flops, transcendentals=transcendentals,
            bytes_accessed=bytes_accessed),
    )(*args)

    # (G, GB, TB*H) -> (B_pad, H) -> (B, H): row-major unpack matches packing.
    return out_packed.reshape(G, GB, TB, H).reshape(B_pad, H)[:B]


def mixer_base_reference(x, params, *, patch_size, transpose_time):
    """Plain-JAX forward (per-sample layout) used only for validation."""
    hp = lax.Precision.HIGHEST
    B = x.shape[0]
    x = x.reshape(B, -1, 60, 60)
    p = patchify(x, patch_size).astype(jnp.float32)                     # (B, N, P)
    h = jnp.einsum('bnp,pd->bnd', p, params['w_embed'], precision=hp) + params['b_embed']
    gamma, beta = params['ln_gamma'], params['ln_beta']

    def ln(v):
        mu = v.mean(-1, keepdims=True)
        var = ((v - mu) ** 2).mean(-1, keepdims=True)
        return (v - mu) * lax.rsqrt(var + _LN_EPS) * gamma + beta

    wt1t, wt2t = params['wt1'].T, params['wt2'].T
    for _ in range(transpose_time):
        v = ln(h)
        t = jnp.einsum('nm,bmd->bnd', wt1t, v, precision=hp) + params['bt1'][None, :, None]
        h = jnp.einsum('nm,bmd->bnd', wt2t, _gelu_exact(t), precision=hp) \
            + params['bt2'][None, :, None]
        v = ln(h)
        c = _gelu_exact(jnp.einsum('bnd,de->bne', v, params['wc1'], precision=hp)
                        + params['bc1'])
        h = jnp.einsum('bnd,de->bne', c, params['wc2'], precision=hp) + params['bc2']
    pooled = h.mean(axis=1)
    return jnp.einsum('bd,dh->bh', pooled, params['wfc'], precision=hp) + params['bfc']


def init_params(key, patch_size, in_channels, embed_dim, hidden_size):
    """Deterministic synthetic parameters (shapes from MixerBase.__init__).

    Weights stored as (in_dim, out_dim) so y = x @ W + b (equivalent to torch's
    y = x @ W.T + b with W of shape (out, in)).  Biases are zero, matching the
    module's init_ (constant 0); LayerNorm gamma=1, beta=0.
    """
    n_tokens = (60 // patch_size) ** 2
    p_dim = patch_size * patch_size * in_channels
    keys = jax.random.split(key, 6)
    s = 0.2
    return {
        'w_embed': jax.random.normal(keys[0], (p_dim, embed_dim), jnp.float32) * s,
        'b_embed': jnp.zeros((embed_dim,), jnp.float32),
        'ln_gamma': jnp.ones((embed_dim,), jnp.float32),
        'ln_beta': jnp.zeros((embed_dim,), jnp.float32),
        'wt1': jax.random.normal(keys[1], (n_tokens, n_tokens), jnp.float32) * s,
        'bt1': jnp.zeros((n_tokens,), jnp.float32),
        'wt2': jax.random.normal(keys[2], (n_tokens, n_tokens), jnp.float32) * s,
        'bt2': jnp.zeros((n_tokens,), jnp.float32),
        'wc1': jax.random.normal(keys[3], (embed_dim, embed_dim), jnp.float32) * s,
        'bc1': jnp.zeros((embed_dim,), jnp.float32),
        'wc2': jax.random.normal(keys[4], (embed_dim, embed_dim), jnp.float32) * s,
        'bc2': jnp.zeros((embed_dim,), jnp.float32),
        'wfc': jax.random.normal(keys[5], (embed_dim, hidden_size), jnp.float32) * s,
        'bfc': jnp.zeros((hidden_size,), jnp.float32),
    }


if __name__ == "__main__":
    # Small config consistent with the module: 60x60 spatial is hard-coded.
    patch_size = 10          # -> total_num_batch = (60 // 10)**2 = 36 tokens
    in_channels = 1
    embed_dim = 32           # TB = 4 (128-lane MXU) or 8 (256-lane MXU)
    hidden_size = 32
    transpose_time = 2
    batch = 96               # keeps >=2 grid steps for every TB/GB combination

    key = jax.random.PRNGKey(0)
    k_x, k_p = jax.random.split(key)
    x = jax.random.normal(k_x, (batch, in_channels, 60, 60), jnp.float32)
    params = init_params(k_p, patch_size, in_channels, embed_dim, hidden_size)

    out = mixer_base_forward(x, params,
                             patch_size=patch_size,
                             transpose_time=transpose_time)
    out = jax.block_until_ready(out)
    assert out.shape == (batch, hidden_size)
    assert bool(jnp.all(jnp.isfinite(out)))

    # Numerical self-check against a plain-JAX (Precision.HIGHEST) reference.
    # The kernel's matmul operands are bf16 (single MXU pass); the tolerance
    # below documents that accuracy.
    ref = jax.block_until_ready(
        mixer_base_reference(x, params, patch_size=patch_size,
                             transpose_time=transpose_time))
    max_err = float(jnp.max(jnp.abs(out - ref)))
    assert max_err < 2e-2, f"kernel vs reference mismatch: max|err|={max_err}"
    print("KERNEL_OK")
</pallas_src>

<mosaic_0001>
module attributes {stable_mosaic.version = 11 : i64} {
  func.func @mixer_kernel(%arg0: i32, %arg1: memref<1x120x400xbf16, #tpu.memory_space<vmem>>, %arg2: memref<400x128xbf16, #tpu.memory_space<vmem>>, %arg3: memref<1x128xf32, #tpu.memory_space<vmem>>, %arg4: memref<1x128xf32, #tpu.memory_space<vmem>>, %arg5: memref<1x128xf32, #tpu.memory_space<vmem>>, %arg6: memref<128x128xf32, #tpu.memory_space<vmem>>, %arg7: memref<120x120xbf16, #tpu.memory_space<vmem>>, %arg8: memref<120x1xf32, #tpu.memory_space<vmem>>, %arg9: memref<120x120xbf16, #tpu.memory_space<vmem>>, %arg10: memref<120x1xf32, #tpu.memory_space<vmem>>, %arg11: memref<128x128xbf16, #tpu.memory_space<vmem>>, %arg12: memref<1x128xf32, #tpu.memory_space<vmem>>, %arg13: memref<128x128xbf16, #tpu.memory_space<vmem>>, %arg14: memref<1x128xf32, #tpu.memory_space<vmem>>, %arg15: memref<3x120xf32, #tpu.memory_space<vmem>>, %arg16: memref<128x128xf32, #tpu.memory_space<vmem>>, %arg17: memref<1x128xf32, #tpu.memory_space<vmem>>, %arg18: memref<1x3x128xf32, #tpu.memory_space<vmem>>) attributes {dimension_semantics = [#tpu.dimension_semantics<parallel>], iteration_bounds = array<i64: 8>, scalar_prefetch = 0 : i64, scratch_operands = 0 : i64, tpu.core_type = #tpu.core_type<tc>, window_params = [{transform_indices = @transform_0, window_bounds = array<i64: 1, 120, 400>}, {pipeline_mode = #tpu.pipeline_mode<synchronous>, transform_indices = @transform_1, window_bounds = array<i64: 400, 128>}, {pipeline_mode = #tpu.pipeline_mode<synchronous>, transform_indices = @transform_2, window_bounds = array<i64: 1, 128>}, {pipeline_mode = #tpu.pipeline_mode<synchronous>, transform_indices = @transform_3, window_bounds = array<i64: 1, 128>}, {pipeline_mode = #tpu.pipeline_mode<synchronous>, transform_indices = @transform_4, window_bounds = array<i64: 1, 128>}, {pipeline_mode = #tpu.pipeline_mode<synchronous>, transform_indices = @transform_5, window_bounds = array<i64: 128, 128>}, {pipeline_mode = #tpu.pipeline_mode<synchronous>, transform_indices = @transform_6, window_bounds = array<i64: 120, 120>}, {pipeline_mode = #tpu.pipeline_mode<synchronous>, transform_indices = @transform_7, window_bounds = array<i64: 120, 1>}, {pipeline_mode = #tpu.pipeline_mode<synchronous>, transform_indices = @transform_8, window_bounds = array<i64: 120, 120>}, {pipeline_mode = #tpu.pipeline_mode<synchronous>, transform_indices = @transform_9, window_bounds = array<i64: 120, 1>}, {pipeline_mode = #tpu.pipeline_mode<synchronous>, transform_indices = @transform_10, window_bounds = array<i64: 128, 128>}, {pipeline_mode = #tpu.pipeline_mode<synchronous>, transform_indices = @transform_11, window_bounds = array<i64: 1, 128>}, {pipeline_mode = #tpu.pipeline_mode<synchronous>, transform_indices = @transform_12, window_bounds = array<i64: 128, 128>}, {pipeline_mode = #tpu.pipeline_mode<synchronous>, transform_indices = @transform_13, window_bounds = array<i64: 1, 128>}, {pipeline_mode = #tpu.pipeline_mode<synchronous>, transform_indices = @transform_14, window_bounds = array<i64: 3, 120>}, {pipeline_mode = #tpu.pipeline_mode<synchronous>, transform_indices = @transform_15, window_bounds = array<i64: 128, 128>}, {pipeline_mode = #tpu.pipeline_mode<synchronous>, transform_indices = @transform_16, window_bounds = array<i64: 1, 128>}, {transform_indices = @transform_17, window_bounds = array<i64: 1, 3, 128>}]} {
    %c0 = arith.constant 0 : index
    %c0_0 = arith.constant 0 : index
    %c0_1 = arith.constant 0 : index
    %0 = vector.load %arg1[%c0, %c0_0, %c0_1] : memref<1x120x400xbf16, #tpu.memory_space<vmem>>, vector<1x120x400xbf16>
    %1 = vector.shape_cast %0 : vector<1x120x400xbf16> to vector<120x400xbf16>
    %c0_2 = arith.constant 0 : index
    %c0_3 = arith.constant 0 : index
    %2 = vector.load %arg2[%c0_2, %c0_3] : memref<400x128xbf16, #tpu.memory_space<vmem>>, vector<400x128xbf16>
    %c0_4 = arith.constant 0 : index
    %c0_5 = arith.constant 0 : index
    %3 = vector.load %arg6[%c0_4, %c0_5] : memref<128x128xf32, #tpu.memory_space<vmem>>, vector<128x128xf32>
    %c0_6 = arith.constant 0 : index
    %c0_7 = arith.constant 0 : index
    %4 = vector.load %arg7[%c0_6, %c0_7] : memref<120x120xbf16, #tpu.memory_space<vmem>>, vector<120x120xbf16>
    %c0_8 = arith.constant 0 : index
    %c0_9 = arith.constant 0 : index
    %5 = vector.load %arg9[%c0_8, %c0_9] : memref<120x120xbf16, #tpu.memory_space<vmem>>, vector<120x120xbf16>
    %c0_10 = arith.constant 0 : index
    %c0_11 = arith.constant 0 : index
    %6 = vector.load %arg11[%c0_10, %c0_11] : memref<128x128xbf16, #tpu.memory_space<vmem>>, vector<128x128xbf16>
    %c0_12 = arith.constant 0 : index
    %c0_13 = arith.constant 0 : index
    %7 = vector.load %arg13[%c0_12, %c0_13] : memref<128x128xbf16, #tpu.memory_space<vmem>>, vector<128x128xbf16>
    %c0_14 = arith.constant 0 : index
    %c0_15 = arith.constant 0 : index
    %8 = vector.load %arg15[%c0_14, %c0_15] : memref<3x120xf32, #tpu.memory_space<vmem>>, vector<3x120xf32>
    %c0_16 = arith.constant 0 : index
    %c0_17 = arith.constant 0 : index
    %9 = vector.load %arg16[%c0_16, %c0_17] : memref<128x128xf32, #tpu.memory_space<vmem>>, vector<128x128xf32>
    %c0_18 = arith.constant 0 : index
    %c0_19 = arith.constant 0 : index
    %10 = vector.load %arg3[%c0_18, %c0_19] : memref<1x128xf32, #tpu.memory_space<vmem>>, vector<1x128xf32>
    %11 = vector.shape_cast %10 : vector<1x128xf32> to vector<1x128xf32>
    %12 = vector.broadcast %11 : vector<1x128xf32> to vector<120x128xf32>
    %c0_20 = arith.constant 0 : index
    %c0_21 = arith.constant 0 : index
    %13 = vector.load %arg4[%c0_20, %c0_21] : memref<1x128xf32, #tpu.memory_space<vmem>>, vector<1x128xf32>
    %14 = vector.shape_cast %13 : vector<1x128xf32> to vector<1x128xf32>
    %15 = vector.broadcast %14 : vector<1x128xf32> to vector<120x128xf32>
    %c0_22 = arith.constant 0 : index
    %c0_23 = arith.constant 0 : index
    %16 = vector.load %arg5[%c0_22, %c0_23] : memref<1x128xf32, #tpu.memory_space<vmem>>, vector<1x128xf32>
    %17 = vector.shape_cast %16 : vector<1x128xf32> to vector<1x128xf32>
    %18 = vector.broadcast %17 : vector<1x128xf32> to vector<120x128xf32>
    %c0_24 = arith.constant 0 : index
    %c0_25 = arith.constant 0 : index
    %19 = vector.load %arg8[%c0_24, %c0_25] : memref<120x1xf32, #tpu.memory_space<vmem>>, vector<120x1xf32>
    %20 = vector.shape_cast %19 : vector<120x1xf32> to vector<120x1xf32>
    %21 = vector.broadcast %20 : vector<120x1xf32> to vector<120x128xf32>
    %c0_26 = arith.constant 0 : index
    %c0_27 = arith.constant 0 : index
    %22 = vector.load %arg10[%c0_26, %c0_27] : memref<120x1xf32, #tpu.memory_space<vmem>>, vector<120x1xf32>
    %23 = vector.shape_cast %22 : vector<120x1xf32> to vector<120x1xf32>
    %24 = vector.broadcast %23 : vector<120x1xf32> to vector<120x128xf32>
    %c0_28 = arith.constant 0 : index
    %c0_29 = arith.constant 0 : index
    %25 = vector.load %arg12[%c0_28, %c0_29] : memref<1x128xf32, #tpu.memory_space<vmem>>, vector<1x128xf32>
    %26 = vector.shape_cast %25 : vector<1x128xf32> to vector<1x128xf32>
    %27 = vector.broadcast %26 : vector<1x128xf32> to vector<120x128xf32>
    %c0_30 = arith.constant 0 : index
    %c0_31 = arith.constant 0 : index
    %28 = vector.load %arg14[%c0_30, %c0_31] : memref<1x128xf32, #tpu.memory_space<vmem>>, vector<1x128xf32>
    %29 = vector.shape_cast %28 : vector<1x128xf32> to vector<1x128xf32>
    %30 = vector.broadcast %29 : vector<1x128xf32> to vector<120x128xf32>
    %cst = arith.constant dense<0.000000e+00> : vector<120x128xf32>
    %31 = tpu.matmul %1, %2, %cst {dimension_numbers = #tpu.dot_dimension_numbers<[1], [0], [0], [1], [0, 0, 1, 1], [], []>} : vector<120x400xbf16>, vector<400x128xbf16>, vector<120x128xf32> -> vector<120x128xf32>
    %32 = arith.addf %31, %12 : vector<120x128xf32>
    %cst_32 = arith.constant dense<0.000000e+00> : vector<120x128xf32>
    %33 = tpu.matmul %32, %3, %cst_32 {dimension_numbers = #tpu.dot_dimension_numbers<[1], [0], [0], [1], [0, 0, 1, 1], [], []>} : vector<120x128xf32>, vector<128x128xf32>, vector<120x128xf32> -> vector<120x128xf32>
    %34 = arith.subf %32, %33 : vector<120x128xf32>
    %35 = arith.mulf %34, %34 : vector<120x128xf32>
    %cst_33 = arith.constant dense<0.000000e+00> : vector<120x128xf32>
    %36 = tpu.matmul %35, %3, %cst_33 {dimension_numbers = #tpu.dot_dimension_numbers<[1], [0], [0], [1], [0, 0, 1, 1], [], []>} : vector<120x128xf32>, vector<128x128xf32>, vector<120x128xf32> -> vector<120x128xf32>
    %cst_34 = arith.constant 9.99999974E-6 : f32
    %37 = vector.broadcast %cst_34 : f32 to vector<120x128xf32>
    %38 = arith.addf %36, %37 : vector<120x128xf32>
    %39 = math.rsqrt %38 : vector<120x128xf32>
    %40 = arith.mulf %34, %39 : vector<120x128xf32>
    %41 = arith.mulf %40, %15 : vector<120x128xf32>
    %42 = arith.addf %41, %18 : vector<120x128xf32>
    %43 = arith.truncf %42 : vector<120x128xf32> to vector<120x128xbf16>
    %cst_35 = arith.constant dense<0.000000e+00> : vector<120x128xf32>
    %44 = tpu.matmul %4, %43, %cst_35 {dimension_numbers = #tpu.dot_dimension_numbers<[1], [0], [0], [1], [0, 0, 1, 1], [], []>} : vector<120x120xbf16>, vector<120x128xbf16>, vector<120x128xf32> -> vector<120x128xf32>
    %45 = arith.addf %44, %21 : vector<120x128xf32>
    %cst_36 = arith.constant 5.000000e-01 : f32
    %46 = vector.broadcast %cst_36 : f32 to vector<120x128xf32>
    %47 = arith.mulf %46, %45 : vector<120x128xf32>
    %cst_37 = arith.constant 0.707106769 : f32
    %48 = vector.broadcast %cst_37 : f32 to vector<120x128xf32>
    %49 = arith.mulf %45, %48 : vector<120x128xf32>
    %50 = math.erf %49 : vector<120x128xf32>
    %cst_38 = arith.constant 1.000000e+00 : f32
    %51 = vector.broadcast %cst_38 : f32 to vector<120x128xf32>
    %52 = arith.addf %51, %50 : vector<120x128xf32>
    %53 = arith.mulf %47, %52 : vector<120x128xf32>
    %54 = arith.truncf %53 : vector<120x128xf32> to vector<120x128xbf16>
    %cst_39 = arith.constant dense<0.000000e+00> : vector<120x128xf32>
    %55 = tpu.matmul %5, %54, %cst_39 {dimension_numbers = #tpu.dot_dimension_numbers<[1], [0], [0], [1], [0, 0, 1, 1], [], []>} : vector<120x120xbf16>, vector<120x128xbf16>, vector<120x128xf32> -> vector<120x128xf32>
    %56 = arith.addf %55, %24 : vector<120x128xf32>
    %cst_40 = arith.constant dense<0.000000e+00> : vector<120x128xf32>
    %57 = tpu.matmul %56, %3, %cst_40 {dimension_numbers = #tpu.dot_dimension_numbers<[1], [0], [0], [1], [0, 0, 1, 1], [], []>} : vector<120x128xf32>, vector<128x128xf32>, vector<120x128xf32> -> vector<120x128xf32>
    %58 = arith.subf %56, %57 : vector<120x128xf32>
    %59 = arith.mulf %58, %58 : vector<120x128xf32>
    %cst_41 = arith.constant dense<0.000000e+00> : vector<120x128xf32>
    %60 = tpu.matmul %59, %3, %cst_41 {dimension_numbers = #tpu.dot_dimension_numbers<[1], [0], [0], [1], [0, 0, 1, 1], [], []>} : vector<120x128xf32>, vector<128x128xf32>, vector<120x128xf32> -> vector<120x128xf32>
    %cst_42 = arith.constant 9.99999974E-6 : f32
    %61 = vector.broadcast %cst_42 : f32 to vector<120x128xf32>
    %62 = arith.addf %60, %61 : vector<120x128xf32>
    %63 = math.rsqrt %62 : vector<120x128xf32>
    %64 = arith.mulf %58, %63 : vector<120x128xf32>
    %65 = arith.mulf %64, %15 : vector<120x128xf32>
    %66 = arith.addf %65, %18 : vector<120x128xf32>
    %67 = arith.truncf %66 : vector<120x128xf32> to vector<120x128xbf16>
    %cst_43 = arith.constant dense<0.000000e+00> : vector<120x128xf32>
    %68 = tpu.matmul %67, %6, %cst_43 {dimension_numbers = #tpu.dot_dimension_numbers<[1], [0], [0], [1], [0, 0, 1, 1], [], []>} : vector<120x128xbf16>, vector<128x128xbf16>, vector<120x128xf32> -> vector<120x128xf32>
    %69 = arith.addf %68, %27 : vector<120x128xf32>
    %cst_44 = arith.constant 5.000000e-01 : f32
    %70 = vector.broadcast %cst_44 : f32 to vector<120x128xf32>
    %71 = arith.mulf %70, %69 : vector<120x128xf32>
    %cst_45 = arith.constant 0.707106769 : f32
    %72 = vector.broadcast %cst_45 : f32 to vector<120x128xf32>
    %73 = arith.mulf %69, %72 : vector<120x128xf32>
    %74 = math.erf %73 : vector<120x128xf32>
    %cst_46 = arith.constant 1.000000e+00 : f32
    %75 = vector.broadcast %cst_46 : f32 to vector<120x128xf32>
    %76 = arith.addf %75, %74 : vector<120x128xf32>
    %77 = arith.mulf %71, %76 : vector<120x128xf32>
    %78 = arith.truncf %77 : vector<120x128xf32> to vector<120x128xbf16>
    %cst_47 = arith.constant dense<0.000000e+00> : vector<120x128xf32>
    %79 = tpu.matmul %78, %7, %cst_47 {dimension_numbers = #tpu.dot_dimension_numbers<[1], [0], [0], [1], [0, 0, 1, 1], [], []>} : vector<120x128xbf16>, vector<128x128xbf16>, vector<120x128xf32> -> vector<120x128xf32>
    %80 = arith.addf %79, %30 : vector<120x128xf32>
    %cst_48 = arith.constant dense<0.000000e+00> : vector<120x128xf32>
    %81 = tpu.matmul %80, %3, %cst_48 {dimension_numbers = #tpu.dot_dimension_numbers<[1], [0], [0], [1], [0, 0, 1, 1], [], []>} : vector<120x128xf32>, vector<128x128xf32>, vector<120x128xf32> -> vector<120x128xf32>
    %82 = arith.subf %80, %81 : vector<120x128xf32>
    %83 = arith.mulf %82, %82 : vector<120x128xf32>
    %cst_49 = arith.constant dense<0.000000e+00> : vector<120x128xf32>
    %84 = tpu.matmul %83, %3, %cst_49 {dimension_numbers = #tpu.dot_dimension_numbers<[1], [0], [0], [1], [0, 0, 1, 1], [], []>} : vector<120x128xf32>, vector<128x128xf32>, vector<120x128xf32> -> vector<120x128xf32>
    %cst_50 = arith.constant 9.99999974E-6 : f32
    %85 = vector.broadcast %cst_50 : f32 to vector<120x128xf32>
    %86 = arith.addf %84, %85 : vector<120x128xf32>
    %87 = math.rsqrt %86 : vector<120x128xf32>
    %88 = arith.mulf %82, %87 : vector<120x128xf32>
    %89 = arith.mulf %88, %15 : vector<120x128xf32>
    %90 = arith.addf %89, %18 : vector<120x128xf32>
    %91 = arith.truncf %90 : vector<120x128xf32> to vector<120x128xbf16>
    %cst_51 = arith.constant dense<0.000000e+00> : vector<120x128xf32>
    %92 = tpu.matmul %4, %91, %cst_51 {dimension_numbers = #tpu.dot_dimension_numbers<[1], [0], [0], [1], [0, 0, 1, 1], [], []>} : vector<120x120xbf16>, vector<120x128xbf16>, vector<120x128xf32> -> vector<120x128xf32>
    %93 = arith.addf %92, %21 : vector<120x128xf32>
    %cst_52 = arith.constant 5.000000e-01 : f32
    %94 = vector.broadcast %cst_52 : f32 to vector<120x128xf32>
    %95 = arith.mulf %94, %93 : vector<120x128xf32>
    %cst_53 = arith.constant 0.707106769 : f32
    %96 = vector.broadcast %cst_53 : f32 to vector<120x128xf32>
    %97 = arith.mulf %93, %96 : vector<120x128xf32>
    %98 = math.erf %97 : vector<120x128xf32>
    %cst_54 = arith.constant 1.000000e+00 : f32
    %99 = vector.broadcast %cst_54 : f32 to vector<120x128xf32>
    %100 = arith.addf %99, %98 : vector<120x128xf32>
    %101 = arith.mulf %95, %100 : vector<120x128xf32>
    %102 = arith.truncf %101 : vector<120x128xf32> to vector<120x128xbf16>
    %cst_55 = arith.constant dense<0.000000e+00> : vector<120x128xf32>
    %103 = tpu.matmul %5, %102, %cst_55 {dimension_numbers = #tpu.dot_dimension_numbers<[1], [0], [0], [1], [0, 0, 1, 1], [], []>} : vector<120x120xbf16>, vector<120x128xbf16>, vector<120x128xf32> -> vector<120x128xf32>
    %104 = arith.addf %103, %24 : vector<120x128xf32>
    %cst_56 = arith.constant dense<0.000000e+00> : vector<120x128xf32>
    %105 = tpu.matmul %104, %3, %cst_56 {dimension_numbers = #tpu.dot_dimension_numbers<[1], [0], [0], [1], [0, 0, 1, 1], [], []>} : vector<120x128xf32>, vector<128x128xf32>, vector<120x128xf32> -> vector<120x128xf32>
    %106 = arith.subf %104, %105 : vector<120x128xf32>
    %107 = arith.mulf %106, %106 : vector<120x128xf32>
    %cst_57 = arith.constant dense<0.000000e+00> : vector<120x128xf32>
    %108 = tpu.matmul %107, %3, %cst_57 {dimension_numbers = #tpu.dot_dimension_numbers<[1], [0], [0], [1], [0, 0, 1, 1], [], []>} : vector<120x128xf32>, vector<128x128xf32>, vector<120x128xf32> -> vector<120x128xf32>
    %cst_58 = arith.constant 9.99999974E-6 : f32
    %109 = vector.broadcast %cst_58 : f32 to vector<120x128xf32>
    %110 = arith.addf %108, %109 : vector<120x128xf32>
    %111 = math.rsqrt %110 : vector<120x128xf32>
    %112 = arith.mulf %106, %111 : vector<120x128xf32>
    %113 = arith.mulf %112, %15 : vector<120x128xf32>
    %114 = arith.addf %113, %18 : vector<120x128xf32>
    %115 = arith.truncf %114 : vector<120x128xf32> to vector<120x128xbf16>
    %cst_59 = arith.constant dense<0.000000e+00> : vector<120x128xf32>
    %116 = tpu.matmul %115, %6, %cst_59 {dimension_numbers = #tpu.dot_dimension_numbers<[1], [0], [0], [1], [0, 0, 1, 1], [], []>} : vector<120x128xbf16>, vector<128x128xbf16>, vector<120x128xf32> -> vector<120x128xf32>
    %117 = arith.addf %116, %27 : vector<120x128xf32>
    %cst_60 = arith.constant 5.000000e-01 : f32
    %118 = vector.broadcast %cst_60 : f32 to vector<120x128xf32>
    %119 = arith.mulf %118, %117 : vector<120x128xf32>
    %cst_61 = arith.constant 0.707106769 : f32
    %120 = vector.broadcast %cst_61 : f32 to vector<120x128xf32>
    %121 = arith.mulf %117, %120 : vector<120x128xf32>
    %122 = math.erf %121 : vector<120x128xf32>
    %cst_62 = arith.constant 1.000000e+00 : f32
    %123 = vector.broadcast %cst_62 : f32 to vector<120x128xf32>
    %124 = arith.addf %123, %122 : vector<120x128xf32>
    %125 = arith.mulf %119, %124 : vector<120x128xf32>
    %126 = arith.truncf %125 : vector<120x128xf32> to vector<120x128xbf16>
    %cst_63 = arith.constant dense<0.000000e+00> : vector<120x128xf32>
    %127 = tpu.matmul %126, %7, %cst_63 {dimension_numbers = #tpu.dot_dimension_numbers<[1], [0], [0], [1], [0, 0, 1, 1], [], []>} : vector<120x128xbf16>, vector<128x128xbf16>, vector<120x128xf32> -> vector<120x128xf32>
    %128 = arith.addf %127, %30 : vector<120x128xf32>
    %cst_64 = arith.constant dense<0.000000e+00> : vector<3x128xf32>
    %129 = tpu.matmul %8, %128, %cst_64 {dimension_numbers = #tpu.dot_dimension_numbers<[1], [0], [0], [1], [0, 0, 1, 1], [], []>} : vector<3x120xf32>, vector<120x128xf32>, vector<3x128xf32> -> vector<3x128xf32>
    %cst_65 = arith.constant dense<0.000000e+00> : vector<3x128xf32>
    %130 = tpu.matmul %129, %9, %cst_65 {dimension_numbers = #tpu.dot_dimension_numbers<[1], [0], [0], [1], [0, 0, 1, 1], [], []>} : vector<3x128xf32>, vector<128x128xf32>, vector<3x128xf32> -> vector<3x128xf32>
    %c0_66 = arith.constant 0 : index
    %c0_67 = arith.constant 0 : index
    %131 = vector.load %arg17[%c0_66, %c0_67] : memref<1x128xf32, #tpu.memory_space<vmem>>, vector<1x128xf32>
    %132 = vector.broadcast %131 : vector<1x128xf32> to vector<3x128xf32>
    %133 = arith.addf %130, %132 : vector<3x128xf32>
    %c0_68 = arith.constant 0 : index
    %c0_69 = arith.constant 0 : index
    %c0_70 = arith.constant 0 : index
    %134 = vector.load %arg18[%c0_68, %c0_69, %c0_70] : memref<1x3x128xf32, #tpu.memory_space<vmem>>, vector<1x3x128xf32>
    %135 = vector.shape_cast %134 : vector<1x3x128xf32> to vector<3x128xf32>
    %136 = vector.shape_cast %133 : vector<3x128xf32> to vector<1x3x128xf32>
    tpu.vector_store %arg18[%c0_68, %c0_69, %c0_70], %136 {strides = array<i32>} : memref<1x3x128xf32, #tpu.memory_space<vmem>>, vector<1x3x128xf32>,
    return
  }
  func.func @transform_0(%arg0: i32) -> (i32, i32, i32) {
    %c0_i32 = arith.constant 0 : i32
    %c0_i32_0 = arith.constant 0 : i32
    %c0_i32_1 = arith.constant 0 : i32
    return %arg0, %c0_i32, %c0_i32_0 : i32, i32, i32
  }
  func.func @transform_1(%arg0: i32) -> (i32, i32) {
    %c0_i32 = arith.constant 0 : i32
    %c0_i32_0 = arith.constant 0 : i32
    %c0_i32_1 = arith.constant 0 : i32
    return %c0_i32, %c0_i32_0 : i32, i32
  }
  func.func @transform_2(%arg0: i32) -> (i32, i32) {
    %c0_i32 = arith.constant 0 : i32
    %c0_i32_0 = arith.constant 0 : i32
    %c0_i32_1 = arith.constant 0 : i32
    return %c0_i32, %c0_i32_0 : i32, i32
  }
  func.func @transform_3(%arg0: i32) -> (i32, i32) {
    %c0_i32 = arith.constant 0 : i32
    %c0_i32_0 = arith.constant 0 : i32
    %c0_i32_1 = arith.constant 0 : i32
    return %c0_i32, %c0_i32_0 : i32, i32
  }
  func.func @transform_4(%arg0: i32) -> (i32, i32) {
    %c0_i32 = arith.constant 0 : i32
    %c0_i32_0 = arith.constant 0 : i32
    %c0_i32_1 = arith.constant 0 : i32
    return %c0_i32, %c0_i32_0 : i32, i32
  }
  func.func @transform_5(%arg0: i32) -> (i32, i32) {
    %c0_i32 = arith.constant 0 : i32
    %c0_i32_0 = arith.constant 0 : i32
    %c0_i32_1 = arith.constant 0 : i32
    return %c0_i32, %c0_i32_0 : i32, i32
  }
  func.func @transform_6(%arg0: i32) -> (i32, i32) {
    %c0_i32 = arith.constant 0 : i32
    %c0_i32_0 = arith.constant 0 : i32
    %c0_i32_1 = arith.constant 0 : i32
    return %c0_i32, %c0_i32_0 : i32, i32
  }
  func.func @transform_7(%arg0: i32) -> (i32, i32) {
    %c0_i32 = arith.constant 0 : i32
    %c0_i32_0 = arith.constant 0 : i32
    %c0_i32_1 = arith.constant 0 : i32
    return %c0_i32, %c0_i32_0 : i32, i32
  }
  func.func @transform_8(%arg0: i32) -> (i32, i32) {
    %c0_i32 = arith.constant 0 : i32
    %c0_i32_0 = arith.constant 0 : i32
    %c0_i32_1 = arith.constant 0 : i32
    return %c0_i32, %c0_i32_0 : i32, i32
  }
  func.func @transform_9(%arg0: i32) -> (i32, i32) {
    %c0_i32 = arith.constant 0 : i32
    %c0_i32_0 = arith.constant 0 : i32
    %c0_i32_1 = arith.constant 0 : i32
    return %c0_i32, %c0_i32_0 : i32, i32
  }
  func.func @transform_10(%arg0: i32) -> (i32, i32) {
    %c0_i32 = arith.constant 0 : i32
    %c0_i32_0 = arith.constant 0 : i32
    %c0_i32_1 = arith.constant 0 : i32
    return %c0_i32, %c0_i32_0 : i32, i32
  }
  func.func @transform_11(%arg0: i32) -> (i32, i32) {
    %c0_i32 = arith.constant 0 : i32
    %c0_i32_0 = arith.constant 0 : i32
    %c0_i32_1 = arith.constant 0 : i32
    return %c0_i32, %c0_i32_0 : i32, i32
  }
  func.func @transform_12(%arg0: i32) -> (i32, i32) {
    %c0_i32 = arith.constant 0 : i32
    %c0_i32_0 = arith.constant 0 : i32
    %c0_i32_1 = arith.constant 0 : i32
    return %c0_i32, %c0_i32_0 : i32, i32
  }
  func.func @transform_13(%arg0: i32) -> (i32, i32) {
    %c0_i32 = arith.constant 0 : i32
    %c0_i32_0 = arith.constant 0 : i32
    %c0_i32_1 = arith.constant 0 : i32
    return %c0_i32, %c0_i32_0 : i32, i32
  }
  func.func @transform_14(%arg0: i32) -> (i32, i32) {
    %c0_i32 = arith.constant 0 : i32
    %c0_i32_0 = arith.constant 0 : i32
    %c0_i32_1 = arith.constant 0 : i32
    return %c0_i32, %c0_i32_0 : i32, i32
  }
  func.func @transform_15(%arg0: i32) -> (i32, i32) {
    %c0_i32 = arith.constant 0 : i32
    %c0_i32_0 = arith.constant 0 : i32
    %c0_i32_1 = arith.constant 0 : i32
    return %c0_i32, %c0_i32_0 : i32, i32
  }
  func.func @transform_16(%arg0: i32) -> (i32, i32) {
    %c0_i32 = arith.constant 0 : i32
    %c0_i32_0 = arith.constant 0 : i32
    %c0_i32_1 = arith.constant 0 : i32
    return %c0_i32, %c0_i32_0 : i32, i32
  }
  func.func @transform_17(%arg0: i32) -> (i32, i32, i32) {
    %c0_i32 = arith.constant 0 : i32
    %c0_i32_0 = arith.constant 0 : i32
    %c0_i32_1 = arith.constant 0 : i32
    return %arg0, %c0_i32, %c0_i32_0 : i32, i32, i32
  }
}

</mosaic_0001>

<bundles_post_ra>
// kernel: tpu_custom_call.1
= control target key start
LH: loop header
LB: loop body
LE: loop exit
PB: predicated region body
PF: predicated region fallthrough
CT: control target
= control target key end

     0   :  { %s6800_s24 = smov 0   ;;  %s8690_s0 = inlined_call_operand.vmem [shape: bf16[8,120,400], index: 0, kind: input, shape index: {}]   ;;  %s8691_s1 = inlined_call_operand.vmem [shape: bf16[400,128], index: 1, kind: input, shape index: {}]   ;;  %s8692_s2 = inlined_call_operand.vmem [shape: f32[1,128], index: 2, kind: input, shape index: {}]   ;;  %s8693_s3 = inlined_call_operand.vmem [shape: f32[1,128], index: 3, kind: input, shape index: {}]   ;;  %s8694_s4 = inlined_call_operand.vmem [shape: f32[1,128], index: 4, kind: input, shape index: {}]   ;;  %s8695_s5 = inlined_call_operand.vmem [shape: f32[128,128], index: 5, kind: input, shape index: {}]   ;;  %s8696_s6 = inlined_call_operand.vmem [shape: bf16[120,120], index: 6, kind: input, shape index: {}]   ;;  %s8697_s7 = inlined_call_operand.vmem [shape: f32[120,1], index: 7, kind: input, shape index: {}]   ;;  %s8698_s8 = inlined_call_operand.vmem [shape: bf16[120,120], index: 8, kind: input, shape index: {}]   ;;  %s8699_s9 = inlined_call_operand.vmem [shape: f32[120,1], index: 9, kind: input, shape index: {}]   ;;  %s8700_s10 = inlined_call_operand.vmem [shape: bf16[128,128], index: 10, kind: input, shape index: {}]   ;;  %s8701_s11 = inlined_call_operand.vmem [shape: f32[1,128], index: 11, kind: input, shape index: {}]   ;;  %s8702_s12 = inlined_call_operand.vmem [shape: bf16[128,128], index: 12, kind: input, shape index: {}]   ;;  %s8703_s13 = inlined_call_operand.vmem [shape: f32[1,128], index: 13, kind: input, shape index: {}]   ;;  %s8704_s14 = inlined_call_operand.vmem [shape: f32[3,120], index: 14, kind: input, shape index: {}]   ;;  %s8705_s15 = inlined_call_operand.vmem [shape: f32[128,128], index: 15, kind: input, shape index: {}]   ;;  %s8706_s16 = inlined_call_operand.vmem [shape: f32[1,128], index: 16, kind: input, shape index: {}]   ;;  %s8707_s17 = inlined_call_operand.vmem [shape: f32[8,3,128], index: 17, kind: output, shape index: {}]  }
   0x1   :  { %8722 = sst [smem:[#allocation11_spill]] %s8690_s0 }
   0x2   :  { %8723 = sst [smem:[#allocation12_spill]] %s8691_s1 }
   0x3 LB: > { %s4501_s25 = sadd.s32 4294967295, %s6704_s24   ;;  %p4505_p0 = scmp.ge.s32.totalorder %s6704_s24, 1  ;;  %s6704_s24 = sphi %s6800_s24, %s27_s24  }
   0x4   : > { %p487_p1 = scmp.lt.s32.totalorder %s6704_s24, 9 }
   0x6   : > { %p488_p2 = pnand %p4505_p0, %p487_p1 }
   0x8   : > { %491 = sbr.rel (%p488_p2) target bundleno = 4564 (0x11d4), region = 88 }
   0xf   : > { %s8724_s28 = sld [smem:[#allocation12_spill]]  ;;  %v6706_v1 = vmov 0   ;;  %p538_p3 = scmp.lt.s32.totalorder %s4501_s25, 7  ;;  %vm1234_vm0 = vcmask 130048   ;;  %v8711_v30 = vmov 0.0|0.0   ;;  %v628_v37 = vld [vmem:[%s8695_s5] sm:$0xff] }
  0x10   : > { %1355 = vmatprep.subr.bf16.mxu1 %v6706_v1  ;;  %6313 = vset.pattern.permute.xlu0 %v6706_v1  ;;  %s8725_s1 = sld [smem:[#allocation11_spill]]  ;;  %v629_v38 = vld [vmem:[%s8695_s5 + $0x8] sm:$0xff]  ;;  %v630_v40 = vld [vmem:[%s8695_s5 + $0x10] sm:$0xff]  ;;  %v631_v41 = vld [vmem:[%s8695_s5 + $0x18] sm:$0xff]  ;;  %vm6708_vm1 = vmmov 0   ;;  %vm1867_vm2 = vcmask 982016  }
  0x11   : > { %6314 = vset.pattern.permute.xlu1 %v6706_v1  ;;  %s8747_s25 = smov (!%p538_p3, %s4501_s25), 7  ;;  %v6926_v39 = vpack.c.bf16 %v629_v38, %v628_v37  ;;  %v632_v44 = vld [vmem:[%s8695_s5 + $0x20] sm:$0xff]  ;;  %v6943_v46 = vpack.c.bf16 %v631_v41, %v630_v40  ;;  %v633_v47 = vld [vmem:[%s8695_s5 + $0x28] sm:$0xff]  ;;  %v634_v49 = vld [vmem:[%s8695_s5 + $0x30] sm:$0xff]  ;;  %vm1892_vm3 = vcmask 1043456  }
  0x12   : > { %s6300_s20 = smul.u32 240, %s8747_s25  ;;  %v635_v50 = vld [vmem:[%s8695_s5 + $0x38] sm:$0xff]  ;;  %v6958_v51 = vpack.c.bf16 %v633_v47, %v632_v44  ;;  %v636_v54 = vld [vmem:[%s8695_s5 + $0x40] sm:$0xff]  ;;  %v637_v55 = vld [vmem:[%s8695_s5 + $0x48] sm:$0xff] }
  0x13   : > { %v6974_v57 = vpack.c.bf16 %v635_v50, %v634_v49  ;;  %v638_v59 = vld [vmem:[%s8695_s5 + $0x50] sm:$0xff]  ;;  %v639_v60 = vld [vmem:[%s8695_s5 + $0x58] sm:$0xff]  ;;  %v6987_v61 = vpack.c.bf16 %v637_v55, %v636_v54 }
  0x15   : > { %v6315_v0 = vld [vmem:[%s8724_s28 + $0x40] sm:$0xff]   ;;  %v6318_v4 = vld [vmem:[%s8724_s28 + $0x48] sm:$0xff]   ;;  %v6321_v7 = vld [vmem:[%s8724_s28 + $0x50] sm:$0xff]  }
  0x16   : > { %v6316_v2 = vld [vmem:[%s8724_s28 + $0x80] sm:$0xff]   ;;  %4646 = vmatprep.subr.bf16.mxu0 %v6315_v0  ;;  %v6319_v5 = vld [vmem:[%s8724_s28 + $0x88] sm:$0xff]   ;;  %v6322_v8 = vld [vmem:[%s8724_s28 + $0x90] sm:$0xff]   ;;  %s6886_s21 = scalar_lea.vmem %s8725_s1, %s6300_s20 }
  0x17   : > { %v6317_v3 = vld [vmem:[%s8724_s28] sm:$0xff]   ;;  %1356 = vmatpush1.bf16.msra.mxu1 %v6316_v2  ;;  %v6320_v6 = vld [vmem:[%s8724_s28 + $0x8] sm:$0xff]   ;;  %v6323_v9 = vld [vmem:[%s8724_s28 + $0x10] sm:$0xff]  }
  0x18   : > { %4647 = vmatpush3.bf16.msra.mxu0 %v6317_v3  ;;  %1357 = vmatprep.subr.bf16.mxu1 %v6706_v1  ;;  %v6324_v10 = vld [vmem:[%s8724_s28 + $0x58] sm:$0xff]   ;;  %v6327_v13 = vld [vmem:[%s8724_s28 + $0x60] sm:$0xff]   ;;  %v6330_v16 = vld [vmem:[%s8724_s28 + $0x68] sm:$0xff]  }
  0x19   : > { %4648 = vmatprep.subr.bf16.mxu0 %v6318_v4  ;;  %v6325_v11 = vld [vmem:[%s8724_s28 + $0x98] sm:$0xff]   ;;  %v6328_v14 = vld [vmem:[%s8724_s28 + $0xa0] sm:$0xff]   ;;  %v6331_v17 = vld [vmem:[%s8724_s28 + $0xa8] sm:$0xff]  }
  0x1a   : > { %v6326_v12 = vld [vmem:[%s8724_s28 + $0x18] sm:$0xff]   ;;  %v6329_v15 = vld [vmem:[%s8724_s28 + $0x20] sm:$0xff]   ;;  %v6332_v18 = vld [vmem:[%s8724_s28 + $0x28] sm:$0xff]  }
  0x1b   : > { %1358 = vmatpush1.bf16.msra.mxu1 %v6319_v5  ;;  %v6333_v19 = vld [vmem:[%s8724_s28 + $0x70] sm:$0xff]   ;;  %v6336_v22 = vld [vmem:[%s8724_s28 + $0x78] sm:$0xff]   ;;  %v6342_v28 = vld [vmem:[%s8724_s28 + $0xc0] sm:$0xff]  }
  0x1c   : > { %4649 = vmatpush3.bf16.msra.mxu0 %v6320_v6  ;;  %1359 = vmatprep.subr.bf16.mxu1 %v6706_v1  ;;  %v6334_v20 = vld [vmem:[%s8724_s28 + $0xb0] sm:$0xff]   ;;  %v6337_v24 = vld [vmem:[%s8724_s28 + $0xb8] sm:$0xff]  }
  0x1d   : > { %4650 = vmatprep.subr.bf16.mxu0 %v6321_v7  ;;  %v6335_v21 = vld [vmem:[%s8724_s28 + $0x30] sm:$0xff]   ;;  %v6345_v25 = vld [vmem:[%s6886_s21 + $0xc] ss:$16 sps:$4 sm:$0xff]   ;;  %v6343_v31 = vld [vmem:[%s6886_s21 + $0x8] ss:$16 sps:$4 sm:$0xff]  }
  0x1e   : > { %v6341_v23 = vld [vmem:[%s6886_s21 + $0x4] ss:$16 sps:$4 sm:$0xff]   ;;  %v6338_v26 = vld [vmem:[%s8724_s28 + $0x38] sm:$0xff]   ;;  %4570 = vmatprep.mubr.msk.bf16.mxu1 %vm1234_vm0, %v6345_v25  ;;  %v6339_v27 = vld [vmem:[%s6886_s21] ss:$16 sps:$4 sm:$0xff]  }
  0x1f   : > { %1360 = vmatpush1.bf16.msra.mxu1 %v6322_v8  ;;  %1291 = vmatprep.mubr.bf16.mxu0 %v6341_v23  ;;  %v6346_v29 = vld [vmem:[%s6886_s21 + $0x24] ss:$16 sps:$4 sm:$0xff]   ;;  %v6349_v32 = vld [vmem:[%s6886_s21 + $0x2c] ss:$16 sps:$4 sm:$0xff]   ;;  %v6348_v33 = vld [vmem:[%s6886_s21 + $0x20] ss:$16 sps:$4 sm:$0xff]  }
  0x20   : > { %4651 = vmatpush3.bf16.msra.mxu0 %v6323_v9  ;;  %1361 = vmatprep.subr.bf16.mxu1 %v6706_v1  ;;  %v6352_v34 = vld [vmem:[%s6886_s21 + $0x44] ss:$16 sps:$4 sm:$0xff]   ;;  %v6351_v35 = vld [vmem:[%s6886_s21 + $0x28] ss:$16 sps:$4 sm:$0xff]   ;;  %v6355_v36 = vld [vmem:[%s6886_s21 + $0x4c] ss:$16 sps:$4 sm:$0xff]  }
  0x21   : > { %4652 = vmatprep.subr.bf16.mxu0 %v6324_v10  ;;  %v6354_v42 = vld [vmem:[%s6886_s21 + $0x40] ss:$16 sps:$4 sm:$0xff]   ;;  %v6358_v43 = vld [vmem:[%s6886_s21 + $0x64] ss:$16 sps:$4 sm:$0xff]   ;;  %v6357_v45 = vld [vmem:[%s6886_s21 + $0x48] ss:$16 sps:$4 sm:$0xff]  }
  0x22   : > { %v6361_v48 = vld [vmem:[%s6886_s21 + $0x6c] ss:$16 sps:$4 sm:$0xff]   ;;  %v6360_v52 = vld [vmem:[%s6886_s21 + $0x60] ss:$16 sps:$4 sm:$0xff]   ;;  %v6364_v53 = vld [vmem:[%s6886_s21 + $0x84] ss:$16 sps:$4 sm:$0xff]  }
  0x23   : > { %1362 = vmatpush1.bf16.msra.mxu1 %v6325_v11  ;;  %v6363_v56 = vld [vmem:[%s6886_s21 + $0x68] ss:$16 sps:$4 sm:$0xff]   ;;  %v6367_v58 = vld [vmem:[%s6886_s21 + $0x8c] ss:$16 sps:$4 sm:$0xff]   ;;  %v6366_v62 = vld [vmem:[%s6886_s21 + $0x80] ss:$16 sps:$4 sm:$0xff]  }
  0x24   : > { %4653 = vmatpush3.bf16.msra.mxu0 %v6326_v12  ;;  %1363 = vmatprep.subr.bf16.mxu1 %v6706_v1  ;;  %v6370_v63 = vld [vmem:[%s6886_s21 + $0xa4] ss:$16 sps:$4 sm:$0xff]   ;;  %v6369_v0 = vld [vmem:[%s6886_s21 + $0x88] ss:$16 sps:$4 sm:$0xff]   ;;  %v6373_v2 = vld [vmem:[%s6886_s21 + $0xac] ss:$16 sps:$4 sm:$0xff]  }
  0x25   : > { %4654 = vmatprep.subr.bf16.mxu0 %v6327_v13  ;;  %v6372_v3 = vld [vmem:[%s6886_s21 + $0xa0] ss:$16 sps:$4 sm:$0xff]   ;;  %v6376_v4 = vld [vmem:[%s6886_s21 + $0xc4] ss:$16 sps:$4 sm:$0xff]   ;;  %v6375_v5 = vld [vmem:[%s6886_s21 + $0xa8] ss:$16 sps:$4 sm:$0xff]  }
  0x26   : > { %v6379_v6 = vld [vmem:[%s6886_s21 + $0xcc] ss:$16 sps:$4 sm:$0xff]   ;;  %v576_v7 = vld [vmem:[%s6886_s21 + $0xe0] sm:$0xff]  ;;  %v6381_v11 = vld [vmem:[%s6886_s21 + $0xc8] ss:$16 sps:$4 sm:$0xff]  }
  0x27   : > { %1364 = vmatpush1.bf16.msra.mxu1 %v6328_v14  ;;  %v6378_v8 = vld [vmem:[%s6886_s21 + $0xc0] ss:$16 sps:$4 sm:$0xff]   ;;  %v4542_v9 = vcombine.high %v576_v7, %v576_v7  ;;  %v577_v10 = vld [vmem:[%s6886_s21 + $0xe8] sm:$0xff]  ;;  %v4541_v13 = vcombine.low %v576_v7, %v576_v7  ;;  %s4507_s21 = sshll.u32 %s8747_s25, 2 }
  0x28   : > { %4655 = vmatpush3.bf16.msra.mxu0 %v6329_v15  ;;  %1365 = vmatprep.subr.bf16.mxu1 %v6706_v1  ;;  %v4544_v12 = vcombine.high %v577_v10, %v577_v10  ;;  %v4543_v14 = vcombine.low %v577_v10, %v577_v10  ;;  %v640_v15 = vld [vmem:[%s8695_s5 + $0x60] sm:$0xff]  ;;  %s546_s19 = scalar_lea.vmem %s8707_s17, %s4507_s21 }
  0x29   : > { %4656 = vmatprep.subr.bf16.mxu0 %v6330_v16  ;;  %v641_v16 = vld [vmem:[%s8695_s5 + $0x68] sm:$0xff] }
  0x2b   : > { %1366 = vmatpush1.bf16.msra.mxu1 %v6331_v17  ;;  %v7024_v17 = vpack.c.bf16 %v641_v16, %v640_v15 }
  0x2c   : > { %4657 = vmatpush3.bf16.msra.mxu0 %v6332_v18  ;;  %1367 = vmatprep.subr.bf16.mxu1 %v6706_v1  ;;  %v642_v18 = vld [vmem:[%s8695_s5 + $0x70] sm:$0xff] }
  0x2d   : > { %4658 = vmatprep.subr.bf16.mxu0 %v6333_v19  ;;  %v643_v19 = vld [vmem:[%s8695_s5 + $0x78] sm:$0xff] }
  0x2f   : > { %1368 = vmatpush1.bf16.msra.mxu1 %v6334_v20  ;;  %v7036_v20 = vpack.c.bf16 %v643_v19, %v642_v18 }
  0x30   : > { %4659 = vmatpush3.bf16.msra.mxu0 %v6335_v21  ;;  %1369 = vmatprep.subr.bf16.mxu1 %v6706_v1  ;;  %v8709_v21 = vmov 0.0  }
  0x31   : > { %4660 = vmatprep.subr.bf16.mxu0 %v6336_v22 }
  0x33   : > { %1370 = vmatpush1.bf16.msra.mxu1 %v6337_v24  ;;  %v7047_v24 = vld [vmem:[%s8692_s2] ss:$0 sm:$0xff] }
  0x34   : > { %4661 = vmatpush3.bf16.msra.mxu0 %v6338_v26  ;;  %1371 = vmatprep.subr.bf16.mxu1 %v6706_v1  ;;  %v6997_v1 = vpack.c.bf16 %v639_v60, %v638_v59 }
  0x35   : > { %6059 = vmatprep.subr.bf16.mxu0 %v8711_v30 }
  0x37   : > { %1292 = vmatmul.mubr.bf16.vlgmr.msra.gmra.mrb[0].mxu0 %v6339_v27  ;;  %1372 = vmatpush1.bf16.msra.mxu1 %v6342_v28 }
  0x38   : > { %1299 = vmatprep.mubr.bf16.mxu0 %v6346_v29  ;;  %6083 = vmatprep.subr.bf16.mxu1 %v8711_v30 }
  0x39   : > { %6061 = vmatpush3.bf16.msra.mxu0 %v6926_v39 }
  0x3a   : > { %1388 = vmatmul.mubr.bf16.vlgmr.msra.gmra.mrb[0].mxu1 %v6343_v31  ;;  %6062 = vmatprep.subr.bf16.mxu0 %v8711_v30 }
  0x3b   : > { %4571 = vmatprep.mubr.msk.bf16.mxu1 %vm1234_vm0, %v6349_v32  ;;  %6085 = vmatpush3.bf16.msra.mxu1 %v6926_v39 }
  0x3c   : > { %6086 = vmatprep.subr.bf16.mxu1 %v8711_v30 }
  0x3d   : > { %6064 = vmatpush3.bf16.msra.mxu0 %v6943_v46 }
  0x3e   : > { %6065 = vmatprep.subr.bf16.mxu0 %v8711_v30 }
  0x3f   : > { %1300 = vmatmul.mubr.bf16.gmra.mrb[4].mxu0 %v6348_v33  ;;  %6088 = vmatpush3.bf16.msra.mxu1 %v6943_v46 }
  0x40   : > { %1307 = vmatprep.mubr.bf16.mxu0 %v6352_v34  ;;  %6089 = vmatprep.subr.bf16.mxu1 %v8711_v30 }
  0x41   : > { %6067 = vmatpush3.bf16.msra.mxu0 %v6958_v51 }
  0x42   : > { %1396 = vmatmul.mubr.bf16.gmra.mrb[4].mxu1 %v6351_v35  ;;  %6068 = vmatprep.subr.bf16.mxu0 %v8711_v30 }
  0x43   : > { %4572 = vmatprep.mubr.msk.bf16.mxu1 %vm1234_vm0, %v6355_v36  ;;  %6091 = vmatpush3.bf16.msra.mxu1 %v6958_v51 }
  0x44   : > { %6092 = vmatprep.subr.bf16.mxu1 %v8711_v30 }
  0x45   : > { %6070 = vmatpush3.bf16.msra.mxu0 %v6974_v57 }
  0x46   : > { %6071 = vmatprep.subr.bf16.mxu0 %v8711_v30 }
  0x47   : > { %1308 = vmatmul.mubr.bf16.gmra.mrb[8].mxu0 %v6354_v42  ;;  %6094 = vmatpush3.bf16.msra.mxu1 %v6974_v57 }
  0x48   : > { %1315 = vmatprep.mubr.bf16.mxu0 %v6358_v43  ;;  %6095 = vmatprep.subr.bf16.mxu1 %v8711_v30 }
  0x49   : > { %6073 = vmatpush3.bf16.msra.mxu0 %v6987_v61 }
  0x4a   : > { %1404 = vmatmul.mubr.bf16.gmra.mrb[8].mxu1 %v6357_v45  ;;  %6074 = vmatprep.subr.bf16.mxu0 %v8711_v30 }
  0x4b   : > { %4573 = vmatprep.mubr.msk.bf16.mxu1 %vm1234_vm0, %v6361_v48  ;;  %6097 = vmatpush3.bf16.msra.mxu1 %v6987_v61 }
  0x4c   : > { %6098 = vmatprep.subr.bf16.mxu1 %v8711_v30 }
  0x4d   : > { %6076 = vmatpush3.bf16.msra.mxu0 %v6997_v1 }
  0x4e   : > { %6077 = vmatprep.subr.bf16.mxu0 %v8711_v30 }
  0x4f   : > { %1316 = vmatmul.mubr.bf16.gmra.mrb[12].mxu0 %v6360_v52  ;;  %6100 = vmatpush3.bf16.msra.mxu1 %v6997_v1 }
  0x50   : > { %1323 = vmatprep.mubr.bf16.mxu0 %v6364_v53  ;;  %6101 = vmatprep.subr.bf16.mxu1 %v8711_v30 }
  0x51   : > { %6079 = vmatpush3.bf16.msra.mxu0 %v7024_v17 }
  0x52   : > { %1412 = vmatmul.mubr.bf16.gmra.mrb[12].mxu1 %v6363_v56  ;;  %6080 = vmatprep.subr.bf16.mxu0 %v8711_v30 }
  0x53   : > { %4574 = vmatprep.mubr.msk.bf16.mxu1 %vm1234_vm0, %v6367_v58  ;;  %6103 = vmatpush3.bf16.msra.mxu1 %v7024_v17 }
  0x54   : > { %6104 = vmatprep.subr.bf16.mxu1 %v8711_v30 }
  0x55   : > { %6082 = vmatpush3.bf16.msra.mxu0 %v7036_v20 }
  0x57   : > { %1324 = vmatmul.mubr.bf16.gmra.mrb[16].mxu0 %v6366_v62  ;;  %6106 = vmatpush3.bf16.msra.mxu1 %v7036_v20 }
  0x58   : > { %1331 = vmatprep.mubr.bf16.mxu0 %v6370_v63 }
  0x5a   : > { %1420 = vmatmul.mubr.bf16.gmra.mrb[16].mxu1 %v6369_v0 }
  0x5b   : > { %4575 = vmatprep.mubr.msk.bf16.mxu1 %vm1234_vm0, %v6373_v2 }
  0x5f   : > { %1332 = vmatmul.mubr.bf16.gmra.mrb[20].mxu0 %v6372_v3 }
  0x60   : > { %1339 = vmatprep.mubr.bf16.mxu0 %v6376_v4 }
  0x62   : > { %1428 = vmatmul.mubr.bf16.gmra.mrb[20].mxu1 %v6375_v5 }
  0x63   : > { %4576 = vmatprep.mubr.msk.bf16.mxu1 %vm1234_vm0, %v6379_v6 }
  0x67   : > { %1340 = vmatmul.mubr.bf16.gmra.mrb[24].mxu0 %v6378_v8 }
  0x68   : > { %1347 = vmatprep.mubr.bf16.mxu0 %v4542_v9 }
  0x6a   : > { %1436 = vmatmul.mubr.bf16.gmra.mrb[24].mxu1 %v6381_v11 }
  0x6b   : > { %4577 = vmatprep.mubr.msk.bf16.mxu1 %vm1234_vm0, %v4544_v12 }
  0x6f   : > { %1348 = vmatmul.mubr.bf16.gmra.mrb[28].mxu0 %v4541_v13 }
  0x70   : > { %5151 = vmatprep.mubr.msk.f32.mxu0 %vm6708_vm1, %v8709_v21 }
  0x72   : > { %1444 = vmatmul.mubr.bf16.gmra.mrb[28].mxu1 %v4543_v14 }
  0x73   : > { %5228 = vmatprep.mubr.msk.f32.mxu1 %vm6708_vm1, %v8709_v21 }
 0x10a   : > { %v4662_v22 = vpop.f32.mrb[0].mxu0 }
 0x10b   : > { %v4663_v23 = vpop.f32.mrb[1].mxu0 }
 0x10c   : > { %v4664_v25 = vadd.f32 %v4663_v23, %v4662_v22  ;;  %v4665_v26 = vpop.f32.mrb[2].mxu0 }
 0x10d   : > { %v4666_v27 = vpop.f32.mrb[3].mxu0  ;;  %v1389_v28 = vpop.f32.mrb[0].mxu1 }
 0x10e   : > { %v4667_v29 = vadd.f32 %v4666_v27, %v4665_v26  ;;  %v1294_v31 = vadd.f32 %v4664_v25, %v7047_v24  ;;  %v1391_v32 = vpop.f32.mrb[1].mxu1 }
 0x10f   : > { %v1392_v33 = vpop.f32.mrb[2].mxu1 }
 0x110   : > { %v7050_v34 = vadd.f32 %v1389_v28, %v1294_v31  ;;  %v1297_v35 = vadd.f32 %v4667_v29, %v7047_v24  ;;  %v1394_v36 = vpop.f32.mrb[3].mxu1 }
 0x112   : > { %v7053_v37 = vadd.f32 %v1392_v33, %v1297_v35  ;;  %v4668_v38 = vpop.f32.mrb[4].mxu0  ;;  %5152 = vmatmul.mubr.f32.vlgmr.msra.gmra.mrb[32].mxu0 %v7050_v34 }
 0x113   : > { %v4669_v40 = vpop.f32.mrb[5].mxu0  ;;  %5154 = vmatprep.mubr.msk.f32.mxu0 %vm6708_vm1, %v8709_v21 }
 0x114   : > { %v4670_v41 = vadd.f32 %v4669_v40, %v4668_v38  ;;  %v4671_v42 = vpop.f32.mrb[6].mxu0 }
 0x115   : > { %v4672_v43 = vpop.f32.mrb[7].mxu0  ;;  %v1397_v44 = vpop.f32.mrb[4].mxu1 }
 0x116   : > { %v4673_v45 = vadd.f32 %v4672_v43, %v4671_v42  ;;  %v1302_v47 = vadd.f32 %v4670_v41, %v7047_v24  ;;  %v1399_v48 = vpop.f32.mrb[5].mxu1  ;;  %5155 = vmatmul.mubr.f32.gmra.mrb[34].mxu0 %v7053_v37 }
 0x117   : > { %v1400_v49 = vpop.f32.mrb[6].mxu1  ;;  %5157 = vmatprep.mubr.msk.f32.mxu0 %vm6708_vm1, %v8709_v21 }
 0x118   : > { %v7062_v50 = vadd.f32 %v1397_v44, %v1302_v47  ;;  %v1305_v52 = vadd.f32 %v4673_v45, %v7047_v24  ;;  %v1402_v53 = vpop.f32.mrb[7].mxu1 }
 0x11a   : > { %v7065_v54 = vadd.f32 %v1400_v49, %v1305_v52  ;;  %v4674_v55 = vpop.f32.mrb[8].mxu0  ;;  %5158 = vmatmul.mubr.f32.gmra.mrb[36].mxu0 %v7062_v50 }
 0x11b   : > { %v4675_v56 = vpop.f32.mrb[9].mxu0  ;;  %5160 = vmatprep.mubr.msk.f32.mxu0 %vm6708_vm1, %v8709_v21 }
 0x11c   : > { %v4676_v58 = vadd.f32 %v4675_v56, %v4674_v55  ;;  %v4677_v59 = vpop.f32.mrb[10].mxu0 }
 0x11d   : > { %v4678_v60 = vpop.f32.mrb[11].mxu0  ;;  %v1405_v62 = vpop.f32.mrb[8].mxu1 }
 0x11e   : > { %v4679_v63 = vadd.f32 %v4678_v60, %v4677_v59  ;;  %v1310_v0 = vadd.f32 %v4676_v58, %v7047_v24  ;;  %v1407_v2 = vpop.f32.mrb[9].mxu1  ;;  %5161 = vmatmul.mubr.f32.gmra.mrb[38].mxu0 %v7065_v54 }
 0x11f   : > { %v1408_v3 = vpop.f32.mrb[10].mxu1  ;;  %5163 = vmatprep.mubr.msk.f32.mxu0 %vm6708_vm1, %v8709_v21 }
 0x120   : > { %v7074_v4 = vadd.f32 %v1405_v62, %v1310_v0  ;;  %v1313_v5 = vadd.f32 %v4679_v63, %v7047_v24  ;;  %v1410_v6 = vpop.f32.mrb[11].mxu1 }
 0x122   : > { %v7077_v7 = vadd.f32 %v1408_v3, %v1313_v5  ;;  %v4680_v8 = vpop.f32.mrb[12].mxu0  ;;  %5164 = vmatmul.mubr.f32.gmra.mrb[40].mxu0 %v7074_v4 }
 0x123   : > { %v4681_v9 = vpop.f32.mrb[13].mxu0  ;;  %5166 = vmatprep.mubr.msk.f32.mxu0 %vm6708_vm1, %v8709_v21 }
 0x124   : > { %v4682_v10 = vadd.f32 %v4681_v9, %v4680_v8  ;;  %v4683_v11 = vpop.f32.mrb[14].mxu0 }
 0x125   : > { %v4684_v12 = vpop.f32.mrb[15].mxu0  ;;  %v1413_v13 = vpop.f32.mrb[12].mxu1 }
 0x126   : > { %v4685_v14 = vadd.f32 %v4684_v12, %v4683_v11  ;;  %v1318_v15 = vadd.f32 %v4682_v10, %v7047_v24  ;;  %v1415_v16 = vpop.f32.mrb[13].mxu1  ;;  %5167 = vmatmul.mubr.f32.gmra.mrb[42].mxu0 %v7077_v7 }
 0x127   : > { %v1416_v18 = vpop.f32.mrb[14].mxu1  ;;  %5169 = vmatprep.mubr.msk.f32.mxu0 %vm6708_vm1, %v8709_v21 }
 0x128   : > { %v7086_v19 = vadd.f32 %v1413_v13, %v1318_v15  ;;  %v1321_v22 = vadd.f32 %v4685_v14, %v7047_v24  ;;  %v1418_v23 = vpop.f32.mrb[15].mxu1 }
 0x12a   : > { %v7089_v25 = vadd.f32 %v1416_v18, %v1321_v22  ;;  %v4686_v26 = vpop.f32.mrb[16].mxu0  ;;  %5170 = vmatmul.mubr.f32.gmra.mrb[44].mxu0 %v7086_v19 }
 0x12b   : > { %v4687_v27 = vpop.f32.mrb[17].mxu0  ;;  %5172 = vmatprep.mubr.msk.f32.mxu0 %vm6708_vm1, %v8709_v21 }
 0x12c   : > { %v4688_v28 = vadd.f32 %v4687_v27, %v4686_v26  ;;  %v4689_v29 = vpop.f32.mrb[18].mxu0 }
 0x12d   : > { %v4690_v31 = vpop.f32.mrb[19].mxu0  ;;  %v1421_v32 = vpop.f32.mrb[16].mxu1 }
 0x12e   : > { %v4691_v33 = vadd.f32 %v4690_v31, %v4689_v29  ;;  %v1326_v35 = vadd.f32 %v4688_v28, %v7047_v24  ;;  %v1423_v36 = vpop.f32.mrb[17].mxu1  ;;  %5173 = vmatmul.mubr.f32.gmra.mrb[46].mxu0 %v7089_v25 }
 0x12f   : > { %v1424_v38 = vpop.f32.mrb[18].mxu1  ;;  %5175 = vmatprep.mubr.msk.f32.mxu0 %vm6708_vm1, %v8709_v21 }
 0x130   : > { %v7098_v40 = vadd.f32 %v1421_v32, %v1326_v35  ;;  %v1329_v41 = vadd.f32 %v4691_v33, %v7047_v24  ;;  %v1426_v42 = vpop.f32.mrb[19].mxu1 }
 0x132   : > { %v7101_v43 = vadd.f32 %v1424_v38, %v1329_v41  ;;  %v4692_v44 = vpop.f32.mrb[20].mxu0  ;;  %5176 = vmatmul.mubr.f32.gmra.mrb[48].mxu0 %v7098_v40 }
 0x133   : > { %v4693_v45 = vpop.f32.mrb[21].mxu0  ;;  %5178 = vmatprep.mubr.msk.f32.mxu0 %vm6708_vm1, %v8709_v21 }
 0x134   : > { %v4694_v47 = vadd.f32 %v4693_v45, %v4692_v44  ;;  %v4695_v48 = vpop.f32.mrb[22].mxu0 }
 0x135   : > { %v4696_v49 = vpop.f32.mrb[23].mxu0  ;;  %v1429_v52 = vpop.f32.mrb[20].mxu1 }
 0x136   : > { %v4697_v53 = vadd.f32 %v4696_v49, %v4695_v48  ;;  %v1334_v55 = vadd.f32 %v4694_v47, %v7047_v24  ;;  %v1431_v56 = vpop.f32.mrb[21].mxu1  ;;  %5179 = vmatmul.mubr.f32.gmra.mrb[50].mxu0 %v7101_v43 }
 0x137   : > { %v1432_v58 = vpop.f32.mrb[22].mxu1  ;;  %5181 = vmatprep.mubr.msk.f32.mxu0 %vm6708_vm1, %v8709_v21 }
 0x138   : > { %v7110_v59 = vadd.f32 %v1429_v52, %v1334_v55  ;;  %v1337_v60 = vadd.f32 %v4697_v53, %v7047_v24  ;;  %v1434_v62 = vpop.f32.mrb[23].mxu1 }
 0x13a   : > { %v7113_v63 = vadd.f32 %v1432_v58, %v1337_v60  ;;  %v4698_v0 = vpop.f32.mrb[24].mxu0  ;;  %5182 = vmatmul.mubr.f32.gmra.mrb[52].mxu0 %v7110_v59 }
 0x13b   : > { %v4699_v2 = vpop.f32.mrb[25].mxu0  ;;  %5184 = vmatprep.mubr.msk.f32.mxu0 %vm6708_vm1, %v8709_v21 }
 0x13c   : > { %v4700_v3 = vadd.f32 %v4699_v2, %v4698_v0  ;;  %v4701_v5 = vpop.f32.mrb[26].mxu0 }
 0x13d   : > { %v4702_v6 = vpop.f32.mrb[27].mxu0  ;;  %v1437_v8 = vpop.f32.mrb[24].mxu1 }
 0x13e   : > { %v4703_v9 = vadd.f32 %v4702_v6, %v4701_v5  ;;  %v1342_v10 = vadd.f32 %v4700_v3, %v7047_v24  ;;  %v1439_v11 = vpop.f32.mrb[25].mxu1  ;;  %5185 = vmatmul.mubr.f32.gmra.mrb[54].mxu0 %v7113_v63 }
 0x13f   : > { %v1440_v12 = vpop.f32.mrb[26].mxu1  ;;  %5187 = vmatprep.mubr.msk.f32.mxu0 %vm6708_vm1, %v8709_v21 }
 0x140   : > { %v7122_v13 = vadd.f32 %v1437_v8, %v1342_v10  ;;  %v1345_v14 = vadd.f32 %v4703_v9, %v7047_v24  ;;  %v1442_v15 = vpop.f32.mrb[27].mxu1 }
 0x142   : > { %v7125_v16 = vadd.f32 %v1440_v12, %v1345_v14  ;;  %v4704_v18 = vpop.f32.mrb[28].mxu0  ;;  %5188 = vmatmul.mubr.f32.gmra.mrb[56].mxu0 %v7122_v13 }
 0x143   : > { %v4705_v22 = vpop.f32.mrb[29].mxu0  ;;  %5190 = vmatprep.mubr.msk.f32.mxu0 %vm6708_vm1, %v8709_v21 }
 0x144   : > { %v4706_v23 = vadd.f32 %v4705_v22, %v4704_v18  ;;  %v4707_v26 = vpop.f32.mrb[30].mxu0 }
 0x145   : > { %v4708_v27 = vpop.f32.mrb[31].mxu0  ;;  %v1445_v28 = vpop.f32.mrb[28].mxu1 }
 0x146   : > { %v1350_v29 = vadd.f32 %v4706_v23, %v7047_v24  ;;  %v1447_v31 = vpop.f32.mrb[29].mxu1  ;;  %5191 = vmatmul.mubr.f32.gmra.mrb[58].mxu0 %v7125_v16 }
 0x147   : > { %v1448_v32 = vpop.f32.mrb[30].mxu1  ;;  %5193 = vmatprep.mubr.msk.f32.mxu0 %vm6708_vm1, %v8709_v21 }
 0x148   : > { %v7134_v33 = vadd.f32 %v1445_v28, %v1350_v29  ;;  %v1449_v35 = vpop.f32.mrb[31].mxu1 }
 0x14a   : > { %5194 = vmatmul.mubr.f32.gmra.mrb[60].mxu0 %v7134_v33 }
 0x1e5   : > { %v1517_v36 = vpop.f32.mrb[32].mxu0 }
 0x1e6   : > { %v7138_v38 = vsub.f32 %v7050_v34, %v1517_v36  ;;  %v5153_v41 = vpop.f32.mrb[33].mxu0 }
 0x1e8   : > { %v1606_v24 = vmul.f32 %v7138_v38, %v7138_v38 }
 0x1e9   : > { %v1522_v42 = vpop.f32.mrb[34].mxu0 }
 0x1ea   : > { %v7143_v44 = vsub.f32 %v7053_v37, %v1522_v42  ;;  %v5156_v45 = vpop.f32.mrb[35].mxu0  ;;  %5229 = vmatmul.mubr.f32.vlgmr.msra.gmra.mrb[32].mxu1 %v1606_v24 }
 0x1eb   : > { %5231 = vmatprep.mubr.msk.f32.mxu1 %vm6708_vm1, %v8709_v21 }
 0x1ec   : > { %v1607_v47 = vmul.f32 %v7143_v44, %v7143_v44 }
 0x1ed   : > { %v1527_v48 = vpop.f32.mrb[36].mxu0 }
 0x1ee   : > { %v7150_v34 = vsub.f32 %v7062_v50, %v1527_v48  ;;  %v5159_v49 = vpop.f32.mrb[37].mxu0  ;;  %5232 = vmatmul.mubr.f32.gmra.mrb[34].mxu1 %v1607_v47 }
 0x1ef   : > { %5234 = vmatprep.mubr.msk.f32.mxu1 %vm6708_vm1, %v8709_v21  ;;  %v6386_v49 = vld [vmem:[%s8696_s6] sm:$0xff]  }
 0x1f0   : > { %v1608_v37 = vmul.f32 %v7150_v34, %v7150_v34  ;;  %5289 = vmatprep.mubr.msk.bf16.mxu0 %vm1867_vm2, %v6386_v49 }
 0x1f1   : > { %v1532_v52 = vpop.f32.mrb[38].mxu0 }
 0x1f2   : > { %v7157_v53 = vsub.f32 %v7065_v54, %v1532_v52  ;;  %v5162_v55 = vpop.f32.mrb[39].mxu0  ;;  %5235 = vmatmul.mubr.f32.gmra.mrb[36].mxu1 %v1608_v37  ;;  %v746_v37 = vld [vmem:[%s8697_s7 + $0x10] sm:$0xff]  ;;  %v745_v52 = vld [vmem:[%s8697_s7 + $0x8] sm:$0xff] }
 0x1f3   : > { %5237 = vmatprep.mubr.msk.f32.mxu1 %vm6708_vm1, %v8709_v21  ;;  %771 = vperm.xlu1 %6314, %v746_v37   ;;  %v747_v55 = vld [vmem:[%s8697_s7 + $0x18] sm:$0xff] }
 0x1f4   : > { %v1609_v50 = vmul.f32 %v7157_v53, %v7157_v53 }
 0x1f5   : > { %v1537_v56 = vpop.f32.mrb[40].mxu0 }
 0x1f6   : > { %v7164_v58 = vsub.f32 %v7074_v4, %v1537_v56  ;;  %v5165_v60 = vpop.f32.mrb[41].mxu0  ;;  %5238 = vmatmul.mubr.f32.gmra.mrb[38].mxu1 %v1609_v50  ;;  %v748_v50 = vld [vmem:[%s8697_s7 + $0x20] sm:$0xff]  ;;  %v749_v56 = vld [vmem:[%s8697_s7 + $0x28] sm:$0xff] }
 0x1f7   : > { %5240 = vmatprep.mubr.msk.f32.mxu1 %vm6708_vm1, %v8709_v21  ;;  %776 = vperm.xlu1 %6314, %v747_v55   ;;  %v750_v60 = vld [vmem:[%s8697_s7 + $0x30] sm:$0xff]  ;;  %v7321_v55 = vld [vmem:[%s8694_s4] ss:$0 sm:$0xff] }
 0x1f8   : > { %v1610_v54 = vmul.f32 %v7164_v58, %v7164_v58 }
 0x1f9   : > { %v1542_v62 = vpop.f32.mrb[42].mxu0 }
 0x1fa   : > { %v7171_v0 = vsub.f32 %v7077_v7, %v1542_v62  ;;  %v5168_v2 = vpop.f32.mrb[43].mxu0  ;;  %5241 = vmatmul.mubr.f32.gmra.mrb[40].mxu1 %v1610_v54  ;;  %v751_v54 = vld [vmem:[%s8697_s7 + $0x38] sm:$0xff]  ;;  %v752_v62 = vld [vmem:[%s8697_s7 + $0x40] sm:$0xff] }
 0x1fb   : > { %5243 = vmatprep.mubr.msk.f32.mxu1 %vm6708_vm1, %v8709_v21  ;;  %786 = vperm.xlu1 %6314, %v749_v56   ;;  %v753_v2 = vld [vmem:[%s8697_s7 + $0x48] sm:$0xff] }
 0x1fc   : > { %v1611_v4 = vmul.f32 %v7171_v0, %v7171_v0 }
 0x1fd   : > { %v1547_v3 = vpop.f32.mrb[44].mxu0 }
 0x1fe   : > { %v7178_v5 = vsub.f32 %v7086_v19, %v1547_v3  ;;  %v5171_v6 = vpop.f32.mrb[45].mxu0  ;;  %5244 = vmatmul.mubr.f32.gmra.mrb[42].mxu1 %v1611_v4  ;;  %v754_v4 = vld [vmem:[%s8697_s7 + $0x50] sm:$0xff]  ;;  %v755_v3 = vld [vmem:[%s8697_s7 + $0x58] sm:$0xff] }
 0x1ff   : > { %5246 = vmatprep.mubr.msk.f32.mxu1 %vm6708_vm1, %v8709_v21  ;;  %796 = vperm.xlu1 %6314, %v751_v54  }
 0x200   : > { %v1612_v7 = vmul.f32 %v7178_v5, %v7178_v5 }
 0x201   : > { %v1552_v8 = vpop.f32.mrb[46].mxu0 }
 0x202   : > { %v7185_v9 = vsub.f32 %v7089_v25, %v1552_v8  ;;  %v5174_v10 = vpop.f32.mrb[47].mxu0  ;;  %5247 = vmatmul.mubr.f32.gmra.mrb[44].mxu1 %v1612_v7  ;;  %v756_v7 = vld [vmem:[%s8697_s7 + $0x60] sm:$0xff]  ;;  %v757_v8 = vld [vmem:[%s8697_s7 + $0x68] sm:$0xff] }
 0x203   : > { %5249 = vmatprep.mubr.msk.f32.mxu1 %vm6708_vm1, %v8709_v21  ;;  %806 = vperm.xlu1 %6314, %v753_v2  }
 0x204   : > { %v1613_v19 = vmul.f32 %v7185_v9, %v7185_v9 }
 0x205   : > { %v1557_v11 = vpop.f32.mrb[48].mxu0 }
 0x206   : > { %v7192_v12 = vsub.f32 %v7098_v40, %v1557_v11  ;;  %v5177_v14 = vpop.f32.mrb[49].mxu0  ;;  %5250 = vmatmul.mubr.f32.gmra.mrb[46].mxu1 %v1613_v19 }
 0x207   : > { %5252 = vmatprep.mubr.msk.f32.mxu1 %vm6708_vm1, %v8709_v21  ;;  %816 = vperm.xlu1 %6314, %v755_v3   ;;  %v758_v14 = vld [vmem:[%s8697_s7 + $0x70] sm:$0xff] }
 0x208   : > { %v1614_v25 = vmul.f32 %v7192_v12, %v7192_v12 }
 0x209   : > { %v1562_v15 = vpop.f32.mrb[50].mxu0 }
 0x20a   : > { %v7199_v18 = vsub.f32 %v7101_v43, %v1562_v15  ;;  %v5180_v22 = vpop.f32.mrb[51].mxu0  ;;  %5253 = vmatmul.mubr.f32.gmra.mrb[48].mxu1 %v1614_v25  ;;  %v834_v25 = vld [vmem:[%s8699_s9] sm:$0xff] }
 0x20b   : > { %5255 = vmatprep.mubr.msk.f32.mxu1 %vm6708_vm1, %v8709_v21  ;;  %826 = vperm.xlu1 %6314, %v757_v8  }
 0x20c   : > { %v1615_v40 = vmul.f32 %v7199_v18, %v7199_v18 }
 0x20d   : > { %v1567_v23 = vpop.f32.mrb[52].mxu0 }
 0x20e   : > { %v7206_v26 = vsub.f32 %v7110_v59, %v1567_v23  ;;  %v5183_v27 = vpop.f32.mrb[53].mxu0  ;;  %5256 = vmatmul.mubr.f32.gmra.mrb[50].mxu1 %v1615_v40  ;;  %v835_v23 = vld [vmem:[%s8699_s9 + $0x8] sm:$0xff] }
 0x20f   : > { %5258 = vmatprep.mubr.msk.f32.mxu1 %vm6708_vm1, %v8709_v21  ;;  %851 = vperm.xlu1 %6314, %v834_v25   ;;  %v836_v27 = vld [vmem:[%s8699_s9 + $0x10] sm:$0xff] }
 0x210   : > { %v1616_v43 = vmul.f32 %v7206_v26, %v7206_v26  ;;  %v844_v25 = vld [vmem:[%s8699_s9 + $0x50] sm:$0xff] }
 0x211   : > { %v1572_v28 = vpop.f32.mrb[54].mxu0 }
 0x212   : > { %v7213_v29 = vsub.f32 %v7113_v63, %v1572_v28  ;;  %v5186_v31 = vpop.f32.mrb[55].mxu0  ;;  %5259 = vmatmul.mubr.f32.gmra.mrb[52].mxu1 %v1616_v43 }
 0x213   : > { %5261 = vmatprep.mubr.msk.f32.mxu1 %vm6708_vm1, %v8709_v21  ;;  %861 = vperm.xlu1 %6314, %v836_v27  }
 0x214   : > { %v1617_v59 = vmul.f32 %v7213_v29, %v7213_v29 }
 0x215   : > { %v1577_v32 = vpop.f32.mrb[56].mxu0 }
 0x216   : > { %v7220_v35 = vsub.f32 %v7122_v13, %v1577_v32  ;;  %v5189_v36 = vpop.f32.mrb[57].mxu0  ;;  %5262 = vmatmul.mubr.f32.gmra.mrb[54].mxu1 %v1617_v59  ;;  %v837_v59 = vld [vmem:[%s8699_s9 + $0x18] sm:$0xff]  ;;  %v838_v32 = vld [vmem:[%s8699_s9 + $0x20] sm:$0xff] }
 0x217   : > { %5264 = vmatprep.mubr.msk.f32.mxu1 %vm6708_vm1, %v8709_v21  ;;  %871 = vperm.xlu1 %6314, %v838_v32  }
 0x218   : > { %v1618_v63 = vmul.f32 %v7220_v35, %v7220_v35 }
 0x219   : > { %v1582_v41 = vpop.f32.mrb[58].mxu0 }
 0x21a   : > { %v7227_v24 = vsub.f32 %v7125_v16, %v1582_v41  ;;  %v5192_v42 = vpop.f32.mrb[59].mxu0  ;;  %5265 = vmatmul.mubr.f32.gmra.mrb[56].mxu1 %v1618_v63 }
 0x21b   : > { %5267 = vmatprep.mubr.msk.f32.mxu1 %vm6708_vm1, %v8709_v21 }
 0x21c   : > { %v1619_v13 = vmul.f32 %v7227_v24, %v7227_v24 }
 0x21d   : > { %v1587_v45 = vpop.f32.mrb[60].mxu0 }
 0x21e   : > { %v7234_v47 = vsub.f32 %v7134_v33, %v1587_v45  ;;  %v5195_v48 = vpop.f32.mrb[61].mxu0  ;;  %5268 = vmatmul.mubr.f32.gmra.mrb[58].mxu1 %v1619_v13  ;;  %v744_v33 = vld [vmem:[%s8697_s7] sm:$0xff] }
 0x21f   : > { %5270 = vmatprep.mubr.msk.f32.mxu1 %vm6708_vm1, %v8709_v21  ;;  %761 = vperm.xlu0 %6313, %v744_v33   ;;  %v7308_v13 = vld [vmem:[%s8693_s3] ss:$0 sm:$0xff]  ;;  %v839_v48 = vld [vmem:[%s8699_s9 + $0x28] sm:$0xff] }
 0x220   : > { %v1620_v16 = vmul.f32 %v7234_v47, %v7234_v47 }
 0x222   : > { %5271 = vmatmul.mubr.f32.gmra.mrb[60].mxu1 %v1620_v16  ;;  %v840_v16 = vld [vmem:[%s8699_s9 + $0x30] sm:$0xff] }
 0x223   : > { %766 = vperm.xlu0 %6313, %v745_v52   ;;  %881 = vperm.xlu1 %6314, %v840_v16   ;;  %v848_v16 = vld [vmem:[%s8699_s9 + $0x70] sm:$0xff] }
 0x227   : > { %781 = vperm.xlu0 %6313, %v748_v50  }
 0x22b   : > { %791 = vperm.xlu0 %6313, %v750_v60   ;;  %v841_v60 = vld [vmem:[%s8699_s9 + $0x38] sm:$0xff] }
 0x22f   : > { %801 = vperm.xlu0 %6313, %v752_v62  }
 0x233   : > { %811 = vperm.xlu0 %6313, %v754_v4  }
 0x237   : > { %821 = vperm.xlu0 %6313, %v756_v7  }
 0x23b   : > { %831 = vperm.xlu0 %6313, %v758_v14  }
 0x23f   : > { %856 = vperm.xlu0 %6313, %v835_v23   ;;  %v845_v23 = vld [vmem:[%s8699_s9 + $0x58] sm:$0xff] }
 0x243   : > { %866 = vperm.xlu0 %6313, %v837_v59  }
 0x247   : > { %876 = vperm.xlu0 %6313, %v839_v48  }
 0x24b   : > { %886 = vperm.xlu0 %6313, %v841_v60  }
 0x2bd   : > { %v1687_v6 = vpop.f32.mrb[32].mxu1 }
 0x2be   : > { %v1688_v10 = vadd.f32 1e-05, %v1687_v6  ;;  %v5230_v19 = vpop.f32.mrb[33].mxu1 }
 0x2c0   : > { %6418 = vrsqrt.f32 %v1688_v10  ;;  %v843_v10 = vld [vmem:[%s8699_s9 + $0x48] sm:$0xff] }
 0x2c1   : > { %v1692_v11 = vpop.f32.mrb[34].mxu1  ;;  %896 = vperm.xlu0 %6313, %v843_v10  }
 0x2c2   : > { %v1693_v15 = vadd.f32 1e-05, %v1692_v11  ;;  %v5233_v22 = vpop.f32.mrb[35].mxu1 }
 0x2c4   : > { %6420 = vrsqrt.f32 %v1693_v15 }
 0x2c5   : > { %v1697_v40 = vpop.f32.mrb[36].mxu1  ;;  %906 = vperm.xlu0 %6313, %v845_v23  }
 0x2c6   : > { %v1698_v43 = vadd.f32 1e-05, %v1697_v40  ;;  %v5236_v28 = vpop.f32.mrb[37].mxu1 }
 0x2c8   : > { %6422 = vrsqrt.f32 %v1698_v43 }
 0x2c9   : > { %v1702_v31 = vpop.f32.mrb[38].mxu1 }
 0x2ca   : > { %v6419_v36 = vpop.eup %6418  ;;  %v1703_v63 = vadd.f32 1e-05, %v1702_v31  ;;  %v5239_v41 = vpop.f32.mrb[39].mxu1 }
 0x2cb   : > { %v1776_v42 = vmul.f32 %v6419_v36, %v7138_v38  ;;  %v847_v41 = vld [vmem:[%s8699_s9 + $0x68] sm:$0xff] }
 0x2cc   : > { %6424 = vrsqrt.f32 %v1703_v63  ;;  %916 = vperm.xlu0 %6313, %v847_v41  }
 0x2cd   : > { %v1707_v45 = vpop.f32.mrb[40].mxu1  ;;  %v1791_v52 = vmul.f32 %v7308_v13, %v1776_v42 }
 0x2ce   : > { %v6421_v49 = vpop.eup %6420  ;;  %v1708_v33 = vadd.f32 1e-05, %v1707_v45  ;;  %v5242_v38 = vpop.f32.mrb[41].mxu1 }
 0x2cf   : > { %v1777_v37 = vmul.f32 %v6421_v49, %v7143_v44  ;;  %v842_v44 = vld [vmem:[%s8699_s9 + $0x40] sm:$0xff]  ;;  %v1806_v4 = vadd.f32 %v7321_v55, %v1791_v52 }
 0x2d0   : > { %6426 = vrsqrt.f32 %v1708_v33  ;;  %891 = vperm.xlu1 %6314, %v842_v44  }
 0x2d1   : > { %v1712_v50 = vpop.f32.mrb[42].mxu1  ;;  %v1792_v56 = vmul.f32 %v7308_v13, %v1777_v37 }
 0x2d2   : > { %v6423_v54 = vpop.eup %6422  ;;  %v1713_v62 = vadd.f32 1e-05, %v1712_v50  ;;  %v5245_v2 = vpop.f32.mrb[43].mxu1 }
 0x2d3   : > { %v1807_v3 = vadd.f32 %v7321_v55, %v1792_v56  ;;  %v1778_v6 = vmul.f32 %v6423_v54, %v7150_v34 }
 0x2d4   : > { %6428 = vrsqrt.f32 %v1713_v62  ;;  %901 = vperm.xlu1 %6314, %v844_v25  }
 0x2d5   : > { %v1717_v7 = vpop.f32.mrb[44].mxu1  ;;  %v1821_v8 = vpack.c.bf16 %v1807_v3, %v1806_v4  ;;  %v1793_v34 = vmul.f32 %v7308_v13, %v1778_v6 }
 0x2d6   : > { %v6425_v19 = vpop.eup %6424  ;;  %v1718_v11 = vadd.f32 1e-05, %v1717_v7  ;;  %v5248_v14 = vpop.f32.mrb[45].mxu1 }
 0x2d7   : > { %5273 = vmatprep.subr.bf16.mxu0 %v1821_v8  ;;  %v1779_v15 = vmul.f32 %v6425_v19, %v7157_v53  ;;  %v846_v53 = vld [vmem:[%s8699_s9 + $0x60] sm:$0xff]  ;;  %v1808_v31 = vadd.f32 %v7321_v55, %v1793_v34 }
 0x2d8   : > { %6430 = vrsqrt.f32 %v1718_v11  ;;  %5274 = vmatpush3.bf16.msra.mxu0 %v1821_v8  ;;  %911 = vperm.xlu1 %6314, %v846_v53  }
 0x2d9   : > { %v1722_v22 = vpop.f32.mrb[46].mxu1  ;;  %v1794_v40 = vmul.f32 %v7308_v13, %v1779_v15 }
 0x2da   : > { %v6427_v27 = vpop.eup %6426  ;;  %v1723_v43 = vadd.f32 1e-05, %v1722_v22  ;;  %v5251_v28 = vpop.f32.mrb[47].mxu1 }
 0x2db   : > { %v1809_v59 = vadd.f32 %v7321_v55, %v1794_v40  ;;  %v1780_v32 = vmul.f32 %v6427_v27, %v7164_v58 }
 0x2dc   : > { %6432 = vrsqrt.f32 %v1723_v43  ;;  %921 = vperm.xlu1 %6314, %v848_v16  }
 0x2dd   : > { %v1727_v36 = vpop.f32.mrb[48].mxu1  ;;  %v1822_v63 = vpack.c.bf16 %v1809_v59, %v1808_v31  ;;  %v1795_v58 = vmul.f32 %v7308_v13, %v1780_v32 }
 0x2de   : > { %v6429_v42 = vpop.eup %6428  ;;  %v1728_v45 = vadd.f32 1e-05, %v1727_v36  ;;  %v5254_v48 = vpop.f32.mrb[49].mxu1 }
 0x2df   : > { %5275 = vmatprep.subr.bf16.mxu0 %v1822_v63  ;;  %v1781_v49 = vmul.f32 %v6429_v42, %v7171_v0  ;;  %v1810_v56 = vadd.f32 %v7321_v55, %v1795_v58 }
 0x2e0   : > { %6434 = vrsqrt.f32 %v1728_v45  ;;  %5276 = vmatpush3.bf16.msra.mxu0 %v1822_v63 }
 0x2e1   : > { %v1732_v33 = vpop.f32.mrb[50].mxu1  ;;  %v1796_v38 = vmul.f32 %v7308_v13, %v1781_v49 }
 0x2e2   : > { %v6431_v37 = vpop.eup %6430  ;;  %v1733_v52 = vadd.f32 1e-05, %v1732_v33  ;;  %v5257_v50 = vpop.f32.mrb[51].mxu1 }
 0x2e3   : > { %v1811_v60 = vadd.f32 %v7321_v55, %v1796_v38  ;;  %v1782_v44 = vmul.f32 %v6431_v37, %v7178_v5 }
 0x2e4   : > { %6436 = vrsqrt.f32 %v1733_v52 }
 0x2e5   : > { %v1737_v0 = vpop.f32.mrb[52].mxu1  ;;  %v1823_v54 = vpack.c.bf16 %v1811_v60, %v1810_v56  ;;  %v1797_v6 = vmul.f32 %v7308_v13, %v1782_v44 }
 0x2e6   : > { %v6433_v62 = vpop.eup %6432  ;;  %v1738_v2 = vadd.f32 1e-05, %v1737_v0  ;;  %v5260_v4 = vpop.f32.mrb[53].mxu1 }
 0x2e7   : > { %5277 = vmatprep.subr.bf16.mxu0 %v1823_v54  ;;  %v1783_v3 = vmul.f32 %v6433_v62, %v7185_v9  ;;  %v1812_v5 = vadd.f32 %v7321_v55, %v1797_v6  ;;  %v6391_v6 = vld [vmem:[%s8696_s6 + $0x28] sm:$0xff]  }
 0x2e8   : > { %6438 = vrsqrt.f32 %v1738_v2  ;;  %5278 = vmatpush3.bf16.msra.mxu0 %v1823_v54 }
 0x2e9   : > { %v1742_v7 = vpop.f32.mrb[54].mxu1  ;;  %v1798_v8 = vmul.f32 %v7308_v13, %v1783_v3  ;;  %v6387_v3 = vld [vmem:[%s8696_s6 + $0x8] sm:$0xff]  }
 0x2ea   : > { %v6435_v10 = vpop.eup %6434  ;;  %v1743_v19 = vadd.f32 1e-05, %v1742_v7  ;;  %v5263_v11 = vpop.f32.mrb[55].mxu1  ;;  %v6392_v7 = vld [vmem:[%s8696_s6 + $0x30] sm:$0xff]  }
 0x2eb   : > { %v1813_v14 = vadd.f32 %v7321_v55, %v1798_v8  ;;  %v1784_v25 = vmul.f32 %v6435_v10, %v7192_v12  ;;  %v6393_v8 = vld [vmem:[%s8696_s6 + $0x38] ss:$0 sps:$4 sm:$0xff]   ;;  %v6394_v10 = vld [vmem:[%s8698_s8] sm:$0xff]  }
 0x2ec   : > { %6440 = vrsqrt.f32 %v1743_v19  ;;  %5321 = vmatprep.mubr.msk.bf16.mxu1 %vm1867_vm2, %v6394_v10  ;;  %v7441_v19 = vpop.permute.xlu0 %761 }
 0x2ed   : > { %v1747_v15 = vpop.f32.mrb[56].mxu1  ;;  %v1824_v34 = vpack.c.bf16 %v1813_v14, %v1812_v5  ;;  %v1799_v27 = vmul.f32 %v7308_v13, %v1784_v25  ;;  %v7445_v5 = vpop.permute.xlu1 %771 }
 0x2ee   : > { %v6437_v9 = vpop.eup %6436  ;;  %v1748_v22 = vadd.f32 1e-05, %v1747_v15  ;;  %v5266_v40 = vpop.f32.mrb[57].mxu1 }
 0x2ef   : > { %5279 = vmatprep.subr.bf16.mxu0 %v1824_v34  ;;  %v1785_v23 = vmul.f32 %v6437_v9, %v7199_v18  ;;  %v1814_v12 = vadd.f32 %v7321_v55, %v1799_v27 }
 0x2f0   : > { %6442 = vrsqrt.f32 %v1748_v22  ;;  %5280 = vmatpush3.bf16.msra.mxu0 %v1824_v34  ;;  %v7443_v11 = vpop.permute.xlu0 %766 }
 0x2f1   : > { %v1752_v43 = vpop.f32.mrb[58].mxu1  ;;  %v1800_v28 = vmul.f32 %v7308_v13, %v1785_v23  ;;  %v7449_v25 = vpop.permute.xlu1 %776 }
 0x2f2   : > { %v6439_v53 = vpop.eup %6438  ;;  %v1753_v31 = vadd.f32 1e-05, %v1752_v43  ;;  %v5269_v59 = vpop.f32.mrb[59].mxu1 }
 0x2f3   : > { %v1815_v32 = vadd.f32 %v7321_v55, %v1800_v28  ;;  %v1786_v36 = vmul.f32 %v6439_v53, %v7206_v26 }
 0x2f4   : > { %6444 = vrsqrt.f32 %v1753_v31  ;;  %v7447_v14 = vpop.permute.xlu0 %781 }
 0x2f5   : > { %v1757_v63 = vpop.f32.mrb[60].mxu1  ;;  %v1825_v41 = vpack.c.bf16 %v1815_v32, %v1814_v12  ;;  %v1801_v16 = vmul.f32 %v7308_v13, %v1786_v36  ;;  %v7453_v9 = vpop.permute.xlu1 %786 }
 0x2f6   : > { %v6441_v18 = vpop.eup %6440  ;;  %v1758_v42 = vadd.f32 1e-05, %v1757_v63  ;;  %v5272_v45 = vpop.f32.mrb[61].mxu1 }
 0x2f7   : > { %5281 = vmatprep.subr.bf16.mxu0 %v1825_v41  ;;  %v1787_v48 = vmul.f32 %v6441_v18, %v7213_v29  ;;  %v1816_v33 = vadd.f32 %v7321_v55, %v1801_v16 }
 0x2f8   : > { %6446 = vrsqrt.f32 %v1758_v42  ;;  %5282 = vmatpush3.bf16.msra.mxu0 %v1825_v41  ;;  %v7451_v15 = vpop.permute.xlu0 %791 }
 0x2f9   : > { %v1802_v49 = vmul.f32 %v7308_v13, %v1787_v48  ;;  %v7461_v63 = vpop.permute.xlu1 %796 }
 0x2fa   : > { %v6443_v58 = vpop.eup %6442 }
 0x2fb   : > { %v1817_v26 = vadd.f32 %v7321_v55, %v1802_v49  ;;  %v1788_v38 = vmul.f32 %v6443_v58, %v7220_v35 }
 0x2fc   : > { %v7459_v32 = vpop.permute.xlu0 %801 }
 0x2fd   : > { %v1826_v37 = vpack.c.bf16 %v1817_v26, %v1816_v33  ;;  %v1803_v29 = vmul.f32 %v7308_v13, %v1788_v38 }
 0x2fe   : > { %v6445_v52 = vpop.eup %6444 }
 0x2ff   : > { %5283 = vmatprep.subr.bf16.mxu0 %v1826_v37  ;;  %v1789_v50 = vmul.f32 %v6445_v52, %v7227_v24  ;;  %v1818_v44 = vadd.f32 %v7321_v55, %v1803_v29 }
 0x300   : > { %5284 = vmatpush3.bf16.msra.mxu0 %v1826_v37  ;;  %v7471_v33 = vpop.permute.xlu0 %811  ;;  %v7475_v37 = vpop.permute.xlu1 %806 }
 0x301   : > { %v1804_v56 = vmul.f32 %v7308_v13, %v1789_v50 }
 0x302   : > { %v6447_v60 = vpop.eup %6446 }
 0x303   : > { %v1819_v0 = vadd.f32 %v7321_v55, %v1804_v56  ;;  %v1790_v54 = vmul.f32 %v6447_v60, %v7234_v47  ;;  %v6388_v47 = vld [vmem:[%s8696_s6 + $0x10] sm:$0xff]  }
 0x305   : > { %v1827_v62 = vpack.c.bf16 %v1819_v0, %v1818_v44  ;;  %v1805_v35 = vmul.f32 %v7308_v13, %v1790_v54  ;;  %v6389_v13 = vld [vmem:[%s8696_s6 + $0x18] sm:$0xff]  }
 0x307   : > { %5285 = vmatprep.subr.bf16.mxu0 %v1827_v62  ;;  %v1820_v2 = vadd.f32 %v7321_v55, %v1805_v35  ;;  %v6390_v55 = vld [vmem:[%s8696_s6 + $0x20] sm:$0xff]  }
 0x308   : > { %5286 = vmatpush3.bf16.msra.mxu0 %v1827_v62 }
 0x309   : > { %v1828_v24 = vpack.c.bf16 %v1820_v2, %v1820_v2 }
 0x30b   : > { %6296 = vmatprep.subr.msk.bf16.mxu0 %vm1892_vm3, %v1828_v24  ;;  %v1894_v4 = vsel %vm1892_vm3, %v1828_v24, 0  ;;  %v7480_v24 = vpop.permute.xlu0 %821 }
 0x30c   : > { %5288 = vmatpush3.bf16.msra.mxu0 %v1894_v4 }
 0x30d   : > { %6107 = vmatprep.subr.bf16.mxu0 %v8711_v30 }
 0x30f   : > { %5290 = vmatmul.mubr.msk.bf16.vlgmr.msra.gmra.mrb[64].mxu0 %vm1867_vm2, %v6387_v3 }
 0x310   : > { %5293 = vmatprep.mubr.msk.bf16.mxu0 %vm1867_vm2, %v6388_v47  ;;  %6109 = vmatpush3.bf16.msra.mxu0 %v6926_v39 }
 0x311   : > { %6110 = vmatprep.subr.bf16.mxu0 %v8711_v30 }
 0x314   : > { %6112 = vmatpush3.bf16.msra.mxu0 %v6943_v46 }
 0x315   : > { %6113 = vmatprep.subr.bf16.mxu0 %v8711_v30 }
 0x317   : > { %5294 = vmatmul.mubr.msk.bf16.gmra.mrb[68].mxu0 %vm1867_vm2, %v6389_v13 }
 0x318   : > { %5297 = vmatprep.mubr.msk.bf16.mxu0 %vm1867_vm2, %v6390_v55  ;;  %6115 = vmatpush3.bf16.msra.mxu0 %v6958_v51 }
 0x319   : > { %6116 = vmatprep.subr.bf16.mxu0 %v8711_v30 }
 0x31c   : > { %6118 = vmatpush3.bf16.msra.mxu0 %v6974_v57 }
 0x31d   : > { %6119 = vmatprep.subr.bf16.mxu0 %v8711_v30 }
 0x31f   : > { %5298 = vmatmul.mubr.msk.bf16.gmra.mrb[72].mxu0 %vm1867_vm2, %v6391_v6  ;;  %v7485_v6 = vpop.permute.xlu1 %816 }
 0x320   : > { %5301 = vmatprep.mubr.msk.bf16.mxu0 %vm1867_vm2, %v6392_v7  ;;  %6121 = vmatpush3.bf16.msra.mxu0 %v6987_v61 }
 0x321   : > { %6122 = vmatprep.subr.bf16.mxu0 %v8711_v30 }
 0x324   : > { %6124 = vmatpush3.bf16.msra.mxu0 %v6997_v1 }
 0x325   : > { %6125 = vmatprep.subr.bf16.mxu0 %v8711_v30 }
 0x327   : > { %5302 = vmatmul.mubr.msk.bf16.gmra.mrb[76].mxu0 %vm1867_vm2, %v6393_v8 }
 0x328   : > { %6127 = vmatpush3.bf16.msra.mxu0 %v7024_v17  ;;  %5369 = vmatprep.mubr.msk.f32.mxu0 %vm6708_vm1, %v8709_v21 }
 0x329   : > { %6128 = vmatprep.subr.bf16.mxu0 %v8711_v30 }
 0x32c   : > { %6130 = vmatpush3.bf16.msra.mxu0 %v7036_v20 }
 0x3e2   : > { %v5291_v34 = vpop.f32.mrb[64].mxu0 }
 0x3e3   : > { %v1939_v22 = vadd.f32 %v5291_v34, %v7445_v5  ;;  %v1930_v40 = vpop.f32.mrb[65].mxu0 }
 0x3e4   : > { %v1931_v23 = vadd.f32 %v1930_v40, %v7441_v19  ;;  %v5292_v27 = vpop.f32.mrb[66].mxu0 }
 0x3e5   : > { %v2009_v43 = vmul.f32 0.70710677, %v1939_v22  ;;  %v1942_v28 = vadd.f32 %v5292_v27, %v7449_v25  ;;  %v1933_v53 = vpop.f32.mrb[67].mxu0  ;;  %v1994_v4 = vmul.f32 0.5, %v1939_v22 }
 0x3e6   : > { %v2007_v31 = vmul.f32 0.70710677, %v1931_v23  ;;  %v1934_v59 = vadd.f32 %v1933_v53, %v7443_v11  ;;  %v1992_v7 = vmul.f32 0.5, %v1931_v23 }
 0x3e7   : > { %6448 = verf.f32 %v2009_v43  ;;  %v2010_v12 = vmul.f32 0.70710677, %v1942_v28  ;;  %v1995_v3 = vmul.f32 0.5, %v1942_v28 }
 0x3e8   : > { %6450 = verf.f32 %v2007_v31  ;;  %v2008_v36 = vmul.f32 0.70710677, %v1934_v59  ;;  %v1993_v8 = vmul.f32 0.5, %v1934_v59 }
 0x3e9   : > { %6452 = verf.f32 %v2010_v12 }
 0x3ea   : > { %6454 = verf.f32 %v2008_v36  ;;  %v5295_v41 = vpop.f32.mrb[68].mxu0 }
 0x3eb   : > { %v7464_v18 = vadd.f32 %v5295_v41, %v7451_v15  ;;  %v1946_v42 = vpop.f32.mrb[69].mxu0 }
 0x3ec   : > { %v7467_v45 = vadd.f32 %v1946_v42, %v7447_v14  ;;  %v5296_v48 = vpop.f32.mrb[70].mxu0 }
 0x3ed   : > { %v2013_v16 = vmul.f32 0.70710677, %v7464_v18  ;;  %v1958_v49 = vadd.f32 %v5296_v48, %v7461_v63  ;;  %v1949_v58 = vpop.f32.mrb[71].mxu0 }
 0x3ee   : > { %v2011_v26 = vmul.f32 0.70710677, %v7467_v45  ;;  %v1950_v38 = vadd.f32 %v1949_v58, %v7453_v9 }
 0x3ef   : > { %6456 = verf.f32 %v2013_v16  ;;  %v2014_v52 = vmul.f32 0.70710677, %v1958_v49  ;;  %v7491_v16 = vpop.permute.xlu0 %831 }
 0x3f0   : > { %6458 = verf.f32 %v2011_v26  ;;  %v2012_v50 = vmul.f32 0.70710677, %v1950_v38 }
 0x3f1   : > { %v6449_v29 = vpop.eup %6448  ;;  %6460 = verf.f32 %v2014_v52 }
 0x3f2   : > { %v6451_v56 = vpop.eup %6450  ;;  %v2039_v60 = vadd.f32 1.0, %v6449_v29  ;;  %6462 = verf.f32 %v2012_v50  ;;  %v5299_v44 = vpop.f32.mrb[72].mxu0 }
 0x3f3   : > { %v6453_v0 = vpop.eup %6452  ;;  %v2037_v54 = vadd.f32 1.0, %v6451_v56  ;;  %v7478_v62 = vadd.f32 %v5299_v44, %v7471_v33  ;;  %v1962_v35 = vpop.f32.mrb[73].mxu0  ;;  %v1998_v44 = vmul.f32 0.5, %v7464_v18 }
 0x3f4   : > { %v6455_v2 = vpop.eup %6454  ;;  %v2040_v47 = vadd.f32 1.0, %v6453_v0  ;;  %v7483_v13 = vadd.f32 %v1962_v35, %v7459_v32  ;;  %v5300_v55 = vpop.f32.mrb[74].mxu0  ;;  %v2054_v27 = vmul.f32 %v2039_v60, %v1994_v4  ;;  %v1999_v0 = vmul.f32 0.5, %v1958_v49 }
 0x3f5   : > { %v2038_v10 = vadd.f32 1.0, %v6455_v2  ;;  %v2017_v34 = vmul.f32 0.70710677, %v7478_v62  ;;  %v1965_v40 = vpop.f32.mrb[75].mxu0  ;;  %v1974_v22 = vadd.f32 %v5300_v55, %v7485_v6  ;;  %v2052_v28 = vmul.f32 %v2037_v54, %v1992_v7  ;;  %v7496_v4 = vpop.permute.xlu1 %826 }
 0x3f6   : > { %v2055_v43 = vmul.f32 %v2040_v47, %v1995_v3  ;;  %v2015_v53 = vmul.f32 0.70710677, %v7483_v13  ;;  %v1966_v12 = vadd.f32 %v1965_v40, %v7475_v37  ;;  %v1996_v3 = vmul.f32 0.5, %v7467_v45 }
 0x3f7   : > { %v2053_v31 = vmul.f32 %v2038_v10, %v1993_v8  ;;  %6464 = verf.f32 %v2017_v34  ;;  %v2018_v36 = vmul.f32 0.70710677, %v1974_v22  ;;  %v1997_v47 = vmul.f32 0.5, %v1950_v38 }
 0x3f8   : > { %6466 = verf.f32 %v2015_v53  ;;  %v2068_v41 = vpack.c.bf16 %v2055_v43, %v2054_v27  ;;  %v2016_v59 = vmul.f32 0.70710677, %v1966_v12 }
 0x3f9   : > { %v6457_v23 = vpop.eup %6456  ;;  %v2067_v42 = vpack.c.bf16 %v2053_v31, %v2052_v28  ;;  %6468 = verf.f32 %v2018_v36 }
 0x3fa   : > { %v6459_v48 = vpop.eup %6458  ;;  %v2043_v58 = vadd.f32 1.0, %v6457_v23  ;;  %v5303_v26 = vpop.f32.mrb[76].mxu0  ;;  %6470 = verf.f32 %v2016_v59 }
 0x3fb   : > { %v6461_v52 = vpop.eup %6460  ;;  %v2041_v50 = vadd.f32 1.0, %v6459_v48  ;;  %v1987_v29 = vadd.f32 %v5303_v26, %v7491_v16  ;;  %v1978_v56 = vpop.f32.mrb[77].mxu0  ;;  %5305 = vmatprep.subr.bf16.mxu1 %v2067_v42  ;;  %v2003_v48 = vmul.f32 0.5, %v1974_v22  ;;  %v2000_v26 = vmul.f32 0.5, %v7483_v13 }
 0x3fc   : > { %v6463_v60 = vpop.eup %6462  ;;  %v2044_v54 = vadd.f32 1.0, %v6461_v52  ;;  %v1979_v35 = vadd.f32 %v1978_v56, %v7480_v24  ;;  %v5304_v2 = vpop.f32.mrb[78].mxu0  ;;  %5306 = vmatpush3.bf16.msra.mxu1 %v2067_v42  ;;  %v2058_v10 = vmul.f32 %v2043_v58, %v1998_v44  ;;  %v2002_v42 = vmul.f32 0.5, %v7478_v62 }
 0x3fd   : > { %v2042_v55 = vadd.f32 1.0, %v6463_v60  ;;  %v2021_v7 = vmul.f32 0.70710677, %v1987_v29  ;;  %v1981_v8 = vpop.f32.mrb[79].mxu0  ;;  %5307 = vmatprep.subr.bf16.mxu1 %v2068_v41  ;;  %v2056_v49 = vmul.f32 %v2041_v50, %v1996_v3  ;;  %v2001_v52 = vmul.f32 0.5, %v1966_v12 }
 0x3fe   : > { %v2059_v34 = vmul.f32 %v2044_v54, %v1999_v0  ;;  %v2019_v40 = vmul.f32 0.70710677, %v1979_v35  ;;  %v1982_v18 = vadd.f32 %v1981_v8, %v7496_v4  ;;  %v2004_v62 = vmul.f32 0.5, %v1979_v35  ;;  %v6395_v35 = vld [vmem:[%s8698_s8 + $0x8] sm:$0xff]  }
 0x3ff   : > { %v2057_v27 = vmul.f32 %v2042_v55, %v1997_v47  ;;  %6472 = verf.f32 %v2021_v7  ;;  %v2006_v13 = vmul.f32 0.5, %v1987_v29  ;;  %v6396_v29 = vld [vmem:[%s8698_s8 + $0x10] sm:$0xff]  }
 0x400   : > { %6474 = verf.f32 %v2019_v40  ;;  %v2020_v43 = vmul.f32 0.70710677, %v1982_v18  ;;  %5308 = vmatpush3.bf16.msra.mxu1 %v2068_v41  ;;  %v2070_v53 = vpack.c.bf16 %v2059_v34, %v2058_v10  ;;  %v2005_v22 = vmul.f32 0.5, %v1982_v18  ;;  %v6397_v18 = vld [vmem:[%s8698_s8 + $0x18] sm:$0xff]  }
 0x401   : > { %v6465_v28 = vpop.eup %6464  ;;  %v2069_v31 = vpack.c.bf16 %v2057_v27, %v2056_v49 }
 0x402   : > { %v6467_v45 = vpop.eup %6466  ;;  %6476 = verf.f32 %v2020_v43  ;;  %v2047_v38 = vadd.f32 1.0, %v6465_v28  ;;  %v6398_v43 = vld [vmem:[%s8698_s8 + $0x20] sm:$0xff]   ;;  %v6400_v28 = vld [vmem:[%s8698_s8 + $0x30] sm:$0xff]  }
 0x403   : > { %5309 = vmatprep.subr.bf16.mxu1 %v2069_v31  ;;  %v6469_v36 = vpop.eup %6468  ;;  %v2045_v23 = vadd.f32 1.0, %v6467_v45 }
 0x404   : > { %5310 = vmatpush3.bf16.msra.mxu1 %v2069_v31  ;;  %v6471_v59 = vpop.eup %6470  ;;  %v2048_v58 = vadd.f32 1.0, %v6469_v36  ;;  %v2062_v50 = vmul.f32 %v2047_v38, %v2002_v42  ;;  %v6401_v31 = vld [vmem:[%s8698_s8 + $0x38] ss:$0 sps:$4 sm:$0xff]   ;;  %v7550_v38 = vpop.permute.xlu1 %851 }
 0x405   : > { %5311 = vmatprep.subr.bf16.mxu1 %v2070_v53  ;;  %v2046_v41 = vadd.f32 1.0, %v6471_v59  ;;  %v2060_v60 = vmul.f32 %v2045_v23, %v2000_v26 }
 0x406   : > { %v2063_v56 = vmul.f32 %v2048_v58, %v2003_v48  ;;  %v7556_v48 = vpop.permute.xlu0 %856 }
 0x407   : > { %v2061_v44 = vmul.f32 %v2046_v41, %v2001_v52 }
 0x408   : > { %5312 = vmatpush3.bf16.msra.mxu1 %v2070_v53  ;;  %v2072_v54 = vpack.c.bf16 %v2063_v56, %v2062_v50  ;;  %v6399_v53 = vld [vmem:[%s8698_s8 + $0x28] sm:$0xff]   ;;  %v7564_v52 = vpop.permute.xlu1 %861 }
 0x409   : > { %v6473_v0 = vpop.eup %6472  ;;  %v2071_v3 = vpack.c.bf16 %v2061_v44, %v2060_v60 }
 0x40a   : > { %v6475_v2 = vpop.eup %6474  ;;  %v2051_v7 = vadd.f32 1.0, %v6473_v0  ;;  %v7572_v44 = vpop.permute.xlu0 %866 }
 0x40b   : > { %v2049_v47 = vadd.f32 1.0, %v6475_v2  ;;  %5313 = vmatprep.subr.bf16.mxu1 %v2071_v3 }
 0x40c   : > { %v6477_v55 = vpop.eup %6476  ;;  %5314 = vmatpush3.bf16.msra.mxu1 %v2071_v3  ;;  %v2066_v34 = vmul.f32 %v2051_v7, %v2006_v13  ;;  %v7580_v2 = vpop.permute.xlu1 %871 }
 0x40d   : > { %v2050_v8 = vadd.f32 1.0, %v6477_v55  ;;  %5315 = vmatprep.subr.bf16.mxu1 %v2072_v54  ;;  %v2064_v12 = vmul.f32 %v2049_v47, %v2004_v62 }
 0x40e   : > { %v2074_v49 = vpack.c.bf16 %v2066_v34, %v2066_v34  ;;  %v7588_v62 = vpop.permute.xlu0 %876 }
 0x40f   : > { %v2065_v10 = vmul.f32 %v2050_v8, %v2005_v22 }
 0x410   : > { %5316 = vmatpush3.bf16.msra.mxu1 %v2072_v54  ;;  %v2138_v27 = vsel %vm1892_vm3, %v2074_v49, 0  ;;  %v7596_v13 = vpop.permute.xlu1 %881 }
 0x411   : > { %v2073_v40 = vpack.c.bf16 %v2065_v10, %v2064_v12  ;;  %8726 = vst [vmem:[#allocation2_spill] sm:$0xff] %v7596_v13 }
 0x413   : > { %5317 = vmatprep.subr.bf16.mxu1 %v2073_v40 }
 0x414   : > { %5318 = vmatpush3.bf16.msra.mxu1 %v2073_v40 }
 0x415   : > { %6297 = vmatprep.subr.msk.bf16.mxu1 %vm1892_vm3, %v2074_v49  ;;  %v7604_v49 = vpop.permute.xlu0 %886 }
 0x416   : > { %8727 = vst [vmem:[#allocation3_spill] sm:$0xff] %v7604_v49 }
 0x418   : > { %5320 = vmatpush3.bf16.msra.mxu1 %v2138_v27 }
 0x419   : > { %6131 = vmatprep.subr.bf16.mxu1 %v8711_v30 }
 0x41b   : > { %5322 = vmatmul.mubr.msk.bf16.vlgmr.msra.gmra.mrb[64].mxu1 %vm1867_vm2, %v6395_v35  ;;  %v7612_v35 = vpop.permute.xlu1 %891 }
 0x41c   : > { %5325 = vmatprep.mubr.msk.bf16.mxu1 %vm1867_vm2, %v6396_v29  ;;  %6133 = vmatpush3.bf16.msra.mxu1 %v6926_v39  ;;  %8728 = vst [vmem:[#allocation4_spill] sm:$0xff] %v7612_v35 }
 0x41d   : > { %6134 = vmatprep.subr.bf16.mxu1 %v8711_v30 }
 0x420   : > { %6136 = vmatpush3.bf16.msra.mxu1 %v6943_v46 }
 0x421   : > { %6137 = vmatprep.subr.bf16.mxu1 %v8711_v30 }
 0x423   : > { %5326 = vmatmul.mubr.msk.bf16.gmra.mrb[68].mxu1 %vm1867_vm2, %v6397_v18  ;;  %v7620_v18 = vpop.permute.xlu0 %896 }
 0x424   : > { %5329 = vmatprep.mubr.msk.bf16.mxu1 %vm1867_vm2, %v6398_v43  ;;  %6139 = vmatpush3.bf16.msra.mxu1 %v6958_v51  ;;  %8729 = vst [vmem:[#allocation5_spill] sm:$0xff] %v7620_v18 }
 0x425   : > { %6140 = vmatprep.subr.bf16.mxu1 %v8711_v30 }
 0x428   : > { %6142 = vmatpush3.bf16.msra.mxu1 %v6974_v57 }
 0x429   : > { %6143 = vmatprep.subr.bf16.mxu1 %v8711_v30 }
 0x42b   : > { %5330 = vmatmul.mubr.msk.bf16.gmra.mrb[72].mxu1 %vm1867_vm2, %v6399_v53  ;;  %v7628_v53 = vpop.permute.xlu1 %901 }
 0x42c   : > { %5333 = vmatprep.mubr.msk.bf16.mxu1 %vm1867_vm2, %v6400_v28  ;;  %6145 = vmatpush3.bf16.msra.mxu1 %v6987_v61  ;;  %8730 = vst [vmem:[#allocation6_spill] sm:$0xff] %v7628_v53 }
 0x42d   : > { %6146 = vmatprep.subr.bf16.mxu1 %v8711_v30 }
 0x430   : > { %6148 = vmatpush3.bf16.msra.mxu1 %v6997_v1 }
 0x431   : > { %6149 = vmatprep.subr.bf16.mxu1 %v8711_v30 }
 0x433   : > { %5334 = vmatmul.mubr.msk.bf16.gmra.mrb[76].mxu1 %vm1867_vm2, %v6401_v31  ;;  %v7636_v31 = vpop.permute.xlu0 %906 }
 0x434   : > { %6151 = vmatpush3.bf16.msra.mxu1 %v7024_v17  ;;  %5446 = vmatprep.mubr.msk.f32.mxu1 %vm6708_vm1, %v8709_v21  ;;  %8731 = vst [vmem:[#allocation7_spill] sm:$0xff] %v7636_v31 }
 0x435   : > { %6152 = vmatprep.subr.bf16.mxu1 %v8711_v30 }
 0x438   : > { %6154 = vmatpush3.bf16.msra.mxu1 %v7036_v20 }
 0x4ee   : > { %v5323_v45 = vpop.f32.mrb[64].mxu1 }
 0x4ef   : > { %v2174_v36 = vpop.f32.mrb[65].mxu1  ;;  %v7569_v50 = vadd.f32 %v5323_v45, %v7564_v52 }
 0x4f0   : > { %v7553_v23 = vadd.f32 %v2174_v36, %v7550_v38  ;;  %v5324_v59 = vpop.f32.mrb[66].mxu1  ;;  %v7644_v36 = vpop.permute.xlu1 %911 }
 0x4f1   : > { %v2177_v42 = vpop.f32.mrb[67].mxu1  ;;  %v7577_v0 = vadd.f32 %v5324_v59, %v7572_v44  ;;  %8732 = vst [vmem:[#allocation8_spill] sm:$0xff] %v7644_v36 }
 0x4f2   : > { %5370 = vmatmul.mubr.f32.vlgmr.msra.gmra.mrb[62].mxu0 %v7553_v23  ;;  %v7561_v58 = vadd.f32 %v2177_v42, %v7556_v48  ;;  %v7652_v42 = vpop.permute.xlu0 %916 }
 0x4f3   : > { %5372 = vmatprep.mubr.msk.f32.mxu0 %vm6708_vm1, %v8709_v21  ;;  %8733 = vst [vmem:[#allocation9_spill] sm:$0xff] %v7652_v42 }
 0x4f6   : > { %v5327_v26 = vpop.f32.mrb[68].mxu1  ;;  %5373 = vmatmul.mubr.f32.gmra.mrb[80].mxu0 %v7561_v58 }
 0x4f7   : > { %v2190_v41 = vpop.f32.mrb[69].mxu1  ;;  %5375 = vmatprep.mubr.msk.f32.mxu0 %vm6708_vm1, %v8709_v21  ;;  %v7601_v10 = vadd.f32 %v5327_v26, %v7596_v13 }
 0x4f8   : > { %v5328_v56 = vpop.f32.mrb[70].mxu1  ;;  %v7585_v47 = vadd.f32 %v2190_v41, %v7580_v2  ;;  %v7660_v41 = vpop.permute.xlu1 %921 }
 0x4f9   : > { %v2193_v60 = vpop.f32.mrb[71].mxu1  ;;  %v7609_v27 = vadd.f32 %v5328_v56, %v7604_v49  ;;  %8734 = vst [vmem:[#allocation10_spill] sm:$0xff] %v7660_v41 }
 0x4fa   : > { %5376 = vmatmul.mubr.f32.gmra.mrb[82].mxu0 %v7569_v50  ;;  %v7593_v22 = vadd.f32 %v2193_v60, %v7588_v62 }
 0x4fb   : > { %5378 = vmatprep.mubr.msk.f32.mxu0 %vm6708_vm1, %v8709_v21 }
 0x4fe   : > { %v5331_v54 = vpop.f32.mrb[72].mxu1  ;;  %5379 = vmatmul.mubr.f32.gmra.mrb[84].mxu0 %v7577_v0 }
 0x4ff   : > { %v2206_v3 = vpop.f32.mrb[73].mxu1  ;;  %5381 = vmatprep.mubr.msk.f32.mxu0 %vm6708_vm1, %v8709_v21  ;;  %v7633_v28 = vadd.f32 %v5331_v54, %v7628_v53 }
 0x500   : > { %v5332_v55 = vpop.f32.mrb[74].mxu1  ;;  %v7617_v29 = vadd.f32 %v2206_v3, %v7612_v35 }
 0x501   : > { %v2209_v7 = vpop.f32.mrb[75].mxu1  ;;  %v7641_v45 = vadd.f32 %v5332_v55, %v7636_v31 }
 0x502   : > { %5382 = vmatmul.mubr.f32.gmra.mrb[86].mxu0 %v7585_v47  ;;  %v7625_v43 = vadd.f32 %v2209_v7, %v7620_v18 }
 0x503   : > { %5384 = vmatprep.mubr.msk.f32.mxu0 %vm6708_vm1, %v8709_v21 }
 0x506   : > { %v5335_v8 = vpop.f32.mrb[76].mxu1  ;;  %5385 = vmatmul.mubr.f32.gmra.mrb[88].mxu0 %v7593_v22 }
 0x507   : > { %v2222_v12 = vpop.f32.mrb[77].mxu1  ;;  %5387 = vmatprep.mubr.msk.f32.mxu0 %vm6708_vm1, %v8709_v21  ;;  %v7665_v56 = vadd.f32 %v5335_v8, %v7660_v41 }
 0x508   : > { %v5336_v34 = vpop.f32.mrb[78].mxu1  ;;  %v7649_v59 = vadd.f32 %v2222_v12, %v7644_v36 }
 0x509   : > { %v2225_v40 = vpop.f32.mrb[79].mxu1 }
 0x50a   : > { %5388 = vmatmul.mubr.f32.gmra.mrb[90].mxu0 %v7601_v10  ;;  %v7657_v26 = vadd.f32 %v2225_v40, %v7652_v42 }
 0x50b   : > { %5390 = vmatprep.mubr.msk.f32.mxu0 %vm6708_vm1, %v8709_v21 }
 0x50e   : > { %5391 = vmatmul.mubr.f32.gmra.mrb[92].mxu0 %v7609_v27 }
 0x50f   : > { %5393 = vmatprep.mubr.msk.f32.mxu0 %vm6708_vm1, %v8709_v21 }
 0x512   : > { %5394 = vmatmul.mubr.f32.gmra.mrb[94].mxu0 %v7617_v29 }
 0x513   : > { %5396 = vmatprep.mubr.msk.f32.mxu0 %vm6708_vm1, %v8709_v21 }
 0x516   : > { %5397 = vmatmul.mubr.f32.gmra.mrb[96].mxu0 %v7625_v43 }
 0x517   : > { %5399 = vmatprep.mubr.msk.f32.mxu0 %vm6708_vm1, %v8709_v21 }
 0x51a   : > { %5400 = vmatmul.mubr.f32.gmra.mrb[98].mxu0 %v7633_v28 }
 0x51b   : > { %5402 = vmatprep.mubr.msk.f32.mxu0 %vm6708_vm1, %v8709_v21 }
 0x51e   : > { %5403 = vmatmul.mubr.f32.gmra.mrb[100].mxu0 %v7641_v45 }
 0x51f   : > { %5405 = vmatprep.mubr.msk.f32.mxu0 %vm6708_vm1, %v8709_v21 }
 0x522   : > { %5406 = vmatmul.mubr.f32.gmra.mrb[102].mxu0 %v7649_v59 }
 0x523   : > { %5408 = vmatprep.mubr.msk.f32.mxu0 %vm6708_vm1, %v8709_v21 }
 0x526   : > { %5409 = vmatmul.mubr.f32.gmra.mrb[104].mxu0 %v7657_v26 }
 0x527   : > { %5411 = vmatprep.mubr.msk.f32.mxu0 %vm6708_vm1, %v8709_v21 }
 0x52a   : > { %5412 = vmatmul.mubr.f32.gmra.mrb[106].mxu0 %v7665_v56 }
 0x5c5   : > { %v2302_v60 = vpop.f32.mrb[62].mxu0 }
 0x5c6   : > { %v7669_v54 = vsub.f32 %v7553_v23, %v2302_v60  ;;  %v5371_v3 = vpop.f32.mrb[63].mxu0 }
 0x5c8   : > { %v2391_v55 = vmul.f32 %v7669_v54, %v7669_v54 }
 0x5c9   : > { %v2307_v7 = vpop.f32.mrb[80].mxu0 }
 0x5ca   : > { %v7674_v12 = vsub.f32 %v7561_v58, %v2307_v7  ;;  %v5374_v34 = vpop.f32.mrb[81].mxu0  ;;  %5447 = vmatmul.mubr.f32.vlgmr.msra.gmra.mrb[62].mxu1 %v2391_v55 }
 0x5cb   : > { %5449 = vmatprep.mubr.msk.f32.mxu1 %vm6708_vm1, %v8709_v21 }
 0x5cc   : > { %v2392_v8 = vmul.f32 %v7674_v12, %v7674_v12 }
 0x5cd   : > { %v2312_v40 = vpop.f32.mrb[82].mxu0 }
 0x5ce   : > { %v7681_v23 = vsub.f32 %v7569_v50, %v2312_v40  ;;  %v5377_v60 = vpop.f32.mrb[83].mxu0  ;;  %5450 = vmatmul.mubr.f32.gmra.mrb[80].mxu1 %v2392_v8 }
 0x5cf   : > { %5452 = vmatprep.mubr.msk.f32.mxu1 %vm6708_vm1, %v8709_v21 }
 0x5d0   : > { %v2393_v58 = vmul.f32 %v7681_v23, %v7681_v23 }
 0x5d1   : > { %v2317_v3 = vpop.f32.mrb[84].mxu0 }
 0x5d2   : > { %v7688_v55 = vsub.f32 %v7577_v0, %v2317_v3  ;;  %v5380_v7 = vpop.f32.mrb[85].mxu0  ;;  %5453 = vmatmul.mubr.f32.gmra.mrb[82].mxu1 %v2393_v58 }
 0x5d3   : > { %5455 = vmatprep.mubr.msk.f32.mxu1 %vm6708_vm1, %v8709_v21 }
 0x5d4   : > { %v2394_v50 = vmul.f32 %v7688_v55, %v7688_v55 }
 0x5d5   : > { %v2322_v34 = vpop.f32.mrb[86].mxu0 }
 0x5d6   : > { %v7695_v8 = vsub.f32 %v7585_v47, %v2322_v34  ;;  %v5383_v40 = vpop.f32.mrb[87].mxu0  ;;  %5456 = vmatmul.mubr.f32.gmra.mrb[84].mxu1 %v2394_v50 }
 0x5d7   : > { %5458 = vmatprep.mubr.msk.f32.mxu1 %vm6708_vm1, %v8709_v21 }
 0x5d8   : > { %v2395_v0 = vmul.f32 %v7695_v8, %v7695_v8 }
 0x5d9   : > { %v2327_v60 = vpop.f32.mrb[88].mxu0 }
 0x5da   : > { %v7702_v58 = vsub.f32 %v7593_v22, %v2327_v60  ;;  %v5386_v3 = vpop.f32.mrb[89].mxu0  ;;  %5459 = vmatmul.mubr.f32.gmra.mrb[86].mxu1 %v2395_v0 }
 0x5db   : > { %5461 = vmatprep.mubr.msk.f32.mxu1 %vm6708_vm1, %v8709_v21 }
 0x5dc   : > { %v2396_v47 = vmul.f32 %v7702_v58, %v7702_v58 }
 0x5dd   : > { %v2332_v7 = vpop.f32.mrb[90].mxu0 }
 0x5de   : > { %v7709_v50 = vsub.f32 %v7601_v10, %v2332_v7  ;;  %v5389_v34 = vpop.f32.mrb[91].mxu0  ;;  %5462 = vmatmul.mubr.f32.gmra.mrb[88].mxu1 %v2396_v47 }
 0x5df   : > { %5464 = vmatprep.mubr.msk.f32.mxu1 %vm6708_vm1, %v8709_v21 }
 0x5e0   : > { %v2397_v22 = vmul.f32 %v7709_v50, %v7709_v50 }
 0x5e1   : > { %v2337_v40 = vpop.f32.mrb[92].mxu0 }
 0x5e2   : > { %v7716_v0 = vsub.f32 %v7609_v27, %v2337_v40  ;;  %v5392_v60 = vpop.f32.mrb[93].mxu0  ;;  %5465 = vmatmul.mubr.f32.gmra.mrb[90].mxu1 %v2397_v22 }
 0x5e3   : > { %5467 = vmatprep.mubr.msk.f32.mxu1 %vm6708_vm1, %v8709_v21 }
 0x5e4   : > { %v2398_v10 = vmul.f32 %v7716_v0, %v7716_v0 }
 0x5e5   : > { %v2342_v3 = vpop.f32.mrb[94].mxu0 }
 0x5e6   : > { %v7723_v47 = vsub.f32 %v7617_v29, %v2342_v3  ;;  %v5395_v7 = vpop.f32.mrb[95].mxu0  ;;  %5468 = vmatmul.mubr.f32.gmra.mrb[92].mxu1 %v2398_v10 }
 0x5e7   : > { %5470 = vmatprep.mubr.msk.f32.mxu1 %vm6708_vm1, %v8709_v21 }
 0x5e8   : > { %v2399_v27 = vmul.f32 %v7723_v47, %v7723_v47 }
 0x5e9   : > { %v2347_v34 = vpop.f32.mrb[96].mxu0 }
 0x5ea   : > { %v7730_v22 = vsub.f32 %v7625_v43, %v2347_v34  ;;  %v5398_v40 = vpop.f32.mrb[97].mxu0  ;;  %5471 = vmatmul.mubr.f32.gmra.mrb[94].mxu1 %v2399_v27 }
 0x5eb   : > { %5473 = vmatprep.mubr.msk.f32.mxu1 %vm6708_vm1, %v8709_v21 }
 0x5ec   : > { %v2400_v29 = vmul.f32 %v7730_v22, %v7730_v22 }
 0x5ed   : > { %v2352_v60 = vpop.f32.mrb[98].mxu0 }
 0x5ee   : > { %v7737_v10 = vsub.f32 %v7633_v28, %v2352_v60  ;;  %v5401_v3 = vpop.f32.mrb[99].mxu0  ;;  %5474 = vmatmul.mubr.f32.gmra.mrb[96].mxu1 %v2400_v29 }
 0x5ef   : > { %5476 = vmatprep.mubr.msk.f32.mxu1 %vm6708_vm1, %v8709_v21 }
 0x5f0   : > { %v2401_v43 = vmul.f32 %v7737_v10, %v7737_v10 }
 0x5f1   : > { %v2357_v7 = vpop.f32.mrb[100].mxu0 }
 0x5f2   : > { %v7744_v27 = vsub.f32 %v7641_v45, %v2357_v7  ;;  %v5404_v34 = vpop.f32.mrb[101].mxu0  ;;  %5477 = vmatmul.mubr.f32.gmra.mrb[98].mxu1 %v2401_v43 }
 0x5f3   : > { %5479 = vmatprep.mubr.msk.f32.mxu1 %vm6708_vm1, %v8709_v21 }
 0x5f4   : > { %v2402_v28 = vmul.f32 %v7744_v27, %v7744_v27 }
 0x5f5   : > { %v2362_v40 = vpop.f32.mrb[102].mxu0 }
 0x5f6   : > { %v7751_v29 = vsub.f32 %v7649_v59, %v2362_v40  ;;  %v5407_v60 = vpop.f32.mrb[103].mxu0  ;;  %5480 = vmatmul.mubr.f32.gmra.mrb[100].mxu1 %v2402_v28 }
 0x5f7   : > { %5482 = vmatprep.mubr.msk.f32.mxu1 %vm6708_vm1, %v8709_v21  ;;  %v6402_v60 = vld [vmem:[%s8700_s10] sm:$0xff]  }
 0x5f8   : > { %v2403_v45 = vmul.f32 %v7751_v29, %v7751_v29  ;;  %5491 = vmatprep.subr.bf16.mxu0 %v6402_v60 }
 0x5f9   : > { %v2367_v3 = vpop.f32.mrb[104].mxu0  ;;  %5492 = vmatpush3.bf16.msra.mxu0 %v6402_v60  ;;  %v6411_v60 = vld [vmem:[%s8702_s12 + $0x8] sm:$0xff]  }
 0x5fa   : > { %v7758_v43 = vsub.f32 %v7657_v26, %v2367_v3  ;;  %v5410_v7 = vpop.f32.mrb[105].mxu0  ;;  %5483 = vmatmul.mubr.f32.gmra.mrb[102].mxu1 %v2403_v45  ;;  %v6404_v45 = vld [vmem:[%s8700_s10 + $0x10] sm:$0xff]   ;;  %v6405_v3 = vld [vmem:[%s8700_s10 + $0x18] sm:$0xff]  }
 0x5fb   : > { %5485 = vmatprep.mubr.msk.f32.mxu1 %vm6708_vm1, %v8709_v21  ;;  %v6406_v7 = vld [vmem:[%s8700_s10 + $0x20] sm:$0xff]  }
 0x5fc   : > { %v2404_v59 = vmul.f32 %v7758_v43, %v7758_v43 }
 0x5fd   : > { %v2372_v34 = vpop.f32.mrb[106].mxu0 }
 0x5fe   : > { %v7765_v28 = vsub.f32 %v7665_v56, %v2372_v34  ;;  %v5413_v40 = vpop.f32.mrb[107].mxu0  ;;  %5486 = vmatmul.mubr.f32.gmra.mrb[104].mxu1 %v2404_v59  ;;  %v6403_v56 = vld [vmem:[%s8700_s10 + $0x8] sm:$0xff]   ;;  %v6408_v34 = vld [vmem:[%s8700_s10 + $0x30] sm:$0xff]  }
 0x5ff   : > { %5488 = vmatprep.mubr.msk.f32.mxu1 %vm6708_vm1, %v8709_v21  ;;  %5493 = vmatprep.subr.bf16.mxu0 %v6403_v56  ;;  %v6407_v59 = vld [vmem:[%s8700_s10 + $0x28] sm:$0xff]   ;;  %v6409_v40 = vld [vmem:[%s8700_s10 + $0x38] sm:$0xff]  }
 0x600   : > { %v2405_v26 = vmul.f32 %v7765_v28, %v7765_v28  ;;  %5494 = vmatpush3.bf16.msra.mxu0 %v6403_v56 }
 0x601   : > { %5495 = vmatprep.subr.bf16.mxu0 %v6404_v45 }
 0x602   : > { %5489 = vmatmul.mubr.f32.gmra.mrb[106].mxu1 %v2405_v26  ;;  %v6410_v26 = vld [vmem:[%s8702_s12] sm:$0xff]  }
 0x603   : > { %5523 = vmatprep.subr.bf16.mxu1 %v6410_v26 }
 0x604   : > { %5496 = vmatpush3.bf16.msra.mxu0 %v6404_v45  ;;  %5524 = vmatpush3.bf16.msra.mxu1 %v6410_v26 }
 0x605   : > { %5497 = vmatprep.subr.bf16.mxu0 %v6405_v3  ;;  %5525 = vmatprep.subr.bf16.mxu1 %v6411_v60 }
 0x608   : > { %5498 = vmatpush3.bf16.msra.mxu0 %v6405_v3  ;;  %5526 = vmatpush3.bf16.msra.mxu1 %v6411_v60 }
 0x609   : > { %5499 = vmatprep.subr.bf16.mxu0 %v6406_v7 }
 0x60c   : > { %5500 = vmatpush3.bf16.msra.mxu0 %v6406_v7 }
 0x60d   : > { %5501 = vmatprep.subr.bf16.mxu0 %v6407_v59 }
 0x610   : > { %5502 = vmatpush3.bf16.msra.mxu0 %v6407_v59 }
 0x611   : > { %5503 = vmatprep.subr.bf16.mxu0 %v6408_v34 }
 0x614   : > { %5504 = vmatpush3.bf16.msra.mxu0 %v6408_v34 }
 0x615   : > { %5505 = vmatprep.subr.bf16.mxu0 %v6409_v40 }
 0x618   : > { %5506 = vmatpush3.bf16.msra.mxu0 %v6409_v40 }
 0x619   : > { %6155 = vmatprep.subr.bf16.mxu0 %v8711_v30 }
 0x69d   : > { %v2472_v56 = vpop.f32.mrb[62].mxu1 }
 0x69e   : > { %v2473_v45 = vadd.f32 1e-05, %v2472_v56  ;;  %v5448_v3 = vpop.f32.mrb[63].mxu1 }
 0x6a0   : > { %6478 = vrsqrt.f32 %v2473_v45 }
 0x6a1   : > { %v2477_v7 = vpop.f32.mrb[80].mxu1 }
 0x6a2   : > { %v2478_v59 = vadd.f32 1e-05, %v2477_v7  ;;  %v5451_v34 = vpop.f32.mrb[81].mxu1  ;;  %v7807_v7 = vld [vmem:[%s8693_s3] ss:$0 sm:$0xff] }
 0x6a4   : > { %6480 = vrsqrt.f32 %v2478_v59 }
 0x6a5   : > { %v2482_v40 = vpop.f32.mrb[82].mxu1 }
 0x6a6   : > { %v2483_v21 = vadd.f32 1e-05, %v2482_v40  ;;  %v5454_v30 = vpop.f32.mrb[83].mxu1 }
 0x6a8   : > { %6482 = vrsqrt.f32 %v2483_v21 }
 0x6a9   : > { %v2487_v41 = vpop.f32.mrb[84].mxu1 }
 0x6aa   : > { %v6479_v42 = vpop.eup %6478  ;;  %v2488_v36 = vadd.f32 1e-05, %v2487_v41  ;;  %v5457_v31 = vpop.f32.mrb[85].mxu1 }
 0x6ab   : > { %v2561_v26 = vmul.f32 %v6479_v42, %v7669_v54 }
 0x6ac   : > { %6484 = vrsqrt.f32 %v2488_v36 }
 0x6ad   : > { %v2492_v60 = vpop.f32.mrb[86].mxu1  ;;  %v2576_v30 = vmul.f32 %v7807_v7, %v2561_v26 }
 0x6ae   : > { %v6481_v53 = vpop.eup %6480  ;;  %v2493_v56 = vadd.f32 1e-05, %v2492_v60  ;;  %v5460_v3 = vpop.f32.mrb[87].mxu1 }
 0x6af   : > { %v2562_v45 = vmul.f32 %v6481_v53, %v7674_v12  ;;  %v7815_v53 = vld [vmem:[%s8694_s4] ss:$0 sm:$0xff] }
 0x6b0   : > { %6486 = vrsqrt.f32 %v2493_v56  ;;  %v2591_v12 = vadd.f32 %v7815_v53, %v2576_v30 }
 0x6b1   : > { %v2497_v21 = vpop.f32.mrb[88].mxu1  ;;  %v2577_v31 = vmul.f32 %v7807_v7, %v2562_v45 }
 0x6b2   : > { %v6483_v41 = vpop.eup %6482  ;;  %v2498_v42 = vadd.f32 1e-05, %v2497_v21  ;;  %v5463_v36 = vpop.f32.mrb[89].mxu1 }
 0x6b3   : > { %v2563_v54 = vmul.f32 %v6483_v41, %v7681_v23  ;;  %v2592_v59 = vadd.f32 %v7815_v53, %v2577_v31 }
 0x6b4   : > { %6488 = vrsqrt.f32 %v2498_v42 }
 0x6b5   : > { %v2502_v34 = vpop.f32.mrb[90].mxu1  ;;  %v2606_v40 = vpack.c.bf16 %v2592_v59, %v2591_v12  ;;  %v2578_v3 = vmul.f32 %v7807_v7, %v2563_v54 }
 0x6b6   : > { %v6485_v26 = vpop.eup %6484  ;;  %v2503_v60 = vadd.f32 1e-05, %v2502_v34  ;;  %v5466_v56 = vpop.f32.mrb[91].mxu1 }
 0x6b7   : > { %v2564_v45 = vmul.f32 %v6485_v26, %v7688_v55  ;;  %5507 = vmatprep.mubr.bf16.mxu0 %v2606_v40  ;;  %v2593_v31 = vadd.f32 %v7815_v53, %v2578_v3 }
 0x6b8   : > { %6490 = vrsqrt.f32 %v2503_v60 }
 0x6b9   : > { %v2579_v23 = vmul.f32 %v7807_v7, %v2564_v45  ;;  %v2507_v21 = vpop.f32.mrb[92].mxu1  ;;  %v8735_v45 = vmov 0.0|0.0  }
 0x6ba   : > { %v6487_v41 = vpop.eup %6486  ;;  %v2508_v36 = vadd.f32 1e-05, %v2507_v21  ;;  %v5469_v30 = vpop.f32.mrb[93].mxu1 }
 0x6bb   : > { %v2594_v42 = vadd.f32 %v7815_v53, %v2579_v23  ;;  %v2565_v12 = vmul.f32 %v6487_v41, %v7695_v8 }
 0x6bc   : > { %6492 = vrsqrt.f32 %v2508_v36 }
 0x6bd   : > { %v2512_v59 = vpop.f32.mrb[94].mxu1  ;;  %v2607_v34 = vpack.c.bf16 %v2594_v42, %v2593_v31  ;;  %v2580_v26 = vmul.f32 %v7807_v7, %v2565_v12 }
 0x6be   : > { %v6489_v54 = vpop.eup %6488  ;;  %v2513_v56 = vadd.f32 1e-05, %v2512_v59  ;;  %v5472_v55 = vpop.f32.mrb[95].mxu1 }
 0x6bf   : > { %5508 = vmatmul.mubr.bf16.vlgmr.msra.gmra.mrb[108].mxu0 %v2607_v34  ;;  %v2566_v40 = vmul.f32 %v6489_v54, %v7702_v58  ;;  %v2595_v41 = vadd.f32 %v7815_v53, %v2580_v26 }
 0x6c0   : > { %6494 = vrsqrt.f32 %v2513_v56  ;;  %6157 = vmatpush3.bf16.msra.mxu0 %v6926_v39 }
 0x6c1   : > { %v2517_v60 = vpop.f32.mrb[96].mxu1  ;;  %v2581_v3 = vmul.f32 %v7807_v7, %v2566_v40  ;;  %6158 = vmatprep.subr.bf16.mxu0 %v8735_v45 }
 0x6c2   : > { %v6491_v8 = vpop.eup %6490  ;;  %v2518_v23 = vadd.f32 1e-05, %v2517_v60  ;;  %v5475_v21 = vpop.f32.mrb[97].mxu1 }
 0x6c3   : > { %v2596_v36 = vadd.f32 %v7815_v53, %v2581_v3  ;;  %v2567_v30 = vmul.f32 %v6491_v8, %v7709_v50 }
 0x6c4   : > { %6496 = vrsqrt.f32 %v2518_v23  ;;  %6160 = vmatpush3.bf16.msra.mxu0 %v6943_v46 }
 0x6c5   : > { %v2522_v58 = vpop.f32.mrb[98].mxu1  ;;  %v2608_v31 = vpack.c.bf16 %v2596_v36, %v2595_v41  ;;  %6161 = vmatprep.subr.bf16.mxu0 %v8735_v45  ;;  %v2582_v54 = vmul.f32 %v7807_v7, %v2567_v30 }
 0x6c6   : > { %v6493_v42 = vpop.eup %6492  ;;  %v2523_v12 = vadd.f32 1e-05, %v2522_v58  ;;  %v5478_v59 = vpop.f32.mrb[99].mxu1 }
 0x6c7   : > { %5511 = vmatprep.mubr.bf16.mxu0 %v2608_v31  ;;  %v2568_v34 = vmul.f32 %v6493_v42, %v7716_v0  ;;  %v2597_v60 = vadd.f32 %v7815_v53, %v2582_v54 }
 0x6c8   : > { %6498 = vrsqrt.f32 %v2523_v12  ;;  %6163 = vmatpush3.bf16.msra.mxu0 %v6958_v51 }
 0x6c9   : > { %v2527_v56 = vpop.f32.mrb[100].mxu1  ;;  %v2583_v50 = vmul.f32 %v7807_v7, %v2568_v34  ;;  %6164 = vmatprep.subr.bf16.mxu0 %v8735_v45 }
 0x6ca   : > { %v6495_v55 = vpop.eup %6494  ;;  %v2528_v40 = vadd.f32 1e-05, %v2527_v56  ;;  %v5481_v26 = vpop.f32.mrb[101].mxu1 }
 0x6cb   : > { %v2598_v3 = vadd.f32 %v7815_v53, %v2583_v50  ;;  %v2569_v8 = vmul.f32 %v6495_v55, %v7723_v47 }
 0x6cc   : > { %6500 = vrsqrt.f32 %v2528_v40  ;;  %6166 = vmatpush3.bf16.msra.mxu0 %v6974_v57 }
 0x6cd   : > { %v2532_v0 = vpop.f32.mrb[102].mxu1  ;;  %v2609_v23 = vpack.c.bf16 %v2598_v3, %v2597_v60  ;;  %6167 = vmatprep.subr.bf16.mxu0 %v8735_v45  ;;  %v2584_v58 = vmul.f32 %v7807_v7, %v2569_v8 }
 0x6ce   : > { %v6497_v21 = vpop.eup %6496  ;;  %v2533_v41 = vadd.f32 1e-05, %v2532_v0  ;;  %v5484_v36 = vpop.f32.mrb[103].mxu1 }
 0x6cf   : > { %5512 = vmatmul.mubr.bf16.gmra.mrb[112].mxu0 %v2609_v23  ;;  %v2570_v30 = vmul.f32 %v6497_v21, %v7730_v22  ;;  %v2599_v34 = vadd.f32 %v7815_v53, %v2584_v58 }
 0x6d0   : > { %6502 = vrsqrt.f32 %v2533_v41  ;;  %6169 = vmatpush3.bf16.msra.mxu0 %v6987_v61 }
 0x6d1   : > { %v2537_v31 = vpop.f32.mrb[104].mxu1  ;;  %v2585_v47 = vmul.f32 %v7807_v7, %v2570_v30  ;;  %6170 = vmatprep.subr.bf16.mxu0 %v8735_v45 }
 0x6d2   : > { %v6499_v42 = vpop.eup %6498  ;;  %v2538_v12 = vadd.f32 1e-05, %v2537_v31  ;;  %v5487_v59 = vpop.f32.mrb[105].mxu1 }
 0x6d3   : > { %v2600_v54 = vadd.f32 %v7815_v53, %v2585_v47  ;;  %v2571_v56 = vmul.f32 %v6499_v42, %v7737_v10 }
 0x6d4   : > { %6504 = vrsqrt.f32 %v2538_v12  ;;  %6172 = vmatpush3.bf16.msra.mxu0 %v6997_v1 }
 0x6d5   : > { %v2542_v22 = vpop.f32.mrb[106].mxu1  ;;  %v2610_v50 = vpack.c.bf16 %v2600_v54, %v2599_v34  ;;  %6173 = vmatprep.subr.bf16.mxu0 %v8735_v45  ;;  %v2586_v3 = vmul.f32 %v7807_v7, %v2571_v56  ;;  %v6412_v56 = vld [vmem:[%s8702_s12 + $0x10] sm:$0xff]  }
 0x6d6   : > { %v6501_v55 = vpop.eup %6500  ;;  %v2543_v40 = vadd.f32 1e-05, %v2542_v22  ;;  %v5490_v26 = vpop.f32.mrb[107].mxu1  ;;  %5527 = vmatprep.subr.bf16.mxu1 %v6412_v56  ;;  %v6414_v22 = vld [vmem:[%s8702_s12 + $0x20] sm:$0xff]  }
 0x6d7   : > { %5515 = vmatprep.mubr.bf16.mxu0 %v2610_v50  ;;  %v2572_v60 = vmul.f32 %v6501_v55, %v7744_v27  ;;  %v2601_v0 = vadd.f32 %v7815_v53, %v2586_v3  ;;  %5528 = vmatpush3.bf16.msra.mxu1 %v6412_v56  ;;  %v6415_v50 = vld [vmem:[%s8702_s12 + $0x28] sm:$0xff]   ;;  %v6416_v55 = vld [vmem:[%s8702_s12 + $0x30] sm:$0xff]   ;;  %v7896_v26 = vld [vmem:[%s8701_s11] ss:$0 sm:$0xff] }
 0x6d8   : > { %6506 = vrsqrt.f32 %v2543_v40  ;;  %6175 = vmatpush3.bf16.msra.mxu0 %v7024_v17  ;;  %v6417_v40 = vld [vmem:[%s8702_s12 + $0x38] sm:$0xff]  }
 0x6d9   : > { %v2587_v10 = vmul.f32 %v7807_v7, %v2572_v60  ;;  %6176 = vmatprep.subr.bf16.mxu0 %v8735_v45 }
 0x6da   : > { %v6503_v8 = vpop.eup %6502 }
 0x6db   : > { %v2602_v23 = vadd.f32 %v7815_v53, %v2587_v10  ;;  %v2573_v21 = vmul.f32 %v6503_v8, %v7751_v29 }
 0x6dc   : > { %6178 = vmatpush3.bf16.msra.mxu0 %v7036_v20 }
 0x6dd   : > { %v2611_v41 = vpack.c.bf16 %v2602_v23, %v2601_v0  ;;  %v2588_v30 = vmul.f32 %v7807_v7, %v2573_v21 }
 0x6de   : > { %v6505_v27 = vpop.eup %6504 }
 0x6df   : > { %5516 = vmatmul.mubr.bf16.gmra.mrb[116].mxu0 %v2611_v41  ;;  %v2574_v36 = vmul.f32 %v6505_v27, %v7758_v43  ;;  %v2603_v47 = vadd.f32 %v7815_v53, %v2588_v30  ;;  %v8736_v43 = vmov 0.0  }
 0x6e1   : > { %v2589_v58 = vmul.f32 %v7807_v7, %v2574_v36 }
 0x6e2   : > { %v6507_v31 = vpop.eup %6506 }
 0x6e3   : > { %v2604_v42 = vadd.f32 %v7815_v53, %v2589_v58  ;;  %v2575_v12 = vmul.f32 %v6507_v31, %v7765_v28  ;;  %v6413_v28 = vld [vmem:[%s8702_s12 + $0x18] sm:$0xff]  }
 0x6e4   : > { %5529 = vmatprep.subr.bf16.mxu1 %v6413_v28 }
 0x6e5   : > { %v2612_v59 = vpack.c.bf16 %v2604_v42, %v2603_v47  ;;  %v2590_v29 = vmul.f32 %v7807_v7, %v2575_v12  ;;  %5530 = vmatpush3.bf16.msra.mxu1 %v6413_v28 }
 0x6e6   : > { %5531 = vmatprep.subr.bf16.mxu1 %v6414_v22 }
 0x6e7   : > { %5519 = vmatprep.mubr.bf16.mxu0 %v2612_v59  ;;  %v2605_v34 = vadd.f32 %v7815_v53, %v2590_v29 }
 0x6e9   : > { %v2613_v54 = vpack.c.bf16 %v2605_v34, %v2605_v34  ;;  %5532 = vmatpush3.bf16.msra.mxu1 %v6414_v22 }
 0x6ea   : > { %5533 = vmatprep.subr.bf16.mxu1 %v6415_v50 }
 0x6eb   : > { %5520 = vmatmul.mubr.bf16.gmra.mrb[120].mxu0 %v2613_v54 }
 0x6ec   : > { %5587 = vmatprep.mubr.msk.f32.mxu0 %vm6708_vm1, %v8736_v43 }
 0x6ed   : > { %5534 = vmatpush3.bf16.msra.mxu1 %v6415_v50 }
 0x6ee   : > { %5535 = vmatprep.subr.bf16.mxu1 %v6416_v55 }
 0x6f1   : > { %5536 = vmatpush3.bf16.msra.mxu1 %v6416_v55 }
 0x6f2   : > { %5537 = vmatprep.subr.bf16.mxu1 %v6417_v40 }
 0x6f5   : > { %5538 = vmatpush3.bf16.msra.mxu1 %v6417_v40 }
 0x6f6   : > { %6179 = vmatprep.subr.bf16.mxu1 %v8735_v45 }
 0x792   : > { %v5509_v60 = vpop.f32.mrb[108].mxu0 }
 0x793   : > { %v2705_v3 = vadd.f32 %v5509_v60, %v7896_v26  ;;  %v2696_v10 = vpop.f32.mrb[109].mxu0 }
 0x794   : > { %v2697_v8 = vadd.f32 %v7896_v26, %v2696_v10  ;;  %v5510_v0 = vpop.f32.mrb[110].mxu0 }
 0x795   : > { %v2775_v23 = vmul.f32 0.70710677, %v2705_v3  ;;  %v2708_v21 = vadd.f32 %v5510_v0, %v7896_v26  ;;  %v2699_v41 = vpop.f32.mrb[111].mxu0  ;;  %v2760_v28 = vmul.f32 0.5, %v2705_v3 }
 0x796   : > { %v2773_v27 = vmul.f32 0.70710677, %v2697_v8  ;;  %v2700_v36 = vadd.f32 %v7896_v26, %v2699_v41  ;;  %v2758_v60 = vmul.f32 0.5, %v2697_v8 }
 0x797   : > { %6508 = verf.f32 %v2775_v23  ;;  %v2776_v30 = vmul.f32 0.70710677, %v2708_v21  ;;  %v2761_v22 = vmul.f32 0.5, %v2708_v21 }
 0x798   : > { %6510 = verf.f32 %v2773_v27  ;;  %v2774_v58 = vmul.f32 0.70710677, %v2700_v36  ;;  %v2759_v10 = vmul.f32 0.5, %v2700_v36 }
 0x799   : > { %6512 = verf.f32 %v2776_v30 }
 0x79a   : > { %6514 = verf.f32 %v2774_v58 }
 0x7a1   : > { %v6509_v31 = vpop.eup %6508 }
 0x7a2   : > { %v6511_v47 = vpop.eup %6510  ;;  %v2805_v42 = vadd.f32 1.0, %v6509_v31  ;;  %v5513_v12 = vpop.f32.mrb[112].mxu0 }
 0x7a3   : > { %v6513_v59 = vpop.eup %6512  ;;  %v2803_v29 = vadd.f32 1.0, %v6511_v47  ;;  %v2721_v34 = vadd.f32 %v5513_v12, %v7896_v26  ;;  %v2712_v54 = vpop.f32.mrb[113].mxu0 }
 0x7a4   : > { %v6515_v56 = vpop.eup %6514  ;;  %v2806_v50 = vadd.f32 1.0, %v6513_v59  ;;  %v2713_v55 = vadd.f32 %v7896_v26, %v2712_v54  ;;  %v5514_v40 = vpop.f32.mrb[114].mxu0  ;;  %v2820_v27 = vmul.f32 %v2805_v42, %v2760_v28 }
 0x7a5   : > { %v2804_v0 = vadd.f32 1.0, %v6515_v56  ;;  %v2779_v23 = vmul.f32 0.70710677, %v2721_v34  ;;  %v2715_v41 = vpop.f32.mrb[115].mxu0  ;;  %v2724_v31 = vadd.f32 %v5514_v40, %v7896_v26  ;;  %v2818_v47 = vmul.f32 %v2803_v29, %v2758_v60 }
 0x7a6   : > { %v2821_v30 = vmul.f32 %v2806_v50, %v2761_v22  ;;  %v2777_v58 = vmul.f32 0.70710677, %v2713_v55  ;;  %v2716_v3 = vadd.f32 %v7896_v26, %v2715_v41  ;;  %v2764_v50 = vmul.f32 0.5, %v2721_v34 }
 0x7a7   : > { %v2819_v12 = vmul.f32 %v2804_v0, %v2759_v10  ;;  %6516 = verf.f32 %v2779_v23  ;;  %v2780_v59 = vmul.f32 0.70710677, %v2724_v31  ;;  %v2762_v0 = vmul.f32 0.5, %v2713_v55 }
 0x7a8   : > { %v2834_v21 = vpack.c.bf16 %v2821_v30, %v2820_v27  ;;  %6518 = verf.f32 %v2777_v58  ;;  %v2778_v54 = vmul.f32 0.70710677, %v2716_v3  ;;  %v2765_v23 = vmul.f32 0.5, %v2724_v31 }
 0x7a9   : > { %v2833_v18 = vpack.c.bf16 %v2819_v12, %v2818_v47  ;;  %6520 = verf.f32 %v2780_v59  ;;  %v2763_v58 = vmul.f32 0.5, %v2716_v3 }
 0x7aa   : > { %6522 = verf.f32 %v2778_v54 }
 0x7ab   : > { %5539 = vmatprep.mubr.bf16.mxu1 %v2833_v18 }
 0x7ac   : > { %5540 = vmatmul.mubr.bf16.vlgmr.msra.gmra.mrb[108].mxu1 %v2834_v21 }
 0x7ad   : > { %6181 = vmatpush3.bf16.msra.mxu1 %v6926_v39 }
 0x7ae   : > { %6182 = vmatprep.subr.bf16.mxu1 %v8735_v45 }
 0x7b1   : > { %v6517_v8 = vpop.eup %6516  ;;  %6184 = vmatpush3.bf16.msra.mxu1 %v6943_v46 }
 0x7b2   : > { %v6519_v36 = vpop.eup %6518  ;;  %v5517_v42 = vpop.f32.mrb[116].mxu0  ;;  %6185 = vmatprep.subr.bf16.mxu1 %v8735_v45  ;;  %v2809_v29 = vadd.f32 1.0, %v6517_v8 }
 0x7b3   : > { %v2737_v56 = vadd.f32 %v5517_v42, %v7896_v26  ;;  %v2728_v28 = vpop.f32.mrb[117].mxu0  ;;  %v6521_v22 = vpop.eup %6520  ;;  %v2807_v40 = vadd.f32 1.0, %v6519_v36 }
 0x7b4   : > { %v2729_v18 = vadd.f32 %v7896_v26, %v2728_v28  ;;  %v5518_v60 = vpop.f32.mrb[118].mxu0  ;;  %v6523_v10 = vpop.eup %6522  ;;  %v2810_v41 = vadd.f32 1.0, %v6521_v22  ;;  %v2824_v34 = vmul.f32 %v2809_v29, %v2764_v50 }
 0x7b5   : > { %v2783_v27 = vmul.f32 0.70710677, %v2737_v56  ;;  %v2731_v30 = vpop.f32.mrb[119].mxu0  ;;  %6187 = vmatpush3.bf16.msra.mxu1 %v6958_v51  ;;  %v2808_v47 = vadd.f32 1.0, %v6523_v10  ;;  %v2740_v21 = vadd.f32 %v5518_v60, %v7896_v26  ;;  %v2822_v8 = vmul.f32 %v2807_v40, %v2762_v0 }
 0x7b6   : > { %v2781_v12 = vmul.f32 0.70710677, %v2729_v18  ;;  %6188 = vmatprep.subr.bf16.mxu1 %v8735_v45  ;;  %v2825_v59 = vmul.f32 %v2810_v41, %v2765_v23  ;;  %v2732_v54 = vadd.f32 %v7896_v26, %v2731_v30 }
 0x7b7   : > { %6524 = verf.f32 %v2783_v27  ;;  %v2823_v55 = vmul.f32 %v2808_v47, %v2763_v58  ;;  %v2784_v31 = vmul.f32 0.70710677, %v2740_v21 }
 0x7b8   : > { %6526 = verf.f32 %v2781_v12  ;;  %v2782_v36 = vmul.f32 0.70710677, %v2732_v54  ;;  %v2836_v42 = vpack.c.bf16 %v2825_v59, %v2824_v34  ;;  %v2768_v59 = vmul.f32 0.5, %v2737_v56 }
 0x7b9   : > { %6190 = vmatpush3.bf16.msra.mxu1 %v6974_v57  ;;  %6528 = verf.f32 %v2784_v31  ;;  %v2835_v3 = vpack.c.bf16 %v2823_v55, %v2822_v8  ;;  %v2769_v8 = vmul.f32 0.5, %v2740_v21  ;;  %v2766_v31 = vmul.f32 0.5, %v2729_v18 }
 0x7ba   : > { %6191 = vmatprep.subr.bf16.mxu1 %v8735_v45  ;;  %6530 = verf.f32 %v2782_v36  ;;  %v2767_v36 = vmul.f32 0.5, %v2732_v54 }
 0x7bb   : > { %5543 = vmatprep.mubr.bf16.mxu1 %v2835_v3 }
 0x7bc   : > { %5544 = vmatmul.mubr.bf16.gmra.mrb[112].mxu1 %v2836_v42 }
 0x7bd   : > { %6193 = vmatpush3.bf16.msra.mxu1 %v6987_v61 }
 0x7be   : > { %v5521_v29 = vpop.f32.mrb[120].mxu0  ;;  %6194 = vmatprep.subr.bf16.mxu1 %v8735_v45 }
 0x7bf   : > { %v2753_v28 = vadd.f32 %v5521_v29, %v7896_v26  ;;  %v2744_v22 = vpop.f32.mrb[121].mxu0 }
 0x7c0   : > { %v2745_v50 = vadd.f32 %v7896_v26, %v2744_v22  ;;  %v5522_v40 = vpop.f32.mrb[122].mxu0 }
 0x7c1   : > { %v6525_v60 = vpop.eup %6524  ;;  %v2787_v10 = vmul.f32 0.70710677, %v2753_v28  ;;  %v2747_v0 = vpop.f32.mrb[123].mxu0  ;;  %6196 = vmatpush3.bf16.msra.mxu1 %v6997_v1 }
 0x7c2   : > { %v6527_v23 = vpop.eup %6526  ;;  %v2785_v41 = vmul.f32 0.70710677, %v2745_v50  ;;  %v2748_v27 = vadd.f32 %v7896_v26, %v2747_v0  ;;  %v2813_v30 = vadd.f32 1.0, %v6525_v60  ;;  %6197 = vmatprep.subr.bf16.mxu1 %v8735_v45  ;;  %v2772_v0 = vmul.f32 0.5, %v2753_v28 }
 0x7c3   : > { %6532 = verf.f32 %v2787_v10  ;;  %v6529_v58 = vpop.eup %6528  ;;  %v2811_v47 = vadd.f32 1.0, %v6527_v23  ;;  %v2770_v23 = vmul.f32 0.5, %v2745_v50 }
 0x7c4   : > { %6534 = verf.f32 %v2785_v41  ;;  %v2786_v12 = vmul.f32 0.70710677, %v2748_v27  ;;  %v6531_v34 = vpop.eup %6530  ;;  %v2814_v55 = vadd.f32 1.0, %v6529_v58  ;;  %v2828_v26 = vmul.f32 %v2813_v30, %v2768_v59 }
 0x7c5   : > { %v2812_v42 = vadd.f32 1.0, %v6531_v34  ;;  %6199 = vmatpush3.bf16.msra.mxu1 %v7024_v17  ;;  %v2826_v29 = vmul.f32 %v2811_v47, %v2766_v31  ;;  %v2771_v41 = vmul.f32 0.5, %v2748_v27 }
 0x7c6   : > { %6536 = verf.f32 %v2786_v12  ;;  %v2829_v3 = vmul.f32 %v2814_v55, %v2769_v8  ;;  %6200 = vmatprep.subr.bf16.mxu1 %v8735_v45  ;;  %v4512_v8 = vld [vmem:[%s8703_s13] ss:$0 sm:$0xff] }
 0x7c7   : > { %v2827_v22 = vmul.f32 %v2812_v42, %v2767_v36 }
 0x7c8   : > { %v2838_v40 = vpack.c.bf16 %v2829_v3, %v2828_v26 }
 0x7c9   : > { %v2837_v60 = vpack.c.bf16 %v2827_v22, %v2826_v29  ;;  %6202 = vmatpush3.bf16.msra.mxu1 %v7036_v20 }
 0x7cb   : > { %5547 = vmatprep.mubr.bf16.mxu1 %v2837_v60 }
 0x7cc   : > { %5548 = vmatmul.mubr.bf16.gmra.mrb[116].mxu1 %v2838_v40 }
 0x7cd   : > { %v6533_v56 = vpop.eup %6532 }
 0x7ce   : > { %v6535_v21 = vpop.eup %6534  ;;  %v2817_v18 = vadd.f32 1.0, %v6533_v56 }
 0x7cf   : > { %v2815_v54 = vadd.f32 1.0, %v6535_v21 }
 0x7d0   : > { %v6537_v10 = vpop.eup %6536  ;;  %v2832_v58 = vmul.f32 %v2817_v18, %v2772_v0 }
 0x7d1   : > { %v2816_v30 = vadd.f32 1.0, %v6537_v10  ;;  %v2830_v12 = vmul.f32 %v2815_v54, %v2770_v23 }
 0x7d2   : > { %v2840_v59 = vpack.c.bf16 %v2832_v58, %v2832_v58 }
 0x7d3   : > { %v2831_v34 = vmul.f32 %v2816_v30, %v2771_v41 }
 0x7d5   : > { %v2839_v47 = vpack.c.bf16 %v2831_v34, %v2830_v12 }
 0x7d7   : > { %5551 = vmatprep.mubr.bf16.mxu1 %v2839_v47 }
 0x7d8   : > { %5552 = vmatmul.mubr.bf16.gmra.mrb[120].mxu1 %v2840_v59 }
 0x7d9   : > { %5664 = vmatprep.mubr.msk.f32.mxu1 %vm6708_vm1, %v8736_v43 }
 0x87f   : > { %v5541_v55 = vpop.f32.mrb[108].mxu1 }
 0x880   : > { %v2923_v31 = vpop.f32.mrb[109].mxu1  ;;  %v7937_v42 = vadd.f32 %v5541_v55, %v4512_v8 }
 0x881   : > { %v2924_v28 = vadd.f32 %v4512_v8, %v2923_v31  ;;  %v5542_v50 = vpop.f32.mrb[110].mxu1 }
 0x882   : > { %v2926_v27 = vpop.f32.mrb[111].mxu1  ;;  %v7942_v26 = vadd.f32 %v5542_v50, %v4512_v8 }
 0x883   : > { %5588 = vmatmul.mubr.f32.vlgmr.msra.gmra.mrb[124].mxu0 %v2924_v28  ;;  %v2927_v36 = vadd.f32 %v4512_v8, %v2926_v27 }
 0x884   : > { %5590 = vmatprep.mubr.msk.f32.mxu0 %vm6708_vm1, %v8736_v43 }
 0x887   : > { %5591 = vmatmul.mubr.f32.gmra.mrb[126].mxu0 %v2927_v36 }
 0x888   : > { %5593 = vmatprep.mubr.msk.f32.mxu0 %vm6708_vm1, %v8736_v43 }
 0x88b   : > { %5594 = vmatmul.mubr.f32.gmra.mrb[128].mxu0 %v7937_v42 }
 0x88c   : > { %5596 = vmatprep.mubr.msk.f32.mxu0 %vm6708_vm1, %v8736_v43 }
 0x88f   : > { %5597 = vmatmul.mubr.f32.gmra.mrb[130].mxu0 %v7942_v26  ;;  %v5545_v3 = vpop.f32.mrb[112].mxu1 }
 0x890   : > { %5599 = vmatprep.mubr.msk.f32.mxu0 %vm6708_vm1, %v8736_v43  ;;  %v2939_v29 = vpop.f32.mrb[113].mxu1  ;;  %v7957_v21 = vadd.f32 %v5545_v3, %v4512_v8  ;;  %v6660_v3 = vld [vmem:[%s8696_s6] sm:$0xff]  }
 0x891   : > { %v7947_v22 = vadd.f32 %v4512_v8, %v2939_v29  ;;  %v5546_v40 = vpop.f32.mrb[114].mxu1 }
 0x892   : > { %v2942_v60 = vpop.f32.mrb[115].mxu1  ;;  %v7962_v18 = vadd.f32 %v5546_v40, %v4512_v8 }
 0x893   : > { %5600 = vmatmul.mubr.f32.gmra.mrb[132].mxu0 %v7947_v22  ;;  %v7952_v56 = vadd.f32 %v4512_v8, %v2942_v60 }
 0x894   : > { %5602 = vmatprep.mubr.msk.f32.mxu0 %vm6708_vm1, %v8736_v43 }
 0x897   : > { %5603 = vmatmul.mubr.f32.gmra.mrb[134].mxu0 %v7952_v56 }
 0x898   : > { %5605 = vmatprep.mubr.msk.f32.mxu0 %vm6708_vm1, %v8736_v43 }
 0x89b   : > { %5606 = vmatmul.mubr.f32.gmra.mrb[136].mxu0 %v7957_v21 }
 0x89c   : > { %5608 = vmatprep.mubr.msk.f32.mxu0 %vm6708_vm1, %v8736_v43 }
 0x89f   : > { %v5549_v54 = vpop.f32.mrb[116].mxu1  ;;  %5609 = vmatmul.mubr.f32.gmra.mrb[138].mxu0 %v7962_v18 }
 0x8a0   : > { %v2955_v10 = vpop.f32.mrb[117].mxu1  ;;  %5611 = vmatprep.mubr.msk.f32.mxu0 %vm6708_vm1, %v8736_v43  ;;  %v7977_v58 = vadd.f32 %v5549_v54, %v4512_v8 }
 0x8a1   : > { %v7967_v0 = vadd.f32 %v4512_v8, %v2955_v10  ;;  %v5550_v23 = vpop.f32.mrb[118].mxu1 }
 0x8a2   : > { %v2958_v41 = vpop.f32.mrb[119].mxu1  ;;  %v7982_v59 = vadd.f32 %v5550_v23, %v4512_v8 }
 0x8a3   : > { %5612 = vmatmul.mubr.f32.gmra.mrb[140].mxu0 %v7967_v0  ;;  %v7972_v30 = vadd.f32 %v4512_v8, %v2958_v41 }
 0x8a4   : > { %5614 = vmatprep.mubr.msk.f32.mxu0 %vm6708_vm1, %v8736_v43 }
 0x8a7   : > { %5615 = vmatmul.mubr.f32.gmra.mrb[142].mxu0 %v7972_v30 }
 0x8a8   : > { %5617 = vmatprep.mubr.msk.f32.mxu0 %vm6708_vm1, %v8736_v43 }
 0x8ab   : > { %v5553_v12 = vpop.f32.mrb[120].mxu1  ;;  %5618 = vmatmul.mubr.f32.gmra.mrb[144].mxu0 %v7977_v58 }
 0x8ac   : > { %v2971_v34 = vpop.f32.mrb[121].mxu1  ;;  %5620 = vmatprep.mubr.msk.f32.mxu0 %vm6708_vm1, %v8736_v43  ;;  %v7997_v27 = vadd.f32 %v5553_v12, %v4512_v8 }
 0x8ad   : > { %v5554_v47 = vpop.f32.mrb[122].mxu1  ;;  %v7987_v31 = vadd.f32 %v4512_v8, %v2971_v34 }
 0x8ae   : > { %v2974_v55 = vpop.f32.mrb[123].mxu1 }
 0x8af   : > { %5621 = vmatmul.mubr.f32.gmra.mrb[146].mxu0 %v7982_v59  ;;  %v7992_v50 = vadd.f32 %v4512_v8, %v2974_v55 }
 0x8b0   : > { %5623 = vmatprep.mubr.msk.f32.mxu0 %vm6708_vm1, %v8736_v43 }
 0x8b3   : > { %5624 = vmatmul.mubr.f32.gmra.mrb[148].mxu0 %v7987_v31 }
 0x8b4   : > { %5626 = vmatprep.mubr.msk.f32.mxu0 %vm6708_vm1, %v8736_v43 }
 0x8b7   : > { %5627 = vmatmul.mubr.f32.gmra.mrb[150].mxu0 %v7992_v50 }
 0x8b8   : > { %5629 = vmatprep.mubr.msk.f32.mxu0 %vm6708_vm1, %v8736_v43 }
 0x8bb   : > { %5630 = vmatmul.mubr.f32.gmra.mrb[152].mxu0 %v7997_v27 }
 0x8bc   : > { %5725 = vmatprep.mubr.msk.bf16.mxu0 %vm1867_vm2, %v6660_v3 }
 0x956   : > { %v3051_v29 = vpop.f32.mrb[124].mxu0 }
 0x957   : > { %v8004_v40 = vsub.f32 %v2924_v28, %v3051_v29  ;;  %v5589_v60 = vpop.f32.mrb[125].mxu0 }
 0x959   : > { %v3140_v54 = vmul.f32 %v8004_v40, %v8004_v40 }
 0x95a   : > { %v3056_v10 = vpop.f32.mrb[126].mxu0 }
 0x95b   : > { %v8008_v23 = vsub.f32 %v2927_v36, %v3056_v10  ;;  %v5592_v8 = vpop.f32.mrb[127].mxu0  ;;  %5665 = vmatmul.mubr.f32.vlgmr.msra.gmra.mrb[124].mxu1 %v3140_v54 }
 0x95c   : > { %5667 = vmatprep.mubr.msk.f32.mxu1 %vm6708_vm1, %v8736_v43 }
 0x95d   : > { %v3141_v41 = vmul.f32 %v8008_v23, %v8008_v23 }
 0x95e   : > { %v3061_v12 = vpop.f32.mrb[128].mxu0 }
 0x95f   : > { %v8015_v34 = vsub.f32 %v7937_v42, %v3061_v12  ;;  %v5595_v28 = vpop.f32.mrb[129].mxu0  ;;  %5668 = vmatmul.mubr.f32.gmra.mrb[126].mxu1 %v3141_v41 }
 0x960   : > { %5670 = vmatprep.mubr.msk.f32.mxu1 %vm6708_vm1, %v8736_v43 }
 0x961   : > { %v3142_v36 = vmul.f32 %v8015_v34, %v8015_v34 }
 0x962   : > { %v3066_v47 = vpop.f32.mrb[130].mxu0 }
 0x963   : > { %v8022_v55 = vsub.f32 %v7942_v26, %v3066_v47  ;;  %v5598_v3 = vpop.f32.mrb[131].mxu0  ;;  %5671 = vmatmul.mubr.f32.gmra.mrb[128].mxu1 %v3142_v36 }
 0x964   : > { %5673 = vmatprep.mubr.msk.f32.mxu1 %vm6708_vm1, %v8736_v43 }
 0x965   : > { %v3143_v42 = vmul.f32 %v8022_v55, %v8022_v55 }
 0x966   : > { %v3071_v29 = vpop.f32.mrb[132].mxu0 }
 0x967   : > { %5674 = vmatmul.mubr.f32.gmra.mrb[130].mxu1 %v3143_v42  ;;  %v8029_v60 = vsub.f32 %v7947_v22, %v3071_v29  ;;  %v5601_v54 = vpop.f32.mrb[133].mxu0 }
 0x968   : > { %5676 = vmatprep.mubr.msk.f32.mxu1 %vm6708_vm1, %v8736_v43 }
 0x969   : > { %v3144_v26 = vmul.f32 %v8029_v60, %v8029_v60 }
 0x96a   : > { %v3076_v10 = vpop.f32.mrb[134].mxu0 }
 0x96b   : > { %v8036_v8 = vsub.f32 %v7952_v56, %v3076_v10  ;;  %v5604_v41 = vpop.f32.mrb[135].mxu0  ;;  %5677 = vmatmul.mubr.f32.gmra.mrb[132].mxu1 %v3144_v26 }
 0x96c   : > { %5679 = vmatprep.mubr.msk.f32.mxu1 %vm6708_vm1, %v8736_v43 }
 0x96d   : > { %v3145_v22 = vmul.f32 %v8036_v8, %v8036_v8 }
 0x96e   : > { %v3081_v12 = vpop.f32.mrb[136].mxu0 }
 0x96f   : > { %v8043_v28 = vsub.f32 %v7957_v21, %v3081_v12  ;;  %v5607_v36 = vpop.f32.mrb[137].mxu0  ;;  %5680 = vmatmul.mubr.f32.gmra.mrb[134].mxu1 %v3145_v22 }
 0x970   : > { %5682 = vmatprep.mubr.msk.f32.mxu1 %vm6708_vm1, %v8736_v43 }
 0x971   : > { %v3146_v56 = vmul.f32 %v8043_v28, %v8043_v28 }
 0x972   : > { %v3086_v47 = vpop.f32.mrb[138].mxu0 }
 0x973   : > { %v8050_v3 = vsub.f32 %v7962_v18, %v3086_v47  ;;  %v5610_v42 = vpop.f32.mrb[139].mxu0  ;;  %5683 = vmatmul.mubr.f32.gmra.mrb[136].mxu1 %v3146_v56 }
 0x974   : > { %5685 = vmatprep.mubr.msk.f32.mxu1 %vm6708_vm1, %v8736_v43 }
 0x975   : > { %v3147_v21 = vmul.f32 %v8050_v3, %v8050_v3 }
 0x976   : > { %v3091_v29 = vpop.f32.mrb[140].mxu0 }
 0x977   : > { %v8057_v54 = vsub.f32 %v7967_v0, %v3091_v29  ;;  %v5613_v26 = vpop.f32.mrb[141].mxu0  ;;  %5686 = vmatmul.mubr.f32.gmra.mrb[138].mxu1 %v3147_v21 }
 0x978   : > { %5688 = vmatprep.mubr.msk.f32.mxu1 %vm6708_vm1, %v8736_v43 }
 0x979   : > { %v3148_v18 = vmul.f32 %v8057_v54, %v8057_v54 }
 0x97a   : > { %v3096_v10 = vpop.f32.mrb[142].mxu0 }
 0x97b   : > { %v8064_v41 = vsub.f32 %v7972_v30, %v3096_v10  ;;  %v5616_v22 = vpop.f32.mrb[143].mxu0  ;;  %5689 = vmatmul.mubr.f32.gmra.mrb[140].mxu1 %v3148_v18 }
 0x97c   : > { %5691 = vmatprep.mubr.msk.f32.mxu1 %vm6708_vm1, %v8736_v43 }
 0x97d   : > { %v3149_v0 = vmul.f32 %v8064_v41, %v8064_v41 }
 0x97e   : > { %v3101_v12 = vpop.f32.mrb[144].mxu0 }
 0x97f   : > { %v8071_v36 = vsub.f32 %v7977_v58, %v3101_v12  ;;  %v5619_v56 = vpop.f32.mrb[145].mxu0  ;;  %5692 = vmatmul.mubr.f32.gmra.mrb[142].mxu1 %v3149_v0 }
 0x980   : > { %5694 = vmatprep.mubr.msk.f32.mxu1 %vm6708_vm1, %v8736_v43 }
 0x981   : > { %v3150_v30 = vmul.f32 %v8071_v36, %v8071_v36 }
 0x982   : > { %v3106_v47 = vpop.f32.mrb[146].mxu0 }
 0x983   : > { %v8078_v42 = vsub.f32 %v7982_v59, %v3106_v47  ;;  %v5622_v21 = vpop.f32.mrb[147].mxu0  ;;  %5695 = vmatmul.mubr.f32.gmra.mrb[144].mxu1 %v3150_v30  ;;  %v6661_v47 = vld [vmem:[%s8698_s8] sm:$0xff]  }
 0x984   : > { %5697 = vmatprep.mubr.msk.f32.mxu1 %vm6708_vm1, %v8736_v43 }
 0x985   : > { %v3151_v58 = vmul.f32 %v8078_v42, %v8078_v42 }
 0x986   : > { %v3111_v29 = vpop.f32.mrb[148].mxu0 }
 0x987   : > { %v8085_v26 = vsub.f32 %v7987_v31, %v3111_v29  ;;  %v5625_v18 = vpop.f32.mrb[149].mxu0  ;;  %5698 = vmatmul.mubr.f32.gmra.mrb[146].mxu1 %v3151_v58 }
 0x988   : > { %5700 = vmatprep.mubr.msk.f32.mxu1 %vm6708_vm1, %v8736_v43 }
 0x989   : > { %v3152_v59 = vmul.f32 %v8085_v26, %v8085_v26 }
 0x98a   : > { %v3116_v10 = vpop.f32.mrb[150].mxu0 }
 0x98b   : > { %v8092_v22 = vsub.f32 %v7992_v50, %v3116_v10  ;;  %v5628_v0 = vpop.f32.mrb[151].mxu0  ;;  %5701 = vmatmul.mubr.f32.gmra.mrb[148].mxu1 %v3152_v59 }
 0x98c   : > { %5703 = vmatprep.mubr.msk.f32.mxu1 %vm6708_vm1, %v8736_v43 }
 0x98d   : > { %v3153_v31 = vmul.f32 %v8092_v22, %v8092_v22 }
 0x98e   : > { %v3121_v12 = vpop.f32.mrb[152].mxu0 }
 0x98f   : > { %v8099_v56 = vsub.f32 %v7997_v27, %v3121_v12  ;;  %v5631_v30 = vpop.f32.mrb[153].mxu0  ;;  %5704 = vmatmul.mubr.f32.gmra.mrb[150].mxu1 %v3153_v31 }
 0x990   : > { %5706 = vmatprep.mubr.msk.f32.mxu1 %vm6708_vm1, %v8736_v43 }
 0x991   : > { %v3154_v50 = vmul.f32 %v8099_v56, %v8099_v56 }
 0x993   : > { %5707 = vmatmul.mubr.f32.gmra.mrb[152].mxu1 %v3154_v50 }
 0x994   : > { %5757 = vmatprep.mubr.msk.bf16.mxu1 %vm1867_vm2, %v6661_v47 }
 0xa2e   : > { %v3221_v21 = vpop.f32.mrb[124].mxu1 }
 0xa2f   : > { %v3222_v58 = vadd.f32 1e-05, %v3221_v21  ;;  %v5666_v29 = vpop.f32.mrb[125].mxu1 }
 0xa31   : > { %6538 = vrsqrt.f32 %v3222_v58 }
 0xa32   : > { %v3226_v27 = vpop.f32.mrb[126].mxu1 }
 0xa33   : > { %v3227_v18 = vadd.f32 1e-05, %v3226_v27  ;;  %v5669_v59 = vpop.f32.mrb[127].mxu1 }
 0xa35   : > { %6540 = vrsqrt.f32 %v3227_v18 }
 0xa36   : > { %v3231_v10 = vpop.f32.mrb[128].mxu1 }
 0xa37   : > { %v3232_v0 = vadd.f32 1e-05, %v3231_v10  ;;  %v5672_v31 = vpop.f32.mrb[129].mxu1 }
 0xa39   : > { %6542 = vrsqrt.f32 %v3232_v0 }
 0xa3a   : > { %v3236_v12 = vpop.f32.mrb[130].mxu1 }
 0xa3b   : > { %v6539_v30 = vpop.eup %6538  ;;  %v3237_v50 = vadd.f32 1e-05, %v3236_v12  ;;  %v5675_v35 = vpop.f32.mrb[131].mxu1 }
 0xa3c   : > { %v3310_v49 = vmul.f32 %v6539_v30, %v8004_v40 }
 0xa3d   : > { %6544 = vrsqrt.f32 %v3237_v50 }
 0xa3e   : > { %v3241_v13 = vpop.f32.mrb[132].mxu1  ;;  %v3325_v27 = vmul.f32 %v7807_v7, %v3310_v49 }
 0xa3f   : > { %v6541_v47 = vpop.eup %6540  ;;  %v3242_v21 = vadd.f32 1e-05, %v3241_v13  ;;  %v5678_v29 = vpop.f32.mrb[133].mxu1 }
 0xa40   : > { %v3311_v58 = vmul.f32 %v6541_v47, %v8008_v23  ;;  %v3340_v35 = vadd.f32 %v7815_v53, %v3325_v27 }
 0xa41   : > { %6546 = vrsqrt.f32 %v3242_v21 }
 0xa42   : > { %v3326_v18 = vmul.f32 %v7807_v7, %v3311_v58  ;;  %v3246_v10 = vpop.f32.mrb[134].mxu1 }
 0xa43   : > { %v6543_v59 = vpop.eup %6542  ;;  %v3247_v0 = vadd.f32 1e-05, %v3246_v10  ;;  %v5681_v31 = vpop.f32.mrb[135].mxu1 }
 0xa44   : > { %v3341_v40 = vadd.f32 %v7815_v53, %v3326_v18  ;;  %v3312_v12 = vmul.f32 %v6543_v59, %v8015_v34 }
 0xa45   : > { %6548 = vrsqrt.f32 %v3247_v0 }
 0xa46   : > { %v3355_v13 = vpack.c.bf16 %v3341_v40, %v3340_v35  ;;  %v3251_v50 = vpop.f32.mrb[136].mxu1  ;;  %v3327_v21 = vmul.f32 %v7807_v7, %v3312_v12 }
 0xa47   : > { %v6545_v30 = vpop.eup %6544  ;;  %v3252_v23 = vadd.f32 1e-05, %v3251_v50  ;;  %v5684_v47 = vpop.f32.mrb[137].mxu1 }
 0xa48   : > { %5709 = vmatprep.subr.bf16.mxu0 %v3355_v13  ;;  %v3313_v49 = vmul.f32 %v6545_v30, %v8022_v55  ;;  %v3342_v34 = vadd.f32 %v7815_v53, %v3327_v21 }
 0xa49   : > { %5710 = vmatpush3.bf16.msra.mxu0 %v3355_v13  ;;  %6550 = vrsqrt.f32 %v3252_v23  ;;  %v8126_v13 = vld [vmem:[%s8693_s3] ss:$0 sm:$0xff] }
 0xa4a   : > { %v3328_v29 = vmul.f32 %v7807_v7, %v3313_v49  ;;  %v3256_v58 = vpop.f32.mrb[138].mxu1  ;;  %v8133_v49 = vld [vmem:[%s8694_s4] ss:$0 sm:$0xff] }
 0xa4b   : > { %v6547_v27 = vpop.eup %6546  ;;  %v3257_v18 = vadd.f32 1e-05, %v3256_v58  ;;  %v5687_v10 = vpop.f32.mrb[139].mxu1 }
 0xa4c   : > { %v3343_v59 = vadd.f32 %v7815_v53, %v3328_v29  ;;  %v3314_v0 = vmul.f32 %v6547_v27, %v8029_v60 }
 0xa4d   : > { %6552 = vrsqrt.f32 %v3257_v18 }
 0xa4e   : > { %v3356_v31 = vpack.c.bf16 %v3343_v59, %v3342_v34  ;;  %v3261_v35 = vpop.f32.mrb[140].mxu1  ;;  %v3329_v30 = vmul.f32 %v8126_v13, %v3314_v0 }
 0xa4f   : > { %v6549_v55 = vpop.eup %6548  ;;  %v3262_v40 = vadd.f32 1e-05, %v3261_v35  ;;  %v5690_v12 = vpop.f32.mrb[141].mxu1 }
 0xa50   : > { %5711 = vmatprep.subr.bf16.mxu0 %v3356_v31  ;;  %v3315_v7 = vmul.f32 %v6549_v55, %v8036_v8  ;;  %v3344_v8 = vadd.f32 %v8133_v49, %v3329_v30 }
 0xa51   : > { %5712 = vmatpush3.bf16.msra.mxu0 %v3356_v31  ;;  %6554 = vrsqrt.f32 %v3262_v40 }
 0xa52   : > { %v3266_v53 = vpop.f32.mrb[142].mxu1  ;;  %v3330_v60 = vmul.f32 %v8126_v13, %v3315_v7 }
 0xa53   : > { %v6551_v50 = vpop.eup %6550  ;;  %v3267_v23 = vadd.f32 1e-05, %v3266_v53  ;;  %v5693_v47 = vpop.f32.mrb[143].mxu1 }
 0xa54   : > { %v3345_v21 = vadd.f32 %v8133_v49, %v3330_v60  ;;  %v3316_v29 = vmul.f32 %v6551_v50, %v8043_v28 }
 0xa55   : > { %6556 = vrsqrt.f32 %v3267_v23 }
 0xa56   : > { %v3271_v58 = vpop.f32.mrb[144].mxu1  ;;  %v3357_v27 = vpack.c.bf16 %v3345_v21, %v3344_v8  ;;  %v3331_v0 = vmul.f32 %v8126_v13, %v3316_v29 }
 0xa57   : > { %v6553_v18 = vpop.eup %6552  ;;  %v3272_v10 = vadd.f32 1e-05, %v3271_v58  ;;  %v5696_v34 = vpop.f32.mrb[145].mxu1 }
 0xa58   : > { %5713 = vmatprep.subr.bf16.mxu0 %v3357_v27  ;;  %v3317_v59 = vmul.f32 %v6553_v18, %v8050_v3  ;;  %v3346_v28 = vadd.f32 %v8133_v49, %v3331_v0 }
 0xa59   : > { %6558 = vrsqrt.f32 %v3272_v10  ;;  %5714 = vmatpush3.bf16.msra.mxu0 %v3357_v27 }
 0xa5a   : > { %v3276_v31 = vpop.f32.mrb[146].mxu1  ;;  %v3332_v35 = vmul.f32 %v8126_v13, %v3317_v59 }
 0xa5b   : > { %v6555_v55 = vpop.eup %6554  ;;  %v3277_v40 = vadd.f32 1e-05, %v3276_v31  ;;  %v5699_v12 = vpop.f32.mrb[147].mxu1 }
 0xa5c   : > { %v3347_v7 = vadd.f32 %v8133_v49, %v3332_v35  ;;  %v3318_v30 = vmul.f32 %v6555_v55, %v8057_v54 }
 0xa5d   : > { %6560 = vrsqrt.f32 %v3277_v40 }
 0xa5e   : > { %v3281_v53 = vpop.f32.mrb[148].mxu1  ;;  %v3358_v60 = vpack.c.bf16 %v3347_v7, %v3346_v28  ;;  %v3333_v8 = vmul.f32 %v8126_v13, %v3318_v30 }
 0xa5f   : > { %v6557_v3 = vpop.eup %6556  ;;  %v3282_v50 = vadd.f32 1e-05, %v3281_v53  ;;  %v5702_v23 = vpop.f32.mrb[149].mxu1 }
 0xa60   : > { %5715 = vmatprep.subr.bf16.mxu0 %v3358_v60  ;;  %v3319_v47 = vmul.f32 %v6557_v3, %v8064_v41  ;;  %v3348_v54 = vadd.f32 %v8133_v49, %v3333_v8 }
 0xa61   : > { %6562 = vrsqrt.f32 %v3282_v50  ;;  %5716 = vmatpush3.bf16.msra.mxu0 %v3358_v60 }
 0xa62   : > { %v3286_v21 = vpop.f32.mrb[150].mxu1  ;;  %v3334_v29 = vmul.f32 %v8126_v13, %v3319_v47 }
 0xa63   : > { %v6559_v58 = vpop.eup %6558  ;;  %v3287_v27 = vadd.f32 1e-05, %v3286_v21  ;;  %v5705_v18 = vpop.f32.mrb[151].mxu1 }
 0xa64   : > { %v3349_v10 = vadd.f32 %v8133_v49, %v3334_v29  ;;  %v3320_v34 = vmul.f32 %v6559_v58, %v8071_v36  ;;  %v6664_v18 = vld [vmem:[%s8696_s6 + $0x8] sm:$0xff]  }
 0xa65   : > { %6564 = vrsqrt.f32 %v3287_v27 }
 0xa66   : > { %v3291_v59 = vpop.f32.mrb[152].mxu1  ;;  %v3359_v0 = vpack.c.bf16 %v3349_v10, %v3348_v54  ;;  %v3335_v40 = vmul.f32 %v8126_v13, %v3320_v34  ;;  %v6666_v54 = vld [vmem:[%s8696_s6 + $0x18] sm:$0xff]   ;;  %v6667_v10 = vld [vmem:[%s8696_s6 + $0x20] sm:$0xff]   ;;  %v6668_v34 = vld [vmem:[%s8696_s6 + $0x28] sm:$0xff]  }
 0xa67   : > { %v6561_v41 = vpop.eup %6560  ;;  %v3292_v31 = vadd.f32 1e-05, %v3291_v59  ;;  %v5708_v35 = vpop.f32.mrb[153].mxu1  ;;  %v6669_v59 = vld [vmem:[%s8696_s6 + $0x30] sm:$0xff]  }
 0xa68   : > { %5717 = vmatprep.subr.bf16.mxu0 %v3359_v0  ;;  %v3321_v55 = vmul.f32 %v6561_v41, %v8078_v42  ;;  %v3350_v7 = vadd.f32 %v8133_v49, %v3335_v40  ;;  %v8215_v41 = vld [vmem:[%s8700_s10] sm:$0xff]  }
 0xa69   : > { %6566 = vrsqrt.f32 %v3292_v31  ;;  %5718 = vmatpush3.bf16.msra.mxu0 %v3359_v0  ;;  %v6670_v0 = vld [vmem:[%s8696_s6 + $0x38] ss:$0 sps:$4 sm:$0xff]  }
 0xa6a   : > { %v3336_v12 = vmul.f32 %v8126_v13, %v3321_v55 }
 0xa6b   : > { %v6563_v28 = vpop.eup %6562 }
 0xa6c   : > { %v3351_v36 = vadd.f32 %v8133_v49, %v3336_v12  ;;  %v3322_v30 = vmul.f32 %v6563_v28, %v8085_v26 }
 0xa6e   : > { %v3360_v53 = vpack.c.bf16 %v3351_v36, %v3350_v7  ;;  %v3337_v42 = vmul.f32 %v8126_v13, %v3322_v30 }
 0xa6f   : > { %v6565_v60 = vpop.eup %6564 }
 0xa70   : > { %5719 = vmatprep.subr.bf16.mxu0 %v3360_v53  ;;  %v3323_v3 = vmul.f32 %v6565_v60, %v8092_v22  ;;  %v3352_v47 = vadd.f32 %v8133_v49, %v3337_v42 }
 0xa71   : > { %5720 = vmatpush3.bf16.msra.mxu0 %v3360_v53 }
 0xa72   : > { %v3338_v50 = vmul.f32 %v8126_v13, %v3323_v3 }
 0xa73   : > { %v6567_v23 = vpop.eup %6566 }
 0xa74   : > { %v3353_v8 = vadd.f32 %v8133_v49, %v3338_v50  ;;  %v3324_v21 = vmul.f32 %v6567_v23, %v8099_v56  ;;  %v6665_v56 = vld [vmem:[%s8696_s6 + $0x10] sm:$0xff]  }
 0xa76   : > { %v3361_v29 = vpack.c.bf16 %v3353_v8, %v3352_v47  ;;  %v3339_v26 = vmul.f32 %v8126_v13, %v3324_v21 }
 0xa78   : > { %5721 = vmatprep.subr.bf16.mxu0 %v3361_v29  ;;  %v3354_v58 = vadd.f32 %v8133_v49, %v3339_v26 }
 0xa79   : > { %5722 = vmatpush3.bf16.msra.mxu0 %v3361_v29 }
 0xa7a   : > { %v3362_v22 = vpack.c.bf16 %v3354_v58, %v3354_v58 }
 0xa7c   : > { %6298 = vmatprep.subr.msk.bf16.mxu0 %vm1892_vm3, %v3362_v22  ;;  %v3364_v27 = vsel %vm1892_vm3, %v3362_v22, 0 }
 0xa7d   : > { %5724 = vmatpush3.bf16.msra.mxu0 %v3364_v27 }
 0xa7e   : > { %6203 = vmatprep.subr.bf16.mxu0 %v8735_v45 }
 0xa80   : > { %5726 = vmatmul.mubr.msk.bf16.vlgmr.msra.gmra.mrb[156].mxu0 %vm1867_vm2, %v6664_v18 }
 0xa81   : > { %5729 = vmatprep.mubr.msk.bf16.mxu0 %vm1867_vm2, %v6665_v56  ;;  %6205 = vmatpush3.bf16.msra.mxu0 %v6926_v39 }
 0xa82   : > { %6206 = vmatprep.subr.bf16.mxu0 %v8735_v45 }
 0xa85   : > { %6208 = vmatpush3.bf16.msra.mxu0 %v6943_v46 }
 0xa86   : > { %6209 = vmatprep.subr.bf16.mxu0 %v8735_v45 }
 0xa88   : > { %5730 = vmatmul.mubr.msk.bf16.gmra.mrb[160].mxu0 %vm1867_vm2, %v6666_v54 }
 0xa89   : > { %5733 = vmatprep.mubr.msk.bf16.mxu0 %vm1867_vm2, %v6667_v10  ;;  %6211 = vmatpush3.bf16.msra.mxu0 %v6958_v51 }
 0xa8a   : > { %6212 = vmatprep.subr.bf16.mxu0 %v8735_v45 }
 0xa8d   : > { %6214 = vmatpush3.bf16.msra.mxu0 %v6974_v57 }
 0xa8e   : > { %6215 = vmatprep.subr.bf16.mxu0 %v8735_v45 }
 0xa90   : > { %5734 = vmatmul.mubr.msk.bf16.gmra.mrb[164].mxu0 %vm1867_vm2, %v6668_v34 }
 0xa91   : > { %5737 = vmatprep.mubr.msk.bf16.mxu0 %vm1867_vm2, %v6669_v59  ;;  %6217 = vmatpush3.bf16.msra.mxu0 %v6987_v61 }
 0xa92   : > { %6218 = vmatprep.subr.bf16.mxu0 %v8735_v45 }
 0xa95   : > { %6220 = vmatpush3.bf16.msra.mxu0 %v6997_v1 }
 0xa96   : > { %6221 = vmatprep.subr.bf16.mxu0 %v8735_v45 }
 0xa98   : > { %5738 = vmatmul.mubr.msk.bf16.gmra.mrb[168].mxu0 %vm1867_vm2, %v6670_v0 }
 0xa99   : > { %6223 = vmatpush3.bf16.msra.mxu0 %v7024_v17  ;;  %5805 = vmatprep.mubr.msk.f32.mxu0 %vm6708_vm1, %v8736_v43 }
 0xa9a   : > { %6224 = vmatprep.subr.bf16.mxu0 %v8735_v45 }
 0xa9d   : > { %6226 = vmatpush3.bf16.msra.mxu0 %v7036_v20 }
 0xa9e   : > { %5927 = vmatprep.subr.bf16.mxu0 %v8215_v41 }
 0xb53   : > { %v5727_v31 = vpop.f32.mrb[156].mxu0 }
 0xb54   : > { %v3409_v35 = vadd.f32 %v5727_v31, %v7445_v5  ;;  %v3400_v55 = vpop.f32.mrb[157].mxu0 }
 0xb55   : > { %v3401_v40 = vadd.f32 %v3400_v55, %v7441_v19  ;;  %v5728_v12 = vpop.f32.mrb[158].mxu0 }
 0xb56   : > { %v3479_v28 = vmul.f32 0.70710677, %v3409_v35  ;;  %v3412_v7 = vadd.f32 %v5728_v12, %v7449_v25  ;;  %v3403_v36 = vpop.f32.mrb[159].mxu0  ;;  %v3464_v10 = vmul.f32 0.5, %v3409_v35 }
 0xb57   : > { %v3477_v30 = vmul.f32 0.70710677, %v3401_v40  ;;  %v3404_v53 = vadd.f32 %v3403_v36, %v7443_v11  ;;  %v3462_v31 = vmul.f32 0.5, %v3401_v40 }
 0xb58   : > { %6568 = verf.f32 %v3479_v28  ;;  %v3480_v60 = vmul.f32 0.70710677, %v3412_v7  ;;  %v3465_v34 = vmul.f32 0.5, %v3412_v7 }
 0xb59   : > { %6570 = verf.f32 %v3477_v30  ;;  %v3478_v3 = vmul.f32 0.70710677, %v3404_v53  ;;  %v3463_v55 = vmul.f32 0.5, %v3404_v53 }
 0xb5a   : > { %6572 = verf.f32 %v3480_v60 }
 0xb5b   : > { %6574 = verf.f32 %v3478_v3  ;;  %v5731_v42 = vpop.f32.mrb[160].mxu0 }
 0xb5c   : > { %v3425_v5 = vadd.f32 %v5731_v42, %v7451_v15  ;;  %v3416_v50 = vpop.f32.mrb[161].mxu0 }
 0xb5d   : > { %v3417_v19 = vadd.f32 %v3416_v50, %v7447_v14  ;;  %v5732_v23 = vpop.f32.mrb[162].mxu0 }
 0xb5e   : > { %v3483_v47 = vmul.f32 0.70710677, %v3425_v5  ;;  %v3428_v25 = vadd.f32 %v5732_v23, %v7461_v63  ;;  %v3419_v8 = vpop.f32.mrb[163].mxu0 }
 0xb5f   : > { %v3481_v21 = vmul.f32 0.70710677, %v3417_v19  ;;  %v3420_v11 = vadd.f32 %v3419_v8, %v7453_v9 }
 0xb60   : > { %6576 = verf.f32 %v3483_v47  ;;  %v3484_v29 = vmul.f32 0.70710677, %v3428_v25 }
 0xb61   : > { %6578 = verf.f32 %v3481_v21  ;;  %v3482_v26 = vmul.f32 0.70710677, %v3420_v11 }
 0xb62   : > { %v6569_v58 = vpop.eup %6568  ;;  %6580 = verf.f32 %v3484_v29 }
 0xb63   : > { %v6571_v22 = vpop.eup %6570  ;;  %v3509_v27 = vadd.f32 1.0, %v6569_v58  ;;  %6582 = verf.f32 %v3482_v26  ;;  %v5735_v15 = vpop.f32.mrb[164].mxu0 }
 0xb64   : > { %v6573_v18 = vpop.eup %6572  ;;  %v3507_v14 = vadd.f32 1.0, %v6571_v22  ;;  %v8227_v56 = vadd.f32 %v5735_v15, %v7471_v33  ;;  %v3432_v63 = vpop.f32.mrb[165].mxu0 }
 0xb65   : > { %v6575_v54 = vpop.eup %6574  ;;  %v3510_v9 = vadd.f32 1.0, %v6573_v18  ;;  %v8230_v59 = vadd.f32 %v3432_v63, %v7459_v32  ;;  %v5736_v0 = vpop.f32.mrb[166].mxu0  ;;  %v3524_v30 = vmul.f32 %v3509_v27, %v3464_v10  ;;  %v3468_v27 = vmul.f32 0.5, %v3425_v5 }
 0xb66   : > { %v3508_v12 = vadd.f32 1.0, %v6575_v54  ;;  %v3487_v28 = vmul.f32 0.70710677, %v8227_v56  ;;  %v3435_v36 = vpop.f32.mrb[167].mxu0  ;;  %v3444_v3 = vadd.f32 %v5736_v0, %v7485_v6  ;;  %v3522_v42 = vmul.f32 %v3507_v14, %v3462_v31 }
 0xb67   : > { %v3525_v60 = vmul.f32 %v3510_v9, %v3465_v34  ;;  %v3485_v33 = vmul.f32 0.70710677, %v8230_v59  ;;  %v3436_v7 = vadd.f32 %v3435_v36, %v7475_v37  ;;  %v3469_v37 = vmul.f32 0.5, %v3428_v25 }
 0xb68   : > { %v3523_v35 = vmul.f32 %v3508_v12, %v3463_v55  ;;  %6584 = verf.f32 %v3487_v28  ;;  %v3488_v32 = vmul.f32 0.70710677, %v3444_v3  ;;  %v3466_v63 = vmul.f32 0.5, %v3417_v19 }
 0xb69   : > { %6586 = verf.f32 %v3485_v33  ;;  %v3538_v50 = vpack.c.bf16 %v3525_v60, %v3524_v30  ;;  %v3486_v53 = vmul.f32 0.70710677, %v3436_v7  ;;  %v3467_v54 = vmul.f32 0.5, %v3420_v11 }
 0xb6a   : > { %v6577_v40 = vpop.eup %6576  ;;  %v3537_v23 = vpack.c.bf16 %v3523_v35, %v3522_v42  ;;  %6588 = verf.f32 %v3488_v32  ;;  %v3472_v42 = vmul.f32 0.5, %v8227_v56  ;;  %v3470_v32 = vmul.f32 0.5, %v8230_v59 }
 0xb6b   : > { %v6579_v47 = vpop.eup %6578  ;;  %v3513_v8 = vadd.f32 1.0, %v6577_v40  ;;  %v5739_v21 = vpop.f32.mrb[168].mxu0  ;;  %6590 = verf.f32 %v3486_v53  ;;  %v3471_v40 = vmul.f32 0.5, %v3436_v7 }
 0xb6c   : > { %v6581_v29 = vpop.eup %6580  ;;  %v3511_v26 = vadd.f32 1.0, %v6579_v47  ;;  %v3457_v6 = vadd.f32 %v5739_v21, %v7491_v16  ;;  %v3448_v58 = vpop.f32.mrb[169].mxu0  ;;  %5741 = vmatprep.subr.bf16.mxu1 %v3537_v23 }
 0xb6d   : > { %v6583_v22 = vpop.eup %6582  ;;  %v3514_v15 = vadd.f32 1.0, %v6581_v29  ;;  %v3449_v18 = vadd.f32 %v3448_v58, %v7480_v24  ;;  %v5740_v14 = vpop.f32.mrb[170].mxu0  ;;  %5742 = vmatpush3.bf16.msra.mxu1 %v3537_v23  ;;  %v3528_v0 = vmul.f32 %v3513_v8, %v3468_v27 }
 0xb6e   : > { %v3512_v10 = vadd.f32 1.0, %v6583_v22  ;;  %v3491_v34 = vmul.f32 0.70710677, %v3457_v6  ;;  %v3451_v9 = vpop.f32.mrb[171].mxu0  ;;  %5743 = vmatprep.subr.bf16.mxu1 %v3538_v50  ;;  %v3526_v12 = vmul.f32 %v3511_v26, %v3466_v63  ;;  %v3476_v59 = vmul.f32 0.5, %v3457_v6  ;;  %v6672_v6 = vld [vmem:[%s8698_s8 + $0x8] sm:$0xff]  }
 0xb6f   : > { %v3529_v31 = vmul.f32 %v3514_v15, %v3469_v37  ;;  %v3489_v55 = vmul.f32 0.70710677, %v3449_v18  ;;  %v3452_v16 = vadd.f32 %v3451_v9, %v7496_v4  ;;  %v3473_v4 = vmul.f32 0.5, %v3444_v3  ;;  %v6674_v9 = vld [vmem:[%s8698_s8 + $0x18] sm:$0xff]  }
 0xb70   : > { %v3527_v28 = vmul.f32 %v3512_v10, %v3467_v54  ;;  %6592 = verf.f32 %v3491_v34  ;;  %v3474_v56 = vmul.f32 0.5, %v3449_v18  ;;  %v6673_v18 = vld [vmem:[%s8698_s8 + $0x10] sm:$0xff]  }
 0xb71   : > { %6594 = verf.f32 %v3489_v55  ;;  %v3490_v5 = vmul.f32 0.70710677, %v3452_v16  ;;  %5744 = vmatpush3.bf16.msra.mxu1 %v3538_v50  ;;  %v3540_v24 = vpack.c.bf16 %v3529_v31, %v3528_v0  ;;  %v3475_v3 = vmul.f32 0.5, %v3452_v16  ;;  %v6675_v0 = vld [vmem:[%s8698_s8 + $0x20] sm:$0xff]   ;;  %v6680_v16 = vld [vmem:[%s8700_s10 + $0x8] sm:$0xff]  }
 0xb72   : > { %v6585_v25 = vpop.eup %6584  ;;  %v3539_v36 = vpack.c.bf16 %v3527_v28, %v3526_v12 }
 0xb73   : > { %v6587_v19 = vpop.eup %6586  ;;  %6596 = verf.f32 %v3490_v5  ;;  %v3517_v11 = vadd.f32 1.0, %v6585_v25 }
 0xb74   : > { %5745 = vmatprep.subr.bf16.mxu1 %v3539_v36  ;;  %v6589_v30 = vpop.eup %6588  ;;  %v3515_v60 = vadd.f32 1.0, %v6587_v19 }
 0xb75   : > { %5746 = vmatpush3.bf16.msra.mxu1 %v3539_v36  ;;  %v6591_v33 = vpop.eup %6590  ;;  %v3518_v35 = vadd.f32 1.0, %v6589_v30  ;;  %v3532_v53 = vmul.f32 %v3517_v11, %v3472_v42 }
 0xb76   : > { %5747 = vmatprep.subr.bf16.mxu1 %v3540_v24  ;;  %v3516_v50 = vadd.f32 1.0, %v6591_v33  ;;  %v3530_v47 = vmul.f32 %v3515_v60, %v3470_v32 }
 0xb77   : > { %v3533_v23 = vmul.f32 %v3518_v35, %v3473_v4  ;;  %v8737_v4 = vld [vmem:[#allocation2_spill] sm:$0xff] }
 0xb78   : > { %v3531_v8 = vmul.f32 %v3516_v50, %v3471_v40  ;;  %v8738_v50 = vld [vmem:[#allocation3_spill] sm:$0xff] }
 0xb79   : > { %5748 = vmatpush3.bf16.msra.mxu1 %v3540_v24  ;;  %v3542_v29 = vpack.c.bf16 %v3533_v23, %v3532_v53  ;;  %v6686_v23 = vld [vmem:[%s8700_s10 + $0x38] sm:$0xff]  }
 0xb7a   : > { %v6593_v21 = vpop.eup %6592  ;;  %v3541_v58 = vpack.c.bf16 %v3531_v8, %v3530_v47  ;;  %v8739_v47 = vld [vmem:[#allocation4_spill] sm:$0xff] }
 0xb7b   : > { %v6595_v26 = vpop.eup %6594  ;;  %v3521_v37 = vadd.f32 1.0, %v6593_v21  ;;  %v8740_v21 = vld [vmem:[#allocation5_spill] sm:$0xff] }
 0xb7c   : > { %v3519_v22 = vadd.f32 1.0, %v6595_v26  ;;  %5749 = vmatprep.subr.bf16.mxu1 %v3541_v58  ;;  %v8741_v26 = vld [vmem:[#allocation6_spill] sm:$0xff] }
 0xb7d   : > { %v6597_v27 = vpop.eup %6596  ;;  %5750 = vmatpush3.bf16.msra.mxu1 %v3541_v58  ;;  %v3536_v63 = vmul.f32 %v3521_v37, %v3476_v59  ;;  %v8743_v37 = vld [vmem:[#allocation8_spill] sm:$0xff]  ;;  %v8745_v59 = vld [vmem:[#allocation10_spill] sm:$0xff] }
 0xb7e   : > { %v3520_v15 = vadd.f32 1.0, %v6597_v27  ;;  %5751 = vmatprep.subr.bf16.mxu1 %v3542_v29  ;;  %v3534_v7 = vmul.f32 %v3519_v22, %v3474_v56  ;;  %v8742_v22 = vld [vmem:[#allocation7_spill] sm:$0xff] }
 0xb7f   : > { %v3544_v10 = vpack.c.bf16 %v3536_v63, %v3536_v63 }
 0xb80   : > { %v3535_v14 = vmul.f32 %v3520_v15, %v3475_v3  ;;  %v8744_v3 = vld [vmem:[#allocation9_spill] sm:$0xff] }
 0xb81   : > { %5752 = vmatpush3.bf16.msra.mxu1 %v3542_v29  ;;  %v3546_v34 = vsel %vm1892_vm3, %v3544_v10, 0 }
 0xb82   : > { %v3543_v54 = vpack.c.bf16 %v3535_v14, %v3534_v7 }
 0xb84   : > { %5753 = vmatprep.subr.bf16.mxu1 %v3543_v54 }
 0xb85   : > { %5754 = vmatpush3.bf16.msra.mxu1 %v3543_v54 }
 0xb86   : > { %6299 = vmatprep.subr.msk.bf16.mxu1 %vm1892_vm3, %v3544_v10 }
 0xb89   : > { %5756 = vmatpush3.bf16.msra.mxu1 %v3546_v34 }
 0xb8a   : > { %6227 = vmatprep.subr.bf16.mxu1 %v8735_v45 }
 0xb8c   : > { %5758 = vmatmul.mubr.msk.bf16.vlgmr.msra.gmra.mrb[156].mxu1 %vm1867_vm2, %v6672_v6 }
 0xb8d   : > { %5761 = vmatprep.mubr.msk.bf16.mxu1 %vm1867_vm2, %v6673_v18  ;;  %6229 = vmatpush3.bf16.msra.mxu1 %v6926_v39  ;;  %v6676_v39 = vld [vmem:[%s8698_s8 + $0x28] sm:$0xff]  }
 0xb8e   : > { %6230 = vmatprep.subr.bf16.mxu1 %v8735_v45 }
 0xb91   : > { %6232 = vmatpush3.bf16.msra.mxu1 %v6943_v46  ;;  %v6677_v46 = vld [vmem:[%s8698_s8 + $0x30] sm:$0xff]  }
 0xb92   : > { %6233 = vmatprep.subr.bf16.mxu1 %v8735_v45 }
 0xb94   : > { %5762 = vmatmul.mubr.msk.bf16.gmra.mrb[160].mxu1 %vm1867_vm2, %v6674_v9 }
 0xb95   : > { %5765 = vmatprep.mubr.msk.bf16.mxu1 %vm1867_vm2, %v6675_v0  ;;  %6235 = vmatpush3.bf16.msra.mxu1 %v6958_v51  ;;  %v6678_v51 = vld [vmem:[%s8698_s8 + $0x38] ss:$0 sps:$4 sm:$0xff]   ;;  %v6687_v0 = vld [vmem:[%s8702_s12 + $0x8] sm:$0xff]  }
 0xb96   : > { %6236 = vmatprep.subr.bf16.mxu1 %v8735_v45 }
 0xb99   : > { %6238 = vmatpush3.bf16.msra.mxu1 %v6974_v57  ;;  %v8292_v57 = vld [vmem:[%s8702_s12] sm:$0xff]  }
 0xb9a   : > { %6239 = vmatprep.subr.bf16.mxu1 %v8735_v45 }
 0xb9c   : > { %5766 = vmatmul.mubr.msk.bf16.gmra.mrb[164].mxu1 %vm1867_vm2, %v6676_v39 }
 0xb9d   : > { %5769 = vmatprep.mubr.msk.bf16.mxu1 %vm1867_vm2, %v6677_v46  ;;  %6241 = vmatpush3.bf16.msra.mxu1 %v6987_v61 }
 0xb9e   : > { %6242 = vmatprep.subr.bf16.mxu1 %v8735_v45 }
 0xba1   : > { %6244 = vmatpush3.bf16.msra.mxu1 %v6997_v1 }
 0xba2   : > { %6245 = vmatprep.subr.bf16.mxu1 %v8735_v45 }
 0xba4   : > { %5770 = vmatmul.mubr.msk.bf16.gmra.mrb[168].mxu1 %vm1867_vm2, %v6678_v51 }
 0xba5   : > { %6247 = vmatpush3.bf16.msra.mxu1 %v7024_v17  ;;  %5882 = vmatprep.mubr.msk.f32.mxu1 %vm6708_vm1, %v8736_v43 }
 0xba6   : > { %6248 = vmatprep.subr.bf16.mxu1 %v8735_v45 }
 0xba9   : > { %6250 = vmatpush3.bf16.msra.mxu1 %v7036_v20 }
 0xbaa   : > { %5959 = vmatprep.subr.bf16.mxu1 %v8292_v57 }
 0xc5f   : > { %v5759_v61 = vpop.f32.mrb[156].mxu1 }
 0xc60   : > { %v3582_v1 = vpop.f32.mrb[157].mxu1  ;;  %v8312_v28 = vadd.f32 %v5759_v61, %v7564_v52  ;;  %v6682_v52 = vld [vmem:[%s8700_s10 + $0x18] sm:$0xff]   ;;  %v6688_v61 = vld [vmem:[%s8702_s12 + $0x10] sm:$0xff]  }
 0xc61   : > { %v8296_v31 = vadd.f32 %v3582_v1, %v7550_v38  ;;  %v5760_v17 = vpop.f32.mrb[158].mxu1 }
 0xc62   : > { %v3585_v55 = vpop.f32.mrb[159].mxu1  ;;  %v8321_v24 = vadd.f32 %v5760_v17, %v7572_v44  ;;  %v6683_v44 = vld [vmem:[%s8700_s10 + $0x20] sm:$0xff]  }
 0xc63   : > { %5806 = vmatmul.mubr.f32.vlgmr.msra.gmra.mrb[154].mxu0 %v8296_v31  ;;  %v8303_v20 = vadd.f32 %v3585_v55, %v7556_v48  ;;  %v6681_v48 = vld [vmem:[%s8700_s10 + $0x10] sm:$0xff]  }
 0xc64   : > { %5808 = vmatprep.mubr.msk.f32.mxu0 %vm6708_vm1, %v8736_v43  ;;  %5928 = vmatpush3.bf16.msra.mxu0 %v8215_v41 }
 0xc65   : > { %5929 = vmatprep.subr.bf16.mxu0 %v6680_v16 }
 0xc67   : > { %v5763_v12 = vpop.f32.mrb[160].mxu1  ;;  %5809 = vmatmul.mubr.f32.gmra.mrb[172].mxu0 %v8303_v20 }
 0xc68   : > { %v3598_v38 = vpop.f32.mrb[161].mxu1  ;;  %5811 = vmatprep.mubr.msk.f32.mxu0 %vm6708_vm1, %v8736_v43  ;;  %5930 = vmatpush3.bf16.msra.mxu0 %v6680_v16  ;;  %v8348_v35 = vadd.f32 %v5763_v12, %v8737_v4  ;;  %v6693_v4 = vld [vmem:[%s8702_s12 + $0x38] sm:$0xff]  }
 0xc69   : > { %v5764_v41 = vpop.f32.mrb[162].mxu1  ;;  %5931 = vmatprep.subr.bf16.mxu0 %v6681_v48  ;;  %v8330_v19 = vadd.f32 %v3598_v38, %v7580_v2  ;;  %v6684_v2 = vld [vmem:[%s8700_s10 + $0x28] sm:$0xff]  }
 0xc6a   : > { %v3601_v5 = vpop.f32.mrb[163].mxu1  ;;  %v8357_v53 = vadd.f32 %v5764_v41, %v8738_v50  ;;  %v6690_v41 = vld [vmem:[%s8702_s12 + $0x20] sm:$0xff]  }
 0xc6b   : > { %5812 = vmatmul.mubr.f32.gmra.mrb[174].mxu0 %v8312_v28  ;;  %v8339_v60 = vadd.f32 %v3601_v5, %v7588_v62  ;;  %v6685_v62 = vld [vmem:[%s8700_s10 + $0x30] sm:$0xff]  }
 0xc6c   : > { %5814 = vmatprep.mubr.msk.f32.mxu0 %vm6708_vm1, %v8736_v43  ;;  %5932 = vmatpush3.bf16.msra.mxu0 %v6681_v48 }
 0xc6d   : > { %5933 = vmatprep.subr.bf16.mxu0 %v6682_v52 }
 0xc6f   : > { %v5767_v25 = vpop.f32.mrb[164].mxu1  ;;  %5815 = vmatmul.mubr.f32.gmra.mrb[176].mxu0 %v8321_v24 }
 0xc70   : > { %v3614_v36 = vpop.f32.mrb[165].mxu1  ;;  %5817 = vmatprep.mubr.msk.f32.mxu0 %vm6708_vm1, %v8736_v43  ;;  %5934 = vmatpush3.bf16.msra.mxu0 %v6682_v52  ;;  %v8379_v58 = vadd.f32 %v5767_v25, %v8741_v26  ;;  %v6691_v25 = vld [vmem:[%s8702_s12 + $0x28] sm:$0xff]  }
 0xc71   : > { %v5768_v11 = vpop.f32.mrb[166].mxu1  ;;  %5935 = vmatprep.subr.bf16.mxu0 %v6683_v44  ;;  %v8366_v8 = vadd.f32 %v3614_v36, %v8739_v47 }
 0xc72   : > { %v3617_v30 = vpop.f32.mrb[167].mxu1  ;;  %v8385_v27 = vadd.f32 %v5768_v11, %v8742_v22 }
 0xc73   : > { %5818 = vmatmul.mubr.f32.gmra.mrb[178].mxu0 %v8330_v19  ;;  %v8373_v29 = vadd.f32 %v3617_v30, %v8740_v21  ;;  %v6692_v30 = vld [vmem:[%s8702_s12 + $0x30] sm:$0xff]  }
 0xc74   : > { %5820 = vmatprep.mubr.msk.f32.mxu0 %vm6708_vm1, %v8736_v43  ;;  %5936 = vmatpush3.bf16.msra.mxu0 %v6683_v44 }
 0xc75   : > { %5937 = vmatprep.subr.bf16.mxu0 %v6684_v2 }
 0xc77   : > { %v5771_v33 = vpop.f32.mrb[168].mxu1  ;;  %5821 = vmatmul.mubr.f32.gmra.mrb[180].mxu0 %v8339_v60 }
 0xc78   : > { %v3630_v42 = vpop.f32.mrb[169].mxu1  ;;  %5823 = vmatprep.mubr.msk.f32.mxu0 %vm6708_vm1, %v8736_v43  ;;  %5938 = vmatpush3.bf16.msra.mxu0 %v6684_v2  ;;  %v8403_v7 = vadd.f32 %v5771_v33, %v8745_v59 }
 0xc79   : > { %v5772_v32 = vpop.f32.mrb[170].mxu1  ;;  %5939 = vmatprep.subr.bf16.mxu0 %v6685_v62  ;;  %v8391_v56 = vadd.f32 %v3630_v42, %v8743_v37 }
 0xc7a   : > { %v3633_v40 = vpop.f32.mrb[171].mxu1 }
 0xc7b   : > { %5824 = vmatmul.mubr.f32.gmra.mrb[182].mxu0 %v8348_v35  ;;  %v8397_v15 = vadd.f32 %v3633_v40, %v8744_v3 }
 0xc7c   : > { %5826 = vmatprep.mubr.msk.f32.mxu0 %vm6708_vm1, %v8736_v43  ;;  %5940 = vmatpush3.bf16.msra.mxu0 %v6685_v62 }
 0xc7d   : > { %5941 = vmatprep.subr.bf16.mxu0 %v6686_v23 }
 0xc7f   : > { %5827 = vmatmul.mubr.f32.gmra.mrb[184].mxu0 %v8357_v53 }
 0xc80   : > { %5829 = vmatprep.mubr.msk.f32.mxu0 %vm6708_vm1, %v8736_v43  ;;  %5942 = vmatpush3.bf16.msra.mxu0 %v6686_v23 }
 0xc81   : > { %6251 = vmatprep.subr.bf16.mxu0 %v8735_v45 }
 0xc83   : > { %5830 = vmatmul.mubr.f32.gmra.mrb[186].mxu0 %v8366_v8 }
 0xc84   : > { %5832 = vmatprep.mubr.msk.f32.mxu0 %vm6708_vm1, %v8736_v43 }
 0xc87   : > { %5833 = vmatmul.mubr.f32.gmra.mrb[188].mxu0 %v8373_v29 }
 0xc88   : > { %5835 = vmatprep.mubr.msk.f32.mxu0 %vm6708_vm1, %v8736_v43 }
 0xc8b   : > { %5836 = vmatmul.mubr.f32.gmra.mrb[190].mxu0 %v8379_v58 }
 0xc8c   : > { %5838 = vmatprep.mubr.msk.f32.mxu0 %vm6708_vm1, %v8736_v43 }
 0xc8f   : > { %5839 = vmatmul.mubr.f32.gmra.mrb[192].mxu0 %v8385_v27 }
 0xc90   : > { %5841 = vmatprep.mubr.msk.f32.mxu0 %vm6708_vm1, %v8736_v43 }
 0xc93   : > { %5842 = vmatmul.mubr.f32.gmra.mrb[194].mxu0 %v8391_v56 }
 0xc94   : > { %5844 = vmatprep.mubr.msk.f32.mxu0 %vm6708_vm1, %v8736_v43 }
 0xc97   : > { %5845 = vmatmul.mubr.f32.gmra.mrb[196].mxu0 %v8397_v15 }
 0xc98   : > { %5847 = vmatprep.mubr.msk.f32.mxu0 %vm6708_vm1, %v8736_v43 }
 0xc9b   : > { %5848 = vmatmul.mubr.f32.gmra.mrb[198].mxu0 %v8403_v7 }
 0xd36   : > { %v3710_v14 = vpop.f32.mrb[154].mxu0 }
 0xd37   : > { %v8407_v63 = vsub.f32 %v8296_v31, %v3710_v14  ;;  %v5807_v54 = vpop.f32.mrb[155].mxu0 }
 0xd39   : > { %v3799_v10 = vmul.f32 %v8407_v63, %v8407_v63 }
 0xd3a   : > { %v3715_v34 = vpop.f32.mrb[172].mxu0 }
 0xd3b   : > { %v8412_v6 = vsub.f32 %v8303_v20, %v3715_v34  ;;  %v5810_v18 = vpop.f32.mrb[173].mxu0  ;;  %5883 = vmatmul.mubr.f32.vlgmr.msra.gmra.mrb[154].mxu1 %v3799_v10  ;;  %v6689_v20 = vld [vmem:[%s8702_s12 + $0x18] sm:$0xff]  }
 0xd3c   : > { %5885 = vmatprep.mubr.msk.f32.mxu1 %vm6708_vm1, %v8736_v43  ;;  %5960 = vmatpush3.bf16.msra.mxu1 %v8292_v57 }
 0xd3d   : > { %v3800_v9 = vmul.f32 %v8412_v6, %v8412_v6  ;;  %5961 = vmatprep.subr.bf16.mxu1 %v6687_v0 }
 0xd3e   : > { %v3720_v39 = vpop.f32.mrb[174].mxu0 }
 0xd3f   : > { %v8423_v46 = vsub.f32 %v8312_v28, %v3720_v39  ;;  %v5813_v51 = vpop.f32.mrb[175].mxu0  ;;  %5886 = vmatmul.mubr.f32.gmra.mrb[172].mxu1 %v3800_v9 }
 0xd40   : > { %5888 = vmatprep.mubr.msk.f32.mxu1 %vm6708_vm1, %v8736_v43  ;;  %5962 = vmatpush3.bf16.msra.mxu1 %v6687_v0 }
 0xd41   : > { %v3801_v57 = vmul.f32 %v8423_v46, %v8423_v46  ;;  %5963 = vmatprep.subr.bf16.mxu1 %v6688_v61 }
 0xd42   : > { %v3725_v1 = vpop.f32.mrb[176].mxu0 }
 0xd43   : > { %v8433_v31 = vsub.f32 %v8321_v24, %v3725_v1  ;;  %v5816_v17 = vpop.f32.mrb[177].mxu0  ;;  %5889 = vmatmul.mubr.f32.gmra.mrb[174].mxu1 %v3801_v57 }
 0xd44   : > { %5891 = vmatprep.mubr.msk.f32.mxu1 %vm6708_vm1, %v8736_v43  ;;  %5964 = vmatpush3.bf16.msra.mxu1 %v6688_v61 }
 0xd45   : > { %v3802_v55 = vmul.f32 %v8433_v31, %v8433_v31  ;;  %5965 = vmatprep.subr.bf16.mxu1 %v6689_v20 }
 0xd46   : > { %v3730_v16 = vpop.f32.mrb[178].mxu0 }
 0xd47   : > { %v8443_v12 = vsub.f32 %v8330_v19, %v3730_v16  ;;  %v5819_v38 = vpop.f32.mrb[179].mxu0  ;;  %5892 = vmatmul.mubr.f32.gmra.mrb[176].mxu1 %v3802_v55 }
 0xd48   : > { %5894 = vmatprep.mubr.msk.f32.mxu1 %vm6708_vm1, %v8736_v43  ;;  %5966 = vmatpush3.bf16.msra.mxu1 %v6689_v20 }
 0xd49   : > { %v3803_v28 = vmul.f32 %v8443_v12, %v8443_v12  ;;  %5967 = vmatprep.subr.bf16.mxu1 %v6690_v41 }
 0xd4a   : > { %v3735_v48 = vpop.f32.mrb[180].mxu0 }
 0xd4b   : > { %v8453_v5 = vsub.f32 %v8339_v60, %v3735_v48  ;;  %v5822_v24 = vpop.f32.mrb[181].mxu0  ;;  %5895 = vmatmul.mubr.f32.gmra.mrb[178].mxu1 %v3803_v28 }
 0xd4c   : > { %5897 = vmatprep.mubr.msk.f32.mxu1 %vm6708_vm1, %v8736_v43  ;;  %5968 = vmatpush3.bf16.msra.mxu1 %v6690_v41 }
 0xd4d   : > { %v3804_v52 = vmul.f32 %v8453_v5, %v8453_v5  ;;  %5969 = vmatprep.subr.bf16.mxu1 %v6691_v25 }
 0xd4e   : > { %v3740_v36 = vpop.f32.mrb[182].mxu0 }
 0xd4f   : > { %v8463_v19 = vsub.f32 %v8348_v35, %v3740_v36  ;;  %v5825_v11 = vpop.f32.mrb[183].mxu0  ;;  %5898 = vmatmul.mubr.f32.gmra.mrb[180].mxu1 %v3804_v52 }
 0xd50   : > { %5900 = vmatprep.mubr.msk.f32.mxu1 %vm6708_vm1, %v8736_v43  ;;  %5970 = vmatpush3.bf16.msra.mxu1 %v6691_v25 }
 0xd51   : > { %v3805_v44 = vmul.f32 %v8463_v19, %v8463_v19  ;;  %5971 = vmatprep.subr.bf16.mxu1 %v6692_v30 }
 0xd52   : > { %v3745_v60 = vpop.f32.mrb[184].mxu0 }
 0xd53   : > { %v8473_v2 = vsub.f32 %v8357_v53, %v3745_v60  ;;  %v5828_v33 = vpop.f32.mrb[185].mxu0  ;;  %5901 = vmatmul.mubr.f32.gmra.mrb[182].mxu1 %v3805_v44 }
 0xd54   : > { %5903 = vmatprep.mubr.msk.f32.mxu1 %vm6708_vm1, %v8736_v43  ;;  %5972 = vmatpush3.bf16.msra.mxu1 %v6692_v30 }
 0xd55   : > { %v3806_v42 = vmul.f32 %v8473_v2, %v8473_v2  ;;  %5973 = vmatprep.subr.bf16.mxu1 %v6693_v4 }
 0xd56   : > { %v3750_v35 = vpop.f32.mrb[186].mxu0 }
 0xd57   : > { %v8483_v32 = vsub.f32 %v8366_v8, %v3750_v35  ;;  %v5831_v62 = vpop.f32.mrb[187].mxu0  ;;  %5904 = vmatmul.mubr.f32.gmra.mrb[184].mxu1 %v3806_v42 }
 0xd58   : > { %5906 = vmatprep.mubr.msk.f32.mxu1 %vm6708_vm1, %v8736_v43  ;;  %5974 = vmatpush3.bf16.msra.mxu1 %v6693_v4 }
 0xd59   : > { %v3807_v40 = vmul.f32 %v8483_v32, %v8483_v32  ;;  %6272 = vmatprep.subr.bf16.mxu1 %v8735_v45 }
 0xd5a   : > { %v3755_v50 = vpop.f32.mrb[188].mxu0 }
 0xd5b   : > { %v8491_v53 = vsub.f32 %v8373_v29, %v3755_v50  ;;  %v5834_v23 = vpop.f32.mrb[189].mxu0  ;;  %5907 = vmatmul.mubr.f32.gmra.mrb[186].mxu1 %v3807_v40 }
 0xd5c   : > { %5909 = vmatprep.mubr.msk.f32.mxu1 %vm6708_vm1, %v8736_v43 }
 0xd5d   : > { %v3808_v47 = vmul.f32 %v8491_v53, %v8491_v53 }
 0xd5e   : > { %v3760_v8 = vpop.f32.mrb[190].mxu0 }
 0xd5f   : > { %v8498_v21 = vsub.f32 %v8379_v58, %v3760_v8  ;;  %v5837_v26 = vpop.f32.mrb[191].mxu0  ;;  %5910 = vmatmul.mubr.f32.gmra.mrb[188].mxu1 %v3808_v47 }
 0xd60   : > { %5912 = vmatprep.mubr.msk.f32.mxu1 %vm6708_vm1, %v8736_v43 }
 0xd61   : > { %v3809_v29 = vmul.f32 %v8498_v21, %v8498_v21 }
 0xd62   : > { %v3765_v22 = vpop.f32.mrb[192].mxu0 }
 0xd63   : > { %v8505_v37 = vsub.f32 %v8385_v27, %v3765_v22  ;;  %v5840_v3 = vpop.f32.mrb[193].mxu0  ;;  %5913 = vmatmul.mubr.f32.gmra.mrb[190].mxu1 %v3809_v29 }
 0xd64   : > { %5915 = vmatprep.mubr.msk.f32.mxu1 %vm6708_vm1, %v8736_v43 }
 0xd65   : > { %v3810_v58 = vmul.f32 %v8505_v37, %v8505_v37 }
 0xd66   : > { %v3770_v59 = vpop.f32.mrb[194].mxu0 }
 0xd67   : > { %v8512_v14 = vsub.f32 %v8391_v56, %v3770_v59  ;;  %v5843_v54 = vpop.f32.mrb[195].mxu0  ;;  %5916 = vmatmul.mubr.f32.gmra.mrb[192].mxu1 %v3810_v58 }
 0xd68   : > { %5918 = vmatprep.mubr.msk.f32.mxu1 %vm6708_vm1, %v8736_v43 }
 0xd69   : > { %v3811_v27 = vmul.f32 %v8512_v14, %v8512_v14 }
 0xd6a   : > { %v3775_v10 = vpop.f32.mrb[196].mxu0 }
 0xd6b   : > { %v8519_v34 = vsub.f32 %v8397_v15, %v3775_v10  ;;  %v5846_v18 = vpop.f32.mrb[197].mxu0  ;;  %5919 = vmatmul.mubr.f32.gmra.mrb[194].mxu1 %v3811_v27 }
 0xd6c   : > { %5921 = vmatprep.mubr.msk.f32.mxu1 %vm6708_vm1, %v8736_v43 }
 0xd6d   : > { %v3812_v56 = vmul.f32 %v8519_v34, %v8519_v34 }
 0xd6e   : > { %v3780_v9 = vpop.f32.mrb[198].mxu0 }
 0xd6f   : > { %v8526_v0 = vsub.f32 %v8403_v7, %v3780_v9  ;;  %v5849_v39 = vpop.f32.mrb[199].mxu0  ;;  %5922 = vmatmul.mubr.f32.gmra.mrb[196].mxu1 %v3812_v56 }
 0xd70   : > { %5924 = vmatprep.mubr.msk.f32.mxu1 %vm6708_vm1, %v8736_v43 }
 0xd71   : > { %v3813_v15 = vmul.f32 %v8526_v0, %v8526_v0 }
 0xd73   : > { %5925 = vmatmul.mubr.f32.gmra.mrb[198].mxu1 %v3813_v15 }
 0xe0e   : > { %v3880_v51 = vpop.f32.mrb[154].mxu1 }
 0xe0f   : > { %v3881_v57 = vadd.f32 1e-05, %v3880_v51  ;;  %v5884_v61 = vpop.f32.mrb[155].mxu1 }
 0xe11   : > { %6598 = vrsqrt.f32 %v3881_v57 }
 0xe12   : > { %v3885_v1 = vpop.f32.mrb[172].mxu1 }
 0xe13   : > { %v3886_v17 = vadd.f32 1e-05, %v3885_v1  ;;  %v5887_v55 = vpop.f32.mrb[173].mxu1 }
 0xe15   : > { %6600 = vrsqrt.f32 %v3886_v17  ;;  %v8556_v17 = vld [vmem:[%s8694_s4] ss:$0 sm:$0xff] }
 0xe16   : > { %v3890_v20 = vpop.f32.mrb[174].mxu1 }
 0xe17   : > { %v3891_v7 = vadd.f32 1e-05, %v3890_v20  ;;  %v5890_v16 = vpop.f32.mrb[175].mxu1 }
 0xe19   : > { %6602 = vrsqrt.f32 %v3891_v7 }
 0xe1a   : > { %v3895_v38 = vpop.f32.mrb[176].mxu1 }
 0xe1b   : > { %v6599_v28 = vpop.eup %6598  ;;  %v3896_v41 = vadd.f32 1e-05, %v3895_v38  ;;  %v5893_v48 = vpop.f32.mrb[177].mxu1 }
 0xe1c   : > { %v3969_v24 = vmul.f32 %v6599_v28, %v8407_v63 }
 0xe1d   : > { %6604 = vrsqrt.f32 %v3896_v41 }
 0xe1e   : > { %v3900_v52 = vpop.f32.mrb[178].mxu1  ;;  %v3984_v30 = vmul.f32 %v8126_v13, %v3969_v24 }
 0xe1f   : > { %v6601_v25 = vpop.eup %6600  ;;  %v3901_v36 = vadd.f32 1e-05, %v3900_v52  ;;  %v5896_v11 = vpop.f32.mrb[179].mxu1 }
 0xe20   : > { %v3970_v44 = vmul.f32 %v6601_v25, %v8412_v6  ;;  %v3999_v63 = vadd.f32 %v8133_v49, %v3984_v30 }
 0xe21   : > { %6606 = vrsqrt.f32 %v3901_v36 }
 0xe22   : > { %v3905_v60 = vpop.f32.mrb[180].mxu1  ;;  %v3985_v33 = vmul.f32 %v8126_v13, %v3970_v44 }
 0xe23   : > { %v6603_v42 = vpop.eup %6602  ;;  %v3906_v4 = vadd.f32 1e-05, %v3905_v60  ;;  %v5899_v35 = vpop.f32.mrb[181].mxu1 }
 0xe24   : > { %v3971_v62 = vmul.f32 %v6603_v42, %v8423_v46  ;;  %v4000_v40 = vadd.f32 %v8133_v49, %v3985_v33 }
 0xe25   : > { %6608 = vrsqrt.f32 %v3906_v4 }
 0xe26   : > { %v3910_v50 = vpop.f32.mrb[182].mxu1  ;;  %v4014_v23 = vpack.c.bf16 %v4000_v40, %v3999_v63  ;;  %v3986_v26 = vmul.f32 %v8126_v13, %v3971_v62 }
 0xe27   : > { %v6605_v47 = vpop.eup %6604  ;;  %v3911_v6 = vadd.f32 1e-05, %v3910_v50  ;;  %v5902_v8 = vpop.f32.mrb[183].mxu1 }
 0xe28   : > { %v3972_v29 = vmul.f32 %v6605_v47, %v8433_v31  ;;  %5943 = vmatprep.mubr.bf16.mxu0 %v4014_v23  ;;  %v4001_v54 = vadd.f32 %v8133_v49, %v3986_v26 }
 0xe29   : > { %6610 = vrsqrt.f32 %v3911_v6 }
 0xe2a   : > { %v3987_v22 = vmul.f32 %v8126_v13, %v3972_v29  ;;  %v3915_v3 = vpop.f32.mrb[184].mxu1  ;;  %v8549_v13 = vld [vmem:[%s8693_s3] ss:$0 sm:$0xff] }
 0xe2b   : > { %v6607_v46 = vpop.eup %6606  ;;  %v3916_v58 = vadd.f32 1e-05, %v3915_v3  ;;  %v5905_v59 = vpop.f32.mrb[185].mxu1 }
 0xe2c   : > { %v4002_v27 = vadd.f32 %v8133_v49, %v3987_v22  ;;  %v3973_v10 = vmul.f32 %v6607_v46, %v8443_v12 }
 0xe2d   : > { %6612 = vrsqrt.f32 %v3916_v58 }
 0xe2e   : > { %v3920_v18 = vpop.f32.mrb[186].mxu1  ;;  %v4015_v56 = vpack.c.bf16 %v4002_v27, %v4001_v54  ;;  %v3988_v51 = vmul.f32 %v8549_v13, %v3973_v10 }
 0xe2f   : > { %v6609_v9 = vpop.eup %6608  ;;  %v3921_v39 = vadd.f32 1e-05, %v3920_v18  ;;  %v5908_v31 = vpop.f32.mrb[187].mxu1 }
 0xe30   : > { %5944 = vmatmul.mubr.bf16.vlgmr.msra.gmra.mrb[200].mxu0 %v4015_v56  ;;  %v3974_v15 = vmul.f32 %v6609_v9, %v8453_v5  ;;  %v4003_v5 = vadd.f32 %v8556_v17, %v3988_v51 }
 0xe31   : > { %6614 = vrsqrt.f32 %v3921_v39 }
 0xe32   : > { %v3925_v49 = vpop.f32.mrb[188].mxu1  ;;  %v3989_v12 = vmul.f32 %v8549_v13, %v3974_v15 }
 0xe33   : > { %v6611_v57 = vpop.eup %6610  ;;  %v3926_v61 = vadd.f32 1e-05, %v3925_v49  ;;  %v5911_v1 = vpop.f32.mrb[189].mxu1 }
 0xe34   : > { %v4004_v55 = vadd.f32 %v8556_v17, %v3989_v12  ;;  %v3975_v20 = vmul.f32 %v6611_v57, %v8463_v19 }
 0xe35   : > { %6616 = vrsqrt.f32 %v3926_v61 }
 0xe36   : > { %v3930_v7 = vpop.f32.mrb[190].mxu1  ;;  %v4016_v16 = vpack.c.bf16 %v4004_v55, %v4003_v5  ;;  %v3990_v24 = vmul.f32 %v8549_v13, %v3975_v20  ;;  %v8592_v5 = vld [vmem:[%s8701_s11] ss:$0 sm:$0xff] }
 0xe37   : > { %v6613_v38 = vpop.eup %6612  ;;  %v3931_v28 = vadd.f32 1e-05, %v3930_v7  ;;  %v5914_v41 = vpop.f32.mrb[191].mxu1 }
 0xe38   : > { %5947 = vmatprep.mubr.bf16.mxu0 %v4016_v16  ;;  %v3976_v48 = vmul.f32 %v6613_v38, %v8473_v2  ;;  %v4005_v19 = vadd.f32 %v8556_v17, %v3990_v24 }
 0xe39   : > { %6618 = vrsqrt.f32 %v3931_v28 }
 0xe3a   : > { %v3935_v52 = vpop.f32.mrb[192].mxu1  ;;  %v3991_v25 = vmul.f32 %v8549_v13, %v3976_v48 }
 0xe3b   : > { %v6615_v36 = vpop.eup %6614  ;;  %v3936_v11 = vadd.f32 1e-05, %v3935_v52  ;;  %v5917_v44 = vpop.f32.mrb[193].mxu1 }
 0xe3c   : > { %v4006_v30 = vadd.f32 %v8556_v17, %v3991_v25  ;;  %v3977_v60 = vmul.f32 %v6615_v36, %v8483_v32 }
 0xe3d   : > { %6620 = vrsqrt.f32 %v3936_v11 }
 0xe3e   : > { %v3940_v33 = vpop.f32.mrb[194].mxu1  ;;  %v4017_v42 = vpack.c.bf16 %v4006_v30, %v4005_v19  ;;  %v3992_v63 = vmul.f32 %v8549_v13, %v3977_v60 }
 0xe3f   : > { %v6617_v4 = vpop.eup %6616  ;;  %v3941_v2 = vadd.f32 1e-05, %v3940_v33  ;;  %v5920_v35 = vpop.f32.mrb[195].mxu1 }
 0xe40   : > { %5948 = vmatmul.mubr.bf16.gmra.mrb[204].mxu0 %v4017_v42  ;;  %v3978_v62 = vmul.f32 %v6617_v4, %v8491_v53  ;;  %v4007_v32 = vadd.f32 %v8556_v17, %v3992_v63 }
 0xe41   : > { %6622 = vrsqrt.f32 %v3941_v2 }
 0xe42   : > { %v3945_v40 = vpop.f32.mrb[196].mxu1  ;;  %v3993_v50 = vmul.f32 %v8549_v13, %v3978_v62 }
 0xe43   : > { %v6619_v23 = vpop.eup %6618  ;;  %v3946_v47 = vadd.f32 1e-05, %v3945_v40  ;;  %v5923_v6 = vpop.f32.mrb[197].mxu1 }
 0xe44   : > { %v4008_v8 = vadd.f32 %v8556_v17, %v3993_v50  ;;  %v3979_v26 = vmul.f32 %v6619_v23, %v8498_v21 }
 0xe45   : > { %6624 = vrsqrt.f32 %v3946_v47 }
 0xe46   : > { %v3950_v29 = vpop.f32.mrb[198].mxu1  ;;  %v4018_v22 = vpack.c.bf16 %v4008_v8, %v4007_v32  ;;  %v3994_v59 = vmul.f32 %v8549_v13, %v3979_v26 }
 0xe47   : > { %v6621_v3 = vpop.eup %6620  ;;  %v3951_v53 = vadd.f32 1e-05, %v3950_v29  ;;  %v5926_v46 = vpop.f32.mrb[199].mxu1 }
 0xe48   : > { %5951 = vmatprep.mubr.bf16.mxu0 %v4018_v22  ;;  %v3980_v58 = vmul.f32 %v6621_v3, %v8505_v37  ;;  %v4009_v10 = vadd.f32 %v8556_v17, %v3994_v59 }
 0xe49   : > { %6626 = vrsqrt.f32 %v3951_v53 }
 0xe4a   : > { %v3995_v54 = vmul.f32 %v8549_v13, %v3980_v58 }
 0xe4b   : > { %v6623_v27 = vpop.eup %6622 }
 0xe4c   : > { %v4010_v18 = vadd.f32 %v8556_v17, %v3995_v54  ;;  %v3981_v21 = vmul.f32 %v6623_v27, %v8512_v14 }
 0xe4e   : > { %v4019_v56 = vpack.c.bf16 %v4010_v18, %v4009_v10  ;;  %v3996_v31 = vmul.f32 %v8549_v13, %v3981_v21 }
 0xe4f   : > { %v6625_v9 = vpop.eup %6624 }
 0xe50   : > { %5952 = vmatmul.mubr.bf16.gmra.mrb[208].mxu0 %v4019_v56  ;;  %v3982_v39 = vmul.f32 %v6625_v9, %v8519_v34  ;;  %v4011_v51 = vadd.f32 %v8556_v17, %v3996_v31 }
 0xe52   : > { %v3997_v37 = vmul.f32 %v8549_v13, %v3982_v39 }
 0xe53   : > { %v6627_v15 = vpop.eup %6626 }
 0xe54   : > { %v4012_v49 = vadd.f32 %v8556_v17, %v3997_v37  ;;  %v3983_v12 = vmul.f32 %v6627_v15, %v8526_v0 }
 0xe56   : > { %v4020_v57 = vpack.c.bf16 %v4012_v49, %v4011_v51  ;;  %v3998_v61 = vmul.f32 %v8549_v13, %v3983_v12 }
 0xe58   : > { %5955 = vmatprep.mubr.bf16.mxu0 %v4020_v57  ;;  %v4013_v14 = vadd.f32 %v8556_v17, %v3998_v61 }
 0xe5a   : > { %v4021_v1 = vpack.c.bf16 %v4013_v14, %v4013_v14 }
 0xe5c   : > { %5956 = vmatmul.mubr.bf16.gmra.mrb[212].mxu0 %v4021_v1 }
 0xe5d   : > { %6021 = vmatprep.mubr.msk.f32.mxu0 %vm6708_vm1, %v8736_v43 }
 0xf03   : > { %v5945_v34 = vpop.f32.mrb[200].mxu0 }
 0xf04   : > { %v4065_v55 = vadd.f32 %v8592_v5, %v5945_v34  ;;  %v4056_v0 = vpop.f32.mrb[201].mxu0 }
 0xf05   : > { %v4057_v20 = vadd.f32 %v8592_v5, %v4056_v0  ;;  %v5946_v13 = vpop.f32.mrb[202].mxu0 }
 0xf06   : > { %v4135_v7 = vmul.f32 0.70710677, %v4065_v55  ;;  %v4068_v17 = vadd.f32 %v8592_v5, %v5946_v13  ;;  %v4059_v16 = vpop.f32.mrb[203].mxu0  ;;  %v4120_v33 = vmul.f32 0.5, %v4065_v55 }
 0xf07   : > { %v4133_v38 = vmul.f32 0.70710677, %v4057_v20  ;;  %v4060_v28 = vadd.f32 %v8592_v5, %v4059_v16  ;;  %v4118_v62 = vmul.f32 0.5, %v4057_v20 }
 0xf08   : > { %6628 = verf.f32 %v4135_v7  ;;  %v4136_v41 = vmul.f32 0.70710677, %v4068_v17  ;;  %v4121_v42 = vmul.f32 0.5, %v4068_v17 }
 0xf09   : > { %6630 = verf.f32 %v4133_v38  ;;  %v4134_v48 = vmul.f32 0.70710677, %v4060_v28  ;;  %v4119_v63 = vmul.f32 0.5, %v4060_v28 }
 0xf0a   : > { %6632 = verf.f32 %v4136_v41 }
 0xf0b   : > { %6634 = verf.f32 %v4134_v48 }
 0xf12   : > { %v6629_v24 = vpop.eup %6628 }
 0xf13   : > { %v6631_v52 = vpop.eup %6630  ;;  %v4165_v25 = vadd.f32 1.0, %v6629_v24  ;;  %v5949_v36 = vpop.f32.mrb[204].mxu0 }
 0xf14   : > { %v6633_v11 = vpop.eup %6632  ;;  %v4163_v44 = vadd.f32 1.0, %v6631_v52  ;;  %v4081_v19 = vadd.f32 %v8592_v5, %v5949_v36  ;;  %v4072_v30 = vpop.f32.mrb[205].mxu0 }
 0xf15   : > { %v6635_v60 = vpop.eup %6634  ;;  %v4166_v4 = vadd.f32 1.0, %v6633_v11  ;;  %v4073_v2 = vadd.f32 %v8592_v5, %v4072_v30  ;;  %v5950_v35 = vpop.f32.mrb[206].mxu0  ;;  %v4180_v47 = vmul.f32 %v4165_v25, %v4120_v33 }
 0xf16   : > { %v4164_v40 = vadd.f32 1.0, %v6635_v60  ;;  %v4139_v50 = vmul.f32 0.70710677, %v4081_v19  ;;  %v4075_v23 = vpop.f32.mrb[207].mxu0  ;;  %v4084_v8 = vadd.f32 %v8592_v5, %v5950_v35  ;;  %v4178_v26 = vmul.f32 %v4163_v44, %v4118_v62 }
 0xf17   : > { %v4181_v6 = vmul.f32 %v4166_v4, %v4121_v42  ;;  %v4137_v32 = vmul.f32 0.70710677, %v4073_v2  ;;  %v4076_v22 = vadd.f32 %v8592_v5, %v4075_v23  ;;  %v4124_v9 = vmul.f32 0.5, %v4081_v19 }
 0xf18   : > { %v4179_v29 = vmul.f32 %v4164_v40, %v4119_v63  ;;  %6636 = verf.f32 %v4139_v50  ;;  %v4140_v53 = vmul.f32 0.70710677, %v4084_v8  ;;  %v4122_v51 = vmul.f32 0.5, %v4073_v2 }
 0xf19   : > { %v4194_v3 = vpack.c.bf16 %v4181_v6, %v4180_v47  ;;  %6638 = verf.f32 %v4137_v32  ;;  %v4138_v46 = vmul.f32 0.70710677, %v4076_v22  ;;  %v4125_v49 = vmul.f32 0.5, %v4084_v8 }
 0xf1a   : > { %v4193_v58 = vpack.c.bf16 %v4179_v29, %v4178_v26  ;;  %6640 = verf.f32 %v4140_v53  ;;  %v4123_v14 = vmul.f32 0.5, %v4076_v22 }
 0xf1b   : > { %6642 = verf.f32 %v4138_v46 }
 0xf1c   : > { %5975 = vmatprep.mubr.bf16.mxu1 %v4193_v58 }
 0xf1d   : > { %5976 = vmatmul.mubr.bf16.vlgmr.msra.gmra.mrb[200].mxu1 %v4194_v3 }
 0xf22   : > { %v6637_v59 = vpop.eup %6636 }
 0xf23   : > { %v6639_v54 = vpop.eup %6638  ;;  %v5953_v27 = vpop.f32.mrb[208].mxu0  ;;  %v4169_v10 = vadd.f32 1.0, %v6637_v59 }
 0xf24   : > { %v4097_v18 = vadd.f32 %v8592_v5, %v5953_v27  ;;  %v4088_v21 = vpop.f32.mrb[209].mxu0  ;;  %v6641_v56 = vpop.eup %6640  ;;  %v4167_v39 = vadd.f32 1.0, %v6639_v54 }
 0xf25   : > { %v4089_v31 = vadd.f32 %v8592_v5, %v4088_v21  ;;  %v5954_v37 = vpop.f32.mrb[210].mxu0  ;;  %v6643_v15 = vpop.eup %6642  ;;  %v4170_v12 = vadd.f32 1.0, %v6641_v56  ;;  %v4184_v0 = vmul.f32 %v4169_v10, %v4124_v9 }
 0xf26   : > { %v4143_v57 = vmul.f32 0.70710677, %v4097_v18  ;;  %v4091_v61 = vpop.f32.mrb[211].mxu0  ;;  %v4168_v1 = vadd.f32 1.0, %v6643_v15  ;;  %v4100_v55 = vadd.f32 %v8592_v5, %v5954_v37  ;;  %v4182_v7 = vmul.f32 %v4167_v39, %v4122_v51  ;;  %v707_v37 = vld [vmem:[%s8705_s15] sm:$0xff]  ;;  %v708_v15 = vld [vmem:[%s8705_s15 + $0x8] sm:$0xff] }
 0xf27   : > { %v4141_v34 = vmul.f32 0.70710677, %v4089_v31  ;;  %v4185_v20 = vmul.f32 %v4170_v12, %v4125_v49  ;;  %v4092_v13 = vadd.f32 %v8592_v5, %v4091_v61  ;;  %v4128_v63 = vmul.f32 0.5, %v4097_v18  ;;  %v709_v51 = vld [vmem:[%s8705_s15 + $0x10] sm:$0xff]  ;;  %v710_v12 = vld [vmem:[%s8705_s15 + $0x18] sm:$0xff]  ;;  %v711_v61 = vld [vmem:[%s8705_s15 + $0x20] sm:$0xff] }
 0xf28   : > { %6644 = verf.f32 %v4143_v57  ;;  %v4183_v17 = vmul.f32 %v4168_v1, %v4123_v14  ;;  %v4144_v16 = vmul.f32 0.70710677, %v4100_v55  ;;  %v4129_v40 = vmul.f32 0.5, %v4100_v55  ;;  %v712_v14 = vld [vmem:[%s8705_s15 + $0x28] sm:$0xff]  ;;  %v714_v55 = vld [vmem:[%s8705_s15 + $0x38] sm:$0xff] }
 0xf29   : > { %6646 = verf.f32 %v4141_v34  ;;  %v4142_v38 = vmul.f32 0.70710677, %v4092_v13  ;;  %v4196_v28 = vpack.c.bf16 %v4185_v20, %v4184_v0  ;;  %v4126_v23 = vmul.f32 0.5, %v4089_v31  ;;  %v713_v34 = vld [vmem:[%s8705_s15 + $0x30] sm:$0xff]  ;;  %v715_v20 = vld [vmem:[%s8705_s15 + $0x40] sm:$0xff] }
 0xf2a   : > { %6648 = verf.f32 %v4144_v16  ;;  %v4195_v41 = vpack.c.bf16 %v4183_v17, %v4182_v7  ;;  %v4127_v47 = vmul.f32 0.5, %v4092_v13  ;;  %v6273_v49 = vpack.c.bf16 %v708_v15, %v707_v37  ;;  %v716_v13 = vld [vmem:[%s8705_s15 + $0x48] sm:$0xff]  ;;  %v717_v17 = vld [vmem:[%s8705_s15 + $0x50] sm:$0xff]  ;;  %v718_v16 = vld [vmem:[%s8705_s15 + $0x58] sm:$0xff] }
 0xf2b   : > { %6650 = verf.f32 %v4142_v38  ;;  %v6276_v57 = vpack.c.bf16 %v710_v12, %v709_v51  ;;  %v6279_v1 = vpack.c.bf16 %v712_v14, %v711_v61  ;;  %v6282_v0 = vpack.c.bf16 %v714_v55, %v713_v34  ;;  %v706_v15 = vld [vmem:[%s8704_s14] sm:$0x7] }
 0xf2c   : > { %5979 = vmatprep.mubr.bf16.mxu1 %v4195_v41  ;;  %6274 = vmatpush3.bf16.msra.mxu1 %v6273_v49  ;;  %v6285_v7 = vpack.c.bf16 %v716_v13, %v715_v20  ;;  %v6288_v38 = vpack.c.bf16 %v718_v16, %v717_v17  ;;  %v720_v41 = vld [vmem:[%s8705_s15 + $0x68] sm:$0xff] }
 0xf2d   : > { %5980 = vmatmul.mubr.bf16.gmra.mrb[204].mxu1 %v4196_v28  ;;  %6275 = vmatprep.subr.bf16.mxu1 %v8735_v45  ;;  %v719_v28 = vld [vmem:[%s8705_s15 + $0x60] sm:$0xff] }
 0xf2f   : > { %v5957_v48 = vpop.f32.mrb[212].mxu0 }
 0xf30   : > { %v4113_v24 = vadd.f32 %v8592_v5, %v5957_v48  ;;  %v4104_v52 = vpop.f32.mrb[213].mxu0  ;;  %6277 = vmatpush3.bf16.msra.mxu1 %v6276_v57  ;;  %v6291_v48 = vpack.c.bf16 %v720_v41, %v719_v28 }
 0xf31   : > { %v4105_v25 = vadd.f32 %v8592_v5, %v4104_v52  ;;  %v5958_v36 = vpop.f32.mrb[214].mxu0  ;;  %6278 = vmatprep.subr.bf16.mxu1 %v8735_v45  ;;  %v722_v52 = vld [vmem:[%s8705_s15 + $0x78] sm:$0xff] }
 0xf32   : > { %v6645_v11 = vpop.eup %6644  ;;  %v4147_v44 = vmul.f32 0.70710677, %v4113_v24  ;;  %v4107_v19 = vpop.f32.mrb[215].mxu0  ;;  %v4132_v54 = vmul.f32 0.5, %v4113_v24  ;;  %v721_v24 = vld [vmem:[%s8705_s15 + $0x70] sm:$0xff] }
 0xf33   : > { %v6647_v30 = vpop.eup %6646  ;;  %v4145_v60 = vmul.f32 0.70710677, %v4105_v25  ;;  %v4108_v33 = vadd.f32 %v8592_v5, %v4107_v19  ;;  %v4173_v42 = vadd.f32 1.0, %v6645_v11  ;;  %v4130_v27 = vmul.f32 0.5, %v4105_v25  ;;  %v6697_v19 = vld [vmem:[%s8703_s13] ss:$0 sm:$0xff] }
 0xf34   : > { %6652 = verf.f32 %v4147_v44  ;;  %v6649_v4 = vpop.eup %6648  ;;  %v4171_v2 = vadd.f32 1.0, %v6647_v30  ;;  %6280 = vmatpush3.bf16.msra.mxu1 %v6279_v1  ;;  %v6294_v25 = vpack.c.bf16 %v722_v52, %v721_v24 }
 0xf35   : > { %6654 = verf.f32 %v4145_v60  ;;  %v4146_v35 = vmul.f32 0.70710677, %v4108_v33  ;;  %v6651_v62 = vpop.eup %6650  ;;  %v4174_v50 = vadd.f32 1.0, %v6649_v4  ;;  %v4188_v32 = vmul.f32 %v4173_v42, %v4128_v63  ;;  %6281 = vmatprep.subr.bf16.mxu1 %v8735_v45 }
 0xf36   : > { %v4172_v6 = vadd.f32 1.0, %v6651_v62  ;;  %v4186_v26 = vmul.f32 %v4171_v2, %v4126_v23  ;;  %v4131_v10 = vmul.f32 0.5, %v4108_v33 }
 0xf37   : > { %6656 = verf.f32 %v4146_v35  ;;  %v4189_v8 = vmul.f32 %v4174_v50, %v4129_v40 }
 0xf38   : > { %v4187_v29 = vmul.f32 %v4172_v6, %v4127_v47  ;;  %6283 = vmatpush3.bf16.msra.mxu1 %v6282_v0 }
 0xf39   : > { %v4198_v22 = vpack.c.bf16 %v4189_v8, %v4188_v32  ;;  %6284 = vmatprep.subr.bf16.mxu1 %v8735_v45 }
 0xf3a   : > { %v4197_v5 = vpack.c.bf16 %v4187_v29, %v4186_v26 }
 0xf3c   : > { %5983 = vmatprep.mubr.bf16.mxu1 %v4197_v5  ;;  %6286 = vmatpush3.bf16.msra.mxu1 %v6285_v7 }
 0xf3d   : > { %5984 = vmatmul.mubr.bf16.gmra.mrb[208].mxu1 %v4198_v22  ;;  %6287 = vmatprep.subr.bf16.mxu1 %v8735_v45 }
 0xf3e   : > { %v6653_v3 = vpop.eup %6652 }
 0xf3f   : > { %v6655_v53 = vpop.eup %6654  ;;  %v4177_v46 = vadd.f32 1.0, %v6653_v3 }
 0xf40   : > { %v4175_v58 = vadd.f32 1.0, %v6655_v53  ;;  %6289 = vmatpush3.bf16.msra.mxu1 %v6288_v38 }
 0xf41   : > { %v6657_v59 = vpop.eup %6656  ;;  %v4192_v21 = vmul.f32 %v4177_v46, %v4132_v54  ;;  %6290 = vmatprep.subr.bf16.mxu1 %v8735_v45 }
 0xf42   : > { %v4176_v18 = vadd.f32 1.0, %v6657_v59  ;;  %v4190_v56 = vmul.f32 %v4175_v58, %v4130_v27 }
 0xf43   : > { %v4200_v31 = vpack.c.bf16 %v4192_v21, %v4192_v21 }
 0xf44   : > { %v4191_v9 = vmul.f32 %v4176_v18, %v4131_v10  ;;  %6292 = vmatpush3.bf16.msra.mxu1 %v6291_v48 }
 0xf45   : > { %6293 = vmatprep.subr.bf16.mxu1 %v8735_v45 }
 0xf46   : > { %v4199_v39 = vpack.c.bf16 %v4191_v9, %v4190_v56 }
 0xf48   : > { %5987 = vmatprep.mubr.bf16.mxu1 %v4199_v39  ;;  %6295 = vmatpush3.bf16.msra.mxu1 %v6294_v25 }
 0xf49   : > { %5988 = vmatmul.mubr.bf16.gmra.mrb[212].mxu1 %v4200_v31 }
 0xf4a   : > { %6056 = vmatprep.mubr.msk.f32.mxu1 %vm6708_vm1, %v8736_v43 }
 0xff0   : > { %v5977_v36 = vpop.f32.mrb[200].mxu1 }
 0xff1   : > { %v4235_v11 = vpop.f32.mrb[201].mxu1  ;;  %v4244_v30 = vadd.f32 %v6697_v19, %v5977_v36 }
 0xff2   : > { %v5978_v44 = vpop.f32.mrb[202].mxu1  ;;  %v4236_v42 = vadd.f32 %v6697_v19, %v4235_v11 }
 0xff3   : > { %v4247_v60 = vadd.f32 %v6697_v19, %v5978_v44  ;;  %v4238_v33 = vpop.f32.mrb[203].mxu1 }
 0xff4   : > { %v4239_v4 = vadd.f32 %v6697_v19, %v4238_v33 }
 0xff5   : > { %v6255_v2 = vpack.c.bf16 %v4247_v60, %v4244_v30 }
 0xff6   : > { %v6252_v35 = vpack.c.bf16 %v4239_v4, %v4236_v42 }
 0xff8   : > { %6253 = vmatpush3.bf16.msra.mxu0 %v6252_v35 }
 0xff9   : > { %6254 = vmatprep.subr.bf16.mxu0 %v8735_v45 }
 0xffc   : > { %6256 = vmatpush3.bf16.msra.mxu0 %v6255_v2 }
 0xffd   : > { %6257 = vmatprep.subr.bf16.mxu0 %v8735_v45 }
0x1000   : > { %v5981_v62 = vpop.f32.mrb[204].mxu1 }
0x1001   : > { %v4251_v63 = vpop.f32.mrb[205].mxu1  ;;  %v4260_v50 = vadd.f32 %v6697_v19, %v5981_v62 }
0x1002   : > { %v5982_v40 = vpop.f32.mrb[206].mxu1  ;;  %v4252_v6 = vadd.f32 %v6697_v19, %v4251_v63 }
0x1003   : > { %v4263_v23 = vadd.f32 %v6697_v19, %v5982_v40  ;;  %v4254_v47 = vpop.f32.mrb[207].mxu1 }
0x1004   : > { %v4255_v32 = vadd.f32 %v6697_v19, %v4254_v47 }
0x1005   : > { %v6261_v8 = vpack.c.bf16 %v4263_v23, %v4260_v50 }
0x1006   : > { %v6258_v26 = vpack.c.bf16 %v4255_v32, %v4252_v6 }
0x1008   : > { %6259 = vmatpush3.bf16.msra.mxu0 %v6258_v26 }
0x1009   : > { %6260 = vmatprep.subr.bf16.mxu0 %v8735_v45 }
0x100c   : > { %6262 = vmatpush3.bf16.msra.mxu0 %v6261_v8 }
0x100d   : > { %6263 = vmatprep.subr.bf16.mxu0 %v8735_v45 }
0x1010   : > { %v5985_v29 = vpop.f32.mrb[208].mxu1 }
0x1011   : > { %v4267_v22 = vpop.f32.mrb[209].mxu1  ;;  %v4276_v3 = vadd.f32 %v6697_v19, %v5985_v29 }
0x1012   : > { %v5986_v5 = vpop.f32.mrb[210].mxu1  ;;  %v4268_v58 = vadd.f32 %v6697_v19, %v4267_v22 }
0x1013   : > { %v4279_v53 = vadd.f32 %v6697_v19, %v5986_v5  ;;  %v4270_v46 = vpop.f32.mrb[211].mxu1 }
0x1014   : > { %v4271_v59 = vadd.f32 %v6697_v19, %v4270_v46 }
0x1015   : > { %v6267_v54 = vpack.c.bf16 %v4279_v53, %v4276_v3 }
0x1016   : > { %v6264_v27 = vpack.c.bf16 %v4271_v59, %v4268_v58 }
0x1018   : > { %6265 = vmatpush3.bf16.msra.mxu0 %v6264_v27 }
0x1019   : > { %6266 = vmatprep.subr.bf16.mxu0 %v8735_v45 }
0x101c   : > { %v5989_v10 = vpop.f32.mrb[212].mxu1  ;;  %6268 = vmatpush3.bf16.msra.mxu0 %v6267_v54 }
0x101d   : > { %v4283_v18 = vpop.f32.mrb[213].mxu1  ;;  %6269 = vmatprep.subr.bf16.mxu0 %v8735_v45  ;;  %v4292_v37 = vadd.f32 %v6697_v19, %v5989_v10  ;;  %v4643_v45 = vld [vmem:[%s8706_s16] ss:$0 sm:$0xff] }
0x101e   : > { %v5990_v21 = vpop.f32.mrb[214].mxu1  ;;  %v4284_v9 = vadd.f32 %v6697_v19, %v4283_v18 }
0x101f   : > { %v4286_v56 = vpop.f32.mrb[215].mxu1 }
0x1020   : > { %v4287_v39 = vadd.f32 %v6697_v19, %v4286_v56 }
0x1022   : > { %v6270_v31 = vpack.c.bf16 %v4287_v39, %v4284_v9 }
0x1024   : > { %6271 = vmatpush3.bf16.msra.mxu0 %v6270_v31 }
0x1025   : > { %6019 = vmatprep.subr.mxu0 %v8736_v43 }
0x1028   : > { %6020 = vmatpush3.msra.mxu0 %v4292_v37 }
0x1029   : > { %6022 = vmatmul.mubr.msk.f32.vlgmr.msra.gmra.mrb[216].mxu0 %vm1867_vm2, %v706_v15 }
0x10fc   : > { %v4366_v51 = vpop.f32.mrb[216].mxu0 }
0x10fd   : > { %v6023_v49 = vpop.f32.mrb[217].mxu0  ;;  %6057 = vmatmul.mubr.f32.vlgmr.msra.gmra.mrb[216].mxu1 %v4366_v51 }
0x11d0   : > { %v4443_v43 = vpop.f32.mrb[216].mxu1 }
0x11d1   : > { %v4444_v12 = vadd.f32 %v4643_v45, %v4443_v43  ;;  %v6058_v57 = vpop.f32.mrb[217].mxu1 }
0x11d3   : > { %4447 = vst [vmem:[%s546_s19] sm:$0x7] %v4444_v12 }
0x11d4 PF: > { %s27_s24 = sadd.s32 1, %s6704_s24  }
0x11d5   : > { %p24_p4 = scmp.ge.s32.totalorder %s27_s24, 10  }
0x11d7   :  { %26 = sbr.rel (!%p24_p4) target bundleno = 3 (0x3), region = 118 }

</bundles_post_ra>
